<compile_context>
chip_gen: v6e
topology: v6e:2x2x1
jax: 0.10.0
libtpu: 0.0.40
codegen_flags: <defaults>
</compile_context>

<pallas_src>
import jax
import jax.numpy as jnp
from jax import lax
from jax.experimental import pallas as pl
from jax.experimental.pallas import tpu as pltpu


def _layernorm(x, gamma, beta, eps=1e-12):
    mu = jnp.mean(x, axis=-1, keepdims=True)
    xc = x - mu
    var = jnp.mean(xc * xc, axis=-1, keepdims=True)
    return xc * lax.rsqrt(var + eps) * gamma + beta


def _make_kernel(fused_kv):
    """Builds the fused encoder + fc-head kernel.

    Ref order: ids, mask, tok_emb, pos_emb, wq, [wkv | wk, wv], wo,
               ln1_g, ln1_b, wff1, bff1, wff2, bff2, ln2_g, ln2_b, wfc, bfc, out.
    """

    def kernel(ids_ref, mask_ref, tok_ref, pos_ref, wq_ref, *rest):
        if fused_kv:
            (wkv_ref, wo_ref, ln1g_ref, ln1b_ref,
             wff1_ref, bff1_ref, wff2_ref, bff2_ref,
             ln2g_ref, ln2b_ref, wfc_ref, bfc_ref, out_ref) = rest
        else:
            (wk_ref, wv_ref, wo_ref, ln1g_ref, ln1b_ref,
             wff1_ref, bff1_ref, wff2_ref, bff2_ref,
             ln2g_ref, ln2b_ref, wfc_ref, bfc_ref, out_ref) = rest

        tb, s = ids_ref.shape
        vocab, h = tok_ref.shape

        # ---- fused embedding gather: one-hot (TB*S,V) @ tok_emb (V,H) on the MXU
        ids = ids_ref[...]                                            # [TB,S] i32
        iota_v = lax.broadcasted_iota(jnp.int32, (tb, s, vocab), 2)
        onehot = jnp.where(ids[:, :, None] == iota_v, 1.0, 0.0)       # [TB,S,V] f32
        onehot = onehot.astype(jnp.bfloat16).reshape(tb * s, vocab)
        x_flat = jnp.dot(onehot, tok_ref[...],
                         preferred_element_type=jnp.float32)          # [TB*S,H] f32
        pos = jnp.broadcast_to(pos_ref[...][None], (tb, s, h)).reshape(tb * s, h)
        x_flat = x_flat + pos                                         # token + position
        xf_bf = x_flat.astype(jnp.bfloat16)                           # MXU operand

        # ---- K/V projections over the full sequence (M = TB*S on the MXU) ------
        if fused_kv:
            # H % 128 == 0 -> the lane split at offset H is tile-aligned (free).
            kv = jnp.dot(xf_bf, wkv_ref[...], preferred_element_type=jnp.float32)
            k = kv[:, :h].reshape(tb, s, h)                           # [TB,S,H] f32
            v = kv[:, h:].reshape(tb, s, h)
        else:
            k = jnp.dot(xf_bf, wk_ref[...],
                        preferred_element_type=jnp.float32).reshape(tb, s, h)
            v = jnp.dot(xf_bf, wv_ref[...],
                        preferred_element_type=jnp.float32).reshape(tb, s, h)

        # ---- CLS-only query / attention (query length == 1) ---------------------
        x_cls = x_flat.reshape(tb, s, h)[:, 0, :]                     # [TB,H] f32
        q_cls = jnp.dot(x_cls.astype(jnp.bfloat16), wq_ref[...],
                        preferred_element_type=jnp.float32)           # [TB,H] f32

        scale = 1.0 / (float(h) ** 0.5)
        # TODO(synk): for long S move this VPU/XLU path onto the MXU (dot over S).
        scores = jnp.sum(q_cls[:, None, :] * k, axis=-1) * scale      # [TB,S] f32
        mask = mask_ref[...]                                          # [TB,S] f32
        scores = scores + (1.0 - mask) * (-1e9)

        m = jnp.max(scores, axis=-1, keepdims=True)
        p = jnp.exp(scores - m)
        p = p * pl.reciprocal(jnp.sum(p, axis=-1, keepdims=True), approx=True)

        attn = jnp.sum(p[:, :, None] * v, axis=1)                     # [TB,H] f32
        attn = jnp.dot(attn.astype(jnp.bfloat16), wo_ref[...],
                       preferred_element_type=jnp.float32)            # [TB,H] f32

        h_cls = _layernorm(x_cls + attn, ln1g_ref[...], ln1b_ref[...])  # [TB,H] f32

        # ---- feed-forward on the CLS rows only ----------------------------------
        f = jnp.dot(h_cls.astype(jnp.bfloat16), wff1_ref[...],
                    preferred_element_type=jnp.float32) + bff1_ref[...]   # [TB,F]
        f = jax.nn.gelu(f, approximate=True)
        f = jnp.dot(f.astype(jnp.bfloat16), wff2_ref[...],
                    preferred_element_type=jnp.float32) + bff2_ref[...]   # [TB,H]

        hidden_cls = _layernorm(h_cls + f, ln2g_ref[...], ln2b_ref[...])  # [TB,H]

        # ---- fc head (bf16 MXU operands) + exact softmax, lane-dense store -------
        logits = jnp.dot(hidden_cls.astype(jnp.bfloat16), wfc_ref[...],
                         preferred_element_type=jnp.float32) + bfc_ref[...]  # [TB,OUT_PAD]
        m2 = jnp.max(logits, axis=-1, keepdims=True)
        e = jnp.exp(logits - m2)          # padded columns: exp(-1e9 - m2) -> 0
        probs = e / jnp.sum(e, axis=-1, keepdims=True)                # exact softmax
        out_ref[...] = probs                                          # [TB,OUT_PAD]

    return kernel


def nc_custom_model_forward(input_ids, attention_mask, params, *, batch_tile=16):
    """JAX glue (weight fusion/padding) + fused Pallas kernel."""
    ids = input_ids.astype(jnp.int32)
    mask = attention_mask.astype(jnp.float32)

    B, S = ids.shape
    V, H = params["tok_emb"].shape
    F = params["wff1"].shape[1]
    out_dim = params["wfc"].shape[1]
    out_pad = max(128, ((out_dim + 127) // 128) * 128)   # lane-dense output width

    tb = min(batch_tile, B)
    assert B % tb == 0, "batch size must be divisible by the batch tile"
    assert tb == B or tb % 8 == 0, "batch tile must be a multiple of 8 (dense stores)"
    # Note: keep B // tb >= 2 where possible so v7x can shard the parallel axis
    # across both TensorCores.

    # Fuse K|V only when the lane split at offset H is 128-aligned.
    fused_kv = (H % 128 == 0)

    tok_bf = params["tok_emb"].astype(jnp.bfloat16)
    pos_f32 = params["pos_emb"].astype(jnp.float32)
    wq = params["wq"].astype(jnp.bfloat16)
    wo = params["wo"].astype(jnp.bfloat16)
    wff1 = params["wff1"].astype(jnp.bfloat16)
    wff2 = params["wff2"].astype(jnp.bfloat16)

    # fc head: bf16 padded weight, f32 bias with -1e9 in padded columns so the
    # final softmax stays exact over the real classes.
    wfc = jnp.zeros((H, out_pad), jnp.float32).at[:, :out_dim].set(params["wfc"])
    wfc = wfc.astype(jnp.bfloat16)
    bfc = jnp.full((1, out_pad), -1e9, jnp.float32).at[:, :out_dim].set(params["bfc"])

    if fused_kv:
        kv_weights = (jnp.concatenate([params["wk"], params["wv"]], axis=1)
                      .astype(jnp.bfloat16),)
    else:
        kv_weights = (params["wk"].astype(jnp.bfloat16),
                      params["wv"].astype(jnp.bfloat16))

    weight_args = (tok_bf, pos_f32, wq) + kv_weights + (
        wo,
        params["ln1_g"], params["ln1_b"],
        wff1, params["bff1"], wff2, params["bff2"],
        params["ln2_g"], params["ln2_b"],
        wfc, bfc)

    kernel = _make_kernel(fused_kv)
    out_shape = jax.ShapeDtypeStruct((B, out_pad), jnp.float32)

    # Generation-aware VMEM cap: leave headroom for compiler-internal scratch
    # (~112 MiB usable on v5e/v6e, ~56 MiB on v7x).
    try:
        phys_vmem = int(pltpu.get_tpu_info().vmem_capacity_bytes)
    except Exception:
        phys_vmem = 64 << 20
    vmem_cap = phys_vmem - max(8 << 20, phys_vmem // 8)

    weight_bytes = sum(int(a.size) * a.dtype.itemsize for a in weight_args)

    def _build(single_buffer_weights):
        use_buffered = single_buffer_weights and hasattr(pl, "Buffered")

        def const(shape):
            index_map = lambda i: (0,) * len(shape)
            if use_buffered:
                # Constant weights need no double buffering.
                return pl.BlockSpec(shape, index_map, pipeline_mode=pl.Buffered(1))
            return pl.BlockSpec(shape, index_map)

        in_specs = [
            pl.BlockSpec((tb, S), lambda i: (i, 0)),      # input_ids  (batch tile)
            pl.BlockSpec((tb, S), lambda i: (i, 0)),      # attn mask  (batch tile)
        ] + [const(w.shape) for w in weight_args]
        out_specs = pl.BlockSpec((tb, out_pad), lambda i: (i, 0))

        # Explicit working-set estimate (no fudge factors):
        wb = 1 if use_buffered else 2
        io_bytes = 2 * (tb * S * 4) + tb * out_pad * 4            # ids + mask + out blocks
        inter_bytes = (tb * S * V * 2                             # one-hot bf16
                       + tb * S * H * (4 + 2 + 2 * 4)             # x f32 + x bf16 + k,v f32
                       + tb * S * 4 * 4                           # scores / probs
                       + tb * (F + 4 * H + 2 * out_pad) * 4)      # ffn / cls temporaries
        needed = wb * weight_bytes + 2 * io_bytes + 2 * inter_bytes + (2 << 20)
        vmem_limit = int(max(4 << 20, min(needed, vmem_cap)))

        return pl.pallas_call(
            kernel,
            out_shape=out_shape,
            grid=(B // tb,),
            in_specs=in_specs,
            out_specs=out_specs,
            compiler_params=pltpu.CompilerParams(
                dimension_semantics=("parallel",),   # batch-parallel (v7x: 2 TCs/chip)
                vmem_limit_bytes=vmem_limit),
        )

    call_args = (ids, mask) + weight_args
    try:
        probs_padded = _build(True)(*call_args)
    except Exception:
        # TODO(synk): fallback to default double-buffered weights if Buffered(1)
        #             is rejected by this Pallas/Mosaic version.
        probs_padded = _build(False)(*call_args)

    return probs_padded[:, :out_dim]


def make_params(key, vocab=50, seq=8, hidden=32, ffn=64, out_dim=4,
                initializer_range=0.02):
    ks = jax.random.split(key, 12)
    p = {
        "tok_emb": jax.random.normal(ks[0], (vocab, hidden), jnp.float32) * initializer_range,
        "pos_emb": jax.random.normal(ks[1], (seq, hidden), jnp.float32) * initializer_range,
        "wq": jax.random.normal(ks[2], (hidden, hidden), jnp.float32) * initializer_range,
        "wk": jax.random.normal(ks[3], (hidden, hidden), jnp.float32) * initializer_range,
        "wv": jax.random.normal(ks[4], (hidden, hidden), jnp.float32) * initializer_range,
        "wo": jax.random.normal(ks[5], (hidden, hidden), jnp.float32) * initializer_range,
        "ln1_g": jnp.ones((1, hidden), jnp.float32),
        "ln1_b": jnp.zeros((1, hidden), jnp.float32),
        "wff1": jax.random.normal(ks[6], (hidden, ffn), jnp.float32) * initializer_range,
        "bff1": jnp.zeros((1, ffn), jnp.float32),
        "wff2": jax.random.normal(ks[7], (ffn, hidden), jnp.float32) * initializer_range,
        "bff2": jnp.zeros((1, hidden), jnp.float32),
        "ln2_g": jnp.ones((1, hidden), jnp.float32),
        "ln2_b": jnp.zeros((1, hidden), jnp.float32),
        # self.fc: _init_weights -> normal(0, initializer_range), bias zero.
        "wfc": jax.random.normal(ks[8], (hidden, out_dim), jnp.float32) * initializer_range,
        "bfc": jnp.zeros((1, out_dim), jnp.float32),
    }
    return p


if __name__ == "__main__":
    # Small demo shapes; B=32 with batch_tile=16 -> grid=(2,), tb*S=128 (MXU M dim),
    # tb multiple of 8 for dense output stores, B//tb=2 for v7x's two TensorCores.
    B, S, H, F, V, OUT = 32, 8, 32, 64, 50, 4

    key = jax.random.PRNGKey(0)
    k_param, k_ids = jax.random.split(key)
    params = make_params(k_param, vocab=V, seq=S, hidden=H, ffn=F, out_dim=OUT)

    input_ids = jax.random.randint(k_ids, (B, S), 0, V, dtype=jnp.int32)
    attention_mask = jnp.ones((B, S), jnp.float32).at[:, -2:].set(0.0)  # last 2 tokens padded

    probs = nc_custom_model_forward(input_ids, attention_mask, params, batch_tile=16)
    probs = jax.block_until_ready(probs)

    assert probs.shape == (B, OUT) and probs.dtype == jnp.float32
    assert bool(jnp.all(jnp.abs(jnp.sum(probs, axis=1) - 1.0) < 1e-4))
    print("KERNEL_OK")
</pallas_src>

<mosaic_0001>
module attributes {stable_mosaic.version = 11 : i64} {
  func.func @kernel(%arg0: i32, %arg1: memref<16x8xi32, #tpu.memory_space<vmem>>, %arg2: memref<16x8xf32, #tpu.memory_space<vmem>>, %arg3: memref<50x32xbf16, #tpu.memory_space<vmem>>, %arg4: memref<8x32xf32, #tpu.memory_space<vmem>>, %arg5: memref<32x32xbf16, #tpu.memory_space<vmem>>, %arg6: memref<32x32xbf16, #tpu.memory_space<vmem>>, %arg7: memref<32x32xbf16, #tpu.memory_space<vmem>>, %arg8: memref<32x32xbf16, #tpu.memory_space<vmem>>, %arg9: memref<1x32xf32, #tpu.memory_space<vmem>>, %arg10: memref<1x32xf32, #tpu.memory_space<vmem>>, %arg11: memref<32x64xbf16, #tpu.memory_space<vmem>>, %arg12: memref<1x64xf32, #tpu.memory_space<vmem>>, %arg13: memref<64x32xbf16, #tpu.memory_space<vmem>>, %arg14: memref<1x32xf32, #tpu.memory_space<vmem>>, %arg15: memref<1x32xf32, #tpu.memory_space<vmem>>, %arg16: memref<1x32xf32, #tpu.memory_space<vmem>>, %arg17: memref<32x128xbf16, #tpu.memory_space<vmem>>, %arg18: memref<1x128xf32, #tpu.memory_space<vmem>>, %arg19: memref<16x128xf32, #tpu.memory_space<vmem>>) attributes {dimension_semantics = [#tpu.dimension_semantics<parallel>], iteration_bounds = array<i64: 2>, scalar_prefetch = 0 : i64, scratch_operands = 0 : i64, tpu.core_type = #tpu.core_type<tc>, window_params = [{transform_indices = @transform_0, window_bounds = array<i64: 16, 8>}, {transform_indices = @transform_1, window_bounds = array<i64: 16, 8>}, {pipeline_mode = #tpu.pipeline_mode<synchronous>, transform_indices = @transform_2, window_bounds = array<i64: 50, 32>}, {pipeline_mode = #tpu.pipeline_mode<synchronous>, transform_indices = @transform_3, window_bounds = array<i64: 8, 32>}, {pipeline_mode = #tpu.pipeline_mode<synchronous>, transform_indices = @transform_4, window_bounds = array<i64: 32, 32>}, {pipeline_mode = #tpu.pipeline_mode<synchronous>, transform_indices = @transform_5, window_bounds = array<i64: 32, 32>}, {pipeline_mode = #tpu.pipeline_mode<synchronous>, transform_indices = @transform_6, window_bounds = array<i64: 32, 32>}, {pipeline_mode = #tpu.pipeline_mode<synchronous>, transform_indices = @transform_7, window_bounds = array<i64: 32, 32>}, {pipeline_mode = #tpu.pipeline_mode<synchronous>, transform_indices = @transform_8, window_bounds = array<i64: 1, 32>}, {pipeline_mode = #tpu.pipeline_mode<synchronous>, transform_indices = @transform_9, window_bounds = array<i64: 1, 32>}, {pipeline_mode = #tpu.pipeline_mode<synchronous>, transform_indices = @transform_10, window_bounds = array<i64: 32, 64>}, {pipeline_mode = #tpu.pipeline_mode<synchronous>, transform_indices = @transform_11, window_bounds = array<i64: 1, 64>}, {pipeline_mode = #tpu.pipeline_mode<synchronous>, transform_indices = @transform_12, window_bounds = array<i64: 64, 32>}, {pipeline_mode = #tpu.pipeline_mode<synchronous>, transform_indices = @transform_13, window_bounds = array<i64: 1, 32>}, {pipeline_mode = #tpu.pipeline_mode<synchronous>, transform_indices = @transform_14, window_bounds = array<i64: 1, 32>}, {pipeline_mode = #tpu.pipeline_mode<synchronous>, transform_indices = @transform_15, window_bounds = array<i64: 1, 32>}, {pipeline_mode = #tpu.pipeline_mode<synchronous>, transform_indices = @transform_16, window_bounds = array<i64: 32, 128>}, {pipeline_mode = #tpu.pipeline_mode<synchronous>, transform_indices = @transform_17, window_bounds = array<i64: 1, 128>}, {transform_indices = @transform_18, window_bounds = array<i64: 16, 128>}]} {
    %c0 = arith.constant 0 : index
    %c0_0 = arith.constant 0 : index
    %0 = vector.load %arg1[%c0, %c0_0] : memref<16x8xi32, #tpu.memory_space<vmem>>, vector<16x8xi32>
    %1 = tpu.iota {dimensions = array<i32: 2>} : vector<16x8x50xi32>
    %2 = vector.shape_cast %0 : vector<16x8xi32> to vector<16x8x1xi32>
    %3 = vector.broadcast %2 : vector<16x8x1xi32> to vector<16x8x50xi32>
    %4 = arith.cmpi eq, %3, %1 : vector<16x8x50xi32>
    %cst = arith.constant 1.000000e+00 : f32
    %cst_1 = arith.constant 0.000000e+00 : f32
    %5 = vector.broadcast %cst : f32 to vector<16x8x50xf32>
    %6 = vector.broadcast %cst_1 : f32 to vector<16x8x50xf32>
    %7 = arith.select %4, %5, %6 : vector<16x8x50xi1>, vector<16x8x50xf32>
    %8 = arith.truncf %7 : vector<16x8x50xf32> to vector<16x8x50xbf16>
    %9 = vector.shape_cast %8 : vector<16x8x50xbf16> to vector<128x50xbf16>
    %c0_2 = arith.constant 0 : index
    %c0_3 = arith.constant 0 : index
    %10 = vector.load %arg3[%c0_2, %c0_3] : memref<50x32xbf16, #tpu.memory_space<vmem>>, vector<50x32xbf16>
    %cst_4 = arith.constant dense<0.000000e+00> : vector<128x32xf32>
    %11 = tpu.matmul %9, %10, %cst_4 {dimension_numbers = #tpu.dot_dimension_numbers<[1], [0], [0], [1], [0, 0, 1, 1], [], []>} : vector<128x50xbf16>, vector<50x32xbf16>, vector<128x32xf32> -> vector<128x32xf32>
    %c0_5 = arith.constant 0 : index
    %c0_6 = arith.constant 0 : index
    %12 = vector.load %arg4[%c0_5, %c0_6] : memref<8x32xf32, #tpu.memory_space<vmem>>, vector<8x32xf32>
    %13 = vector.shape_cast %12 : vector<8x32xf32> to vector<1x8x32xf32>
    %14 = vector.shape_cast %13 : vector<1x8x32xf32> to vector<1x8x32xf32>
    %15 = vector.broadcast %14 : vector<1x8x32xf32> to vector<16x8x32xf32>
    %16 = vector.shape_cast %15 : vector<16x8x32xf32> to vector<128x32xf32>
    %17 = arith.addf %11, %16 : vector<128x32xf32>
    %18 = arith.truncf %17 : vector<128x32xf32> to vector<128x32xbf16>
    %c0_7 = arith.constant 0 : index
    %c0_8 = arith.constant 0 : index
    %19 = vector.load %arg6[%c0_7, %c0_8] : memref<32x32xbf16, #tpu.memory_space<vmem>>, vector<32x32xbf16>
    %cst_9 = arith.constant dense<0.000000e+00> : vector<128x32xf32>
    %20 = tpu.matmul %18, %19, %cst_9 {dimension_numbers = #tpu.dot_dimension_numbers<[1], [0], [0], [1], [0, 0, 1, 1], [], []>} : vector<128x32xbf16>, vector<32x32xbf16>, vector<128x32xf32> -> vector<128x32xf32>
    %21 = vector.shape_cast %20 : vector<128x32xf32> to vector<16x8x32xf32>
    %c0_10 = arith.constant 0 : index
    %c0_11 = arith.constant 0 : index
    %22 = vector.load %arg7[%c0_10, %c0_11] : memref<32x32xbf16, #tpu.memory_space<vmem>>, vector<32x32xbf16>
    %cst_12 = arith.constant dense<0.000000e+00> : vector<128x32xf32>
    %23 = tpu.matmul %18, %22, %cst_12 {dimension_numbers = #tpu.dot_dimension_numbers<[1], [0], [0], [1], [0, 0, 1, 1], [], []>} : vector<128x32xbf16>, vector<32x32xbf16>, vector<128x32xf32> -> vector<128x32xf32>
    %24 = vector.shape_cast %23 : vector<128x32xf32> to vector<16x8x32xf32>
    %25 = vector.shape_cast %17 : vector<128x32xf32> to vector<16x8x32xf32>
    %26 = vector.extract_strided_slice %25 {offsets = [0, 0, 0], sizes = [16, 1, 32], strides = [1, 1, 1]} : vector<16x8x32xf32> to vector<16x1x32xf32>
    %27 = vector.shape_cast %26 : vector<16x1x32xf32> to vector<16x32xf32>
    %28 = arith.truncf %27 : vector<16x32xf32> to vector<16x32xbf16>
    %c0_13 = arith.constant 0 : index
    %c0_14 = arith.constant 0 : index
    %29 = vector.load %arg5[%c0_13, %c0_14] : memref<32x32xbf16, #tpu.memory_space<vmem>>, vector<32x32xbf16>
    %cst_15 = arith.constant dense<0.000000e+00> : vector<16x32xf32>
    %30 = tpu.matmul %28, %29, %cst_15 {dimension_numbers = #tpu.dot_dimension_numbers<[1], [0], [0], [1], [0, 0, 1, 1], [], []>} : vector<16x32xbf16>, vector<32x32xbf16>, vector<16x32xf32> -> vector<16x32xf32>
    %31 = vector.shape_cast %30 : vector<16x32xf32> to vector<16x1x32xf32>
    %32 = vector.broadcast %31 : vector<16x1x32xf32> to vector<16x8x32xf32>
    %33 = arith.mulf %32, %21 : vector<16x8x32xf32>
    %cst_16 = arith.constant dense<0.000000e+00> : vector<16x8xf32>
    %34 = vector.multi_reduction <add>, %33, %cst_16 [2] : vector<16x8x32xf32> to vector<16x8xf32>
    %cst_17 = arith.constant 0.176776692 : f32
    %35 = vector.broadcast %cst_17 : f32 to vector<16x8xf32>
    %36 = arith.mulf %34, %35 : vector<16x8xf32>
    %c0_18 = arith.constant 0 : index
    %c0_19 = arith.constant 0 : index
    %37 = vector.load %arg2[%c0_18, %c0_19] : memref<16x8xf32, #tpu.memory_space<vmem>>, vector<16x8xf32>
    %cst_20 = arith.constant 1.000000e+00 : f32
    %38 = vector.broadcast %cst_20 : f32 to vector<16x8xf32>
    %39 = arith.subf %38, %37 : vector<16x8xf32>
    %cst_21 = arith.constant -1.000000e+09 : f32
    %40 = vector.broadcast %cst_21 : f32 to vector<16x8xf32>
    %41 = arith.mulf %39, %40 : vector<16x8xf32>
    %42 = arith.addf %36, %41 : vector<16x8xf32>
    %cst_22 = arith.constant dense<0xFF800000> : vector<16xf32>
    %43 = vector.multi_reduction <maximumf>, %42, %cst_22 [1] : vector<16x8xf32> to vector<16xf32>
    %44 = vector.shape_cast %43 : vector<16xf32> to vector<16x1xf32>
    %45 = vector.broadcast %44 : vector<16x1xf32> to vector<16x8xf32>
    %46 = arith.subf %42, %45 : vector<16x8xf32>
    %47 = math.exp %46 : vector<16x8xf32>
    %cst_23 = arith.constant dense<0.000000e+00> : vector<16xf32>
    %48 = vector.multi_reduction <add>, %47, %cst_23 [1] : vector<16x8xf32> to vector<16xf32>
    %49 = vector.shape_cast %48 : vector<16xf32> to vector<16x1xf32>
    %50 = tpu.reciprocal %49 {approx = true} : vector<16x1xf32> -> vector<16x1xf32>
    %51 = vector.broadcast %50 : vector<16x1xf32> to vector<16x8xf32>
    %52 = arith.mulf %47, %51 : vector<16x8xf32>
    %53 = vector.shape_cast %52 : vector<16x8xf32> to vector<16x8x1xf32>
    %54 = vector.broadcast %53 : vector<16x8x1xf32> to vector<16x8x32xf32>
    %55 = arith.mulf %54, %24 : vector<16x8x32xf32>
    %cst_24 = arith.constant dense<0.000000e+00> : vector<16x32xf32>
    %56 = vector.multi_reduction <add>, %55, %cst_24 [1] : vector<16x8x32xf32> to vector<16x32xf32>
    %57 = arith.truncf %56 : vector<16x32xf32> to vector<16x32xbf16>
    %c0_25 = arith.constant 0 : index
    %c0_26 = arith.constant 0 : index
    %58 = vector.load %arg8[%c0_25, %c0_26] : memref<32x32xbf16, #tpu.memory_space<vmem>>, vector<32x32xbf16>
    %cst_27 = arith.constant dense<0.000000e+00> : vector<16x32xf32>
    %59 = tpu.matmul %57, %58, %cst_27 {dimension_numbers = #tpu.dot_dimension_numbers<[1], [0], [0], [1], [0, 0, 1, 1], [], []>} : vector<16x32xbf16>, vector<32x32xbf16>, vector<16x32xf32> -> vector<16x32xf32>
    %60 = arith.addf %27, %59 : vector<16x32xf32>
    %c0_28 = arith.constant 0 : index
    %c0_29 = arith.constant 0 : index
    %61 = vector.load %arg9[%c0_28, %c0_29] : memref<1x32xf32, #tpu.memory_space<vmem>>, vector<1x32xf32>
    %c0_30 = arith.constant 0 : index
    %c0_31 = arith.constant 0 : index
    %62 = vector.load %arg10[%c0_30, %c0_31] : memref<1x32xf32, #tpu.memory_space<vmem>>, vector<1x32xf32>
    %cst_32 = arith.constant dense<0.000000e+00> : vector<16xf32>
    %63 = vector.multi_reduction <add>, %60, %cst_32 [1] : vector<16x32xf32> to vector<16xf32>
    %64 = vector.shape_cast %63 : vector<16xf32> to vector<16x1xf32>
    %cst_33 = arith.constant 3.200000e+01 : f32
    %65 = vector.broadcast %cst_33 : f32 to vector<16x1xf32>
    %66 = arith.divf %64, %65 : vector<16x1xf32>
    %67 = vector.broadcast %66 : vector<16x1xf32> to vector<16x32xf32>
    %68 = arith.subf %60, %67 : vector<16x32xf32>
    %69 = arith.mulf %68, %68 : vector<16x32xf32>
    %cst_34 = arith.constant dense<0.000000e+00> : vector<16xf32>
    %70 = vector.multi_reduction <add>, %69, %cst_34 [1] : vector<16x32xf32> to vector<16xf32>
    %71 = vector.shape_cast %70 : vector<16xf32> to vector<16x1xf32>
    %cst_35 = arith.constant 3.200000e+01 : f32
    %72 = vector.broadcast %cst_35 : f32 to vector<16x1xf32>
    %73 = arith.divf %71, %72 : vector<16x1xf32>
    %cst_36 = arith.constant 9.99999996E-13 : f32
    %74 = vector.broadcast %cst_36 : f32 to vector<16x1xf32>
    %75 = arith.addf %73, %74 : vector<16x1xf32>
    %76 = math.rsqrt %75 : vector<16x1xf32>
    %77 = vector.broadcast %76 : vector<16x1xf32> to vector<16x32xf32>
    %78 = arith.mulf %68, %77 : vector<16x32xf32>
    %79 = vector.broadcast %61 : vector<1x32xf32> to vector<16x32xf32>
    %80 = arith.mulf %78, %79 : vector<16x32xf32>
    %81 = vector.broadcast %62 : vector<1x32xf32> to vector<16x32xf32>
    %82 = arith.addf %80, %81 : vector<16x32xf32>
    %83 = arith.truncf %82 : vector<16x32xf32> to vector<16x32xbf16>
    %c0_37 = arith.constant 0 : index
    %c0_38 = arith.constant 0 : index
    %84 = vector.load %arg11[%c0_37, %c0_38] : memref<32x64xbf16, #tpu.memory_space<vmem>>, vector<32x64xbf16>
    %cst_39 = arith.constant dense<0.000000e+00> : vector<16x64xf32>
    %85 = tpu.matmul %83, %84, %cst_39 {dimension_numbers = #tpu.dot_dimension_numbers<[1], [0], [0], [1], [0, 0, 1, 1], [], []>} : vector<16x32xbf16>, vector<32x64xbf16>, vector<16x64xf32> -> vector<16x64xf32>
    %c0_40 = arith.constant 0 : index
    %c0_41 = arith.constant 0 : index
    %86 = vector.load %arg12[%c0_40, %c0_41] : memref<1x64xf32, #tpu.memory_space<vmem>>, vector<1x64xf32>
    %87 = vector.broadcast %86 : vector<1x64xf32> to vector<16x64xf32>
    %88 = arith.addf %85, %87 : vector<16x64xf32>
    %89 = arith.mulf %88, %88 : vector<16x64xf32>
    %90 = arith.mulf %88, %89 : vector<16x64xf32>
    %cst_42 = arith.constant 4.471500e-02 : f32
    %91 = vector.broadcast %cst_42 : f32 to vector<16x64xf32>
    %92 = arith.mulf %91, %90 : vector<16x64xf32>
    %93 = arith.addf %88, %92 : vector<16x64xf32>
    %cst_43 = arith.constant 0.797884583 : f32
    %94 = vector.broadcast %cst_43 : f32 to vector<16x64xf32>
    %95 = arith.mulf %94, %93 : vector<16x64xf32>
    %96 = math.tanh %95 : vector<16x64xf32>
    %cst_44 = arith.constant 1.000000e+00 : f32
    %97 = vector.broadcast %cst_44 : f32 to vector<16x64xf32>
    %98 = arith.addf %97, %96 : vector<16x64xf32>
    %cst_45 = arith.constant 5.000000e-01 : f32
    %99 = vector.broadcast %cst_45 : f32 to vector<16x64xf32>
    %100 = arith.mulf %99, %98 : vector<16x64xf32>
    %101 = arith.mulf %88, %100 : vector<16x64xf32>
    %102 = arith.truncf %101 : vector<16x64xf32> to vector<16x64xbf16>
    %c0_46 = arith.constant 0 : index
    %c0_47 = arith.constant 0 : index
    %103 = vector.load %arg13[%c0_46, %c0_47] : memref<64x32xbf16, #tpu.memory_space<vmem>>, vector<64x32xbf16>
    %cst_48 = arith.constant dense<0.000000e+00> : vector<16x32xf32>
    %104 = tpu.matmul %102, %103, %cst_48 {dimension_numbers = #tpu.dot_dimension_numbers<[1], [0], [0], [1], [0, 0, 1, 1], [], []>} : vector<16x64xbf16>, vector<64x32xbf16>, vector<16x32xf32> -> vector<16x32xf32>
    %c0_49 = arith.constant 0 : index
    %c0_50 = arith.constant 0 : index
    %105 = vector.load %arg14[%c0_49, %c0_50] : memref<1x32xf32, #tpu.memory_space<vmem>>, vector<1x32xf32>
    %106 = vector.broadcast %105 : vector<1x32xf32> to vector<16x32xf32>
    %107 = arith.addf %104, %106 : vector<16x32xf32>
    %108 = arith.addf %82, %107 : vector<16x32xf32>
    %c0_51 = arith.constant 0 : index
    %c0_52 = arith.constant 0 : index
    %109 = vector.load %arg15[%c0_51, %c0_52] : memref<1x32xf32, #tpu.memory_space<vmem>>, vector<1x32xf32>
    %c0_53 = arith.constant 0 : index
    %c0_54 = arith.constant 0 : index
    %110 = vector.load %arg16[%c0_53, %c0_54] : memref<1x32xf32, #tpu.memory_space<vmem>>, vector<1x32xf32>
    %cst_55 = arith.constant dense<0.000000e+00> : vector<16xf32>
    %111 = vector.multi_reduction <add>, %108, %cst_55 [1] : vector<16x32xf32> to vector<16xf32>
    %112 = vector.shape_cast %111 : vector<16xf32> to vector<16x1xf32>
    %cst_56 = arith.constant 3.200000e+01 : f32
    %113 = vector.broadcast %cst_56 : f32 to vector<16x1xf32>
    %114 = arith.divf %112, %113 : vector<16x1xf32>
    %115 = vector.broadcast %114 : vector<16x1xf32> to vector<16x32xf32>
    %116 = arith.subf %108, %115 : vector<16x32xf32>
    %117 = arith.mulf %116, %116 : vector<16x32xf32>
    %cst_57 = arith.constant dense<0.000000e+00> : vector<16xf32>
    %118 = vector.multi_reduction <add>, %117, %cst_57 [1] : vector<16x32xf32> to vector<16xf32>
    %119 = vector.shape_cast %118 : vector<16xf32> to vector<16x1xf32>
    %cst_58 = arith.constant 3.200000e+01 : f32
    %120 = vector.broadcast %cst_58 : f32 to vector<16x1xf32>
    %121 = arith.divf %119, %120 : vector<16x1xf32>
    %cst_59 = arith.constant 9.99999996E-13 : f32
    %122 = vector.broadcast %cst_59 : f32 to vector<16x1xf32>
    %123 = arith.addf %121, %122 : vector<16x1xf32>
    %124 = math.rsqrt %123 : vector<16x1xf32>
    %125 = vector.broadcast %124 : vector<16x1xf32> to vector<16x32xf32>
    %126 = arith.mulf %116, %125 : vector<16x32xf32>
    %127 = vector.broadcast %109 : vector<1x32xf32> to vector<16x32xf32>
    %128 = arith.mulf %126, %127 : vector<16x32xf32>
    %129 = vector.broadcast %110 : vector<1x32xf32> to vector<16x32xf32>
    %130 = arith.addf %128, %129 : vector<16x32xf32>
    %131 = arith.truncf %130 : vector<16x32xf32> to vector<16x32xbf16>
    %c0_60 = arith.constant 0 : index
    %c0_61 = arith.constant 0 : index
    %132 = vector.load %arg17[%c0_60, %c0_61] : memref<32x128xbf16, #tpu.memory_space<vmem>>, vector<32x128xbf16>
    %cst_62 = arith.constant dense<0.000000e+00> : vector<16x128xf32>
    %133 = tpu.matmul %131, %132, %cst_62 {dimension_numbers = #tpu.dot_dimension_numbers<[1], [0], [0], [1], [0, 0, 1, 1], [], []>} : vector<16x32xbf16>, vector<32x128xbf16>, vector<16x128xf32> -> vector<16x128xf32>
    %c0_63 = arith.constant 0 : index
    %c0_64 = arith.constant 0 : index
    %134 = vector.load %arg18[%c0_63, %c0_64] : memref<1x128xf32, #tpu.memory_space<vmem>>, vector<1x128xf32>
    %135 = vector.broadcast %134 : vector<1x128xf32> to vector<16x128xf32>
    %136 = arith.addf %133, %135 : vector<16x128xf32>
    %cst_65 = arith.constant dense<0xFF800000> : vector<16xf32>
    %137 = vector.multi_reduction <maximumf>, %136, %cst_65 [1] : vector<16x128xf32> to vector<16xf32>
    %138 = vector.shape_cast %137 : vector<16xf32> to vector<16x1xf32>
    %139 = vector.broadcast %138 : vector<16x1xf32> to vector<16x128xf32>
    %140 = arith.subf %136, %139 : vector<16x128xf32>
    %141 = math.exp %140 : vector<16x128xf32>
    %cst_66 = arith.constant dense<0.000000e+00> : vector<16xf32>
    %142 = vector.multi_reduction <add>, %141, %cst_66 [1] : vector<16x128xf32> to vector<16xf32>
    %143 = vector.shape_cast %142 : vector<16xf32> to vector<16x1xf32>
    %144 = vector.broadcast %143 : vector<16x1xf32> to vector<16x128xf32>
    %145 = arith.divf %141, %144 : vector<16x128xf32>
    %c0_67 = arith.constant 0 : index
    %c0_68 = arith.constant 0 : index
    %146 = vector.load %arg19[%c0_67, %c0_68] : memref<16x128xf32, #tpu.memory_space<vmem>>, vector<16x128xf32>
    tpu.vector_store %arg19[%c0_67, %c0_68], %145 {strides = array<i32>} : memref<16x128xf32, #tpu.memory_space<vmem>>, vector<16x128xf32>,
    return
  }
  func.func @transform_0(%arg0: i32) -> (i32, i32) {
    %c0_i32 = arith.constant 0 : i32
    %c0_i32_0 = arith.constant 0 : i32
    return %arg0, %c0_i32 : i32, i32
  }
  func.func @transform_1(%arg0: i32) -> (i32, i32) {
    %c0_i32 = arith.constant 0 : i32
    %c0_i32_0 = arith.constant 0 : i32
    return %arg0, %c0_i32 : i32, i32
  }
  func.func @transform_2(%arg0: i32) -> (i32, i32) {
    %c0_i32 = arith.constant 0 : i32
    %c0_i32_0 = arith.constant 0 : i32
    %c0_i32_1 = arith.constant 0 : i32
    return %c0_i32, %c0_i32_0 : i32, i32
  }
  func.func @transform_3(%arg0: i32) -> (i32, i32) {
    %c0_i32 = arith.constant 0 : i32
    %c0_i32_0 = arith.constant 0 : i32
    %c0_i32_1 = arith.constant 0 : i32
    return %c0_i32, %c0_i32_0 : i32, i32
  }
  func.func @transform_4(%arg0: i32) -> (i32, i32) {
    %c0_i32 = arith.constant 0 : i32
    %c0_i32_0 = arith.constant 0 : i32
    %c0_i32_1 = arith.constant 0 : i32
    return %c0_i32, %c0_i32_0 : i32, i32
  }
  func.func @transform_5(%arg0: i32) -> (i32, i32) {
    %c0_i32 = arith.constant 0 : i32
    %c0_i32_0 = arith.constant 0 : i32
    %c0_i32_1 = arith.constant 0 : i32
    return %c0_i32, %c0_i32_0 : i32, i32
  }
  func.func @transform_6(%arg0: i32) -> (i32, i32) {
    %c0_i32 = arith.constant 0 : i32
    %c0_i32_0 = arith.constant 0 : i32
    %c0_i32_1 = arith.constant 0 : i32
    return %c0_i32, %c0_i32_0 : i32, i32
  }
  func.func @transform_7(%arg0: i32) -> (i32, i32) {
    %c0_i32 = arith.constant 0 : i32
    %c0_i32_0 = arith.constant 0 : i32
    %c0_i32_1 = arith.constant 0 : i32
    return %c0_i32, %c0_i32_0 : i32, i32
  }
  func.func @transform_8(%arg0: i32) -> (i32, i32) {
    %c0_i32 = arith.constant 0 : i32
    %c0_i32_0 = arith.constant 0 : i32
    %c0_i32_1 = arith.constant 0 : i32
    return %c0_i32, %c0_i32_0 : i32, i32
  }
  func.func @transform_9(%arg0: i32) -> (i32, i32) {
    %c0_i32 = arith.constant 0 : i32
    %c0_i32_0 = arith.constant 0 : i32
    %c0_i32_1 = arith.constant 0 : i32
    return %c0_i32, %c0_i32_0 : i32, i32
  }
  func.func @transform_10(%arg0: i32) -> (i32, i32) {
    %c0_i32 = arith.constant 0 : i32
    %c0_i32_0 = arith.constant 0 : i32
    %c0_i32_1 = arith.constant 0 : i32
    return %c0_i32, %c0_i32_0 : i32, i32
  }
  func.func @transform_11(%arg0: i32) -> (i32, i32) {
    %c0_i32 = arith.constant 0 : i32
    %c0_i32_0 = arith.constant 0 : i32
    %c0_i32_1 = arith.constant 0 : i32
    return %c0_i32, %c0_i32_0 : i32, i32
  }
  func.func @transform_12(%arg0: i32) -> (i32, i32) {
    %c0_i32 = arith.constant 0 : i32
    %c0_i32_0 = arith.constant 0 : i32
    %c0_i32_1 = arith.constant 0 : i32
    return %c0_i32, %c0_i32_0 : i32, i32
  }
  func.func @transform_13(%arg0: i32) -> (i32, i32) {
    %c0_i32 = arith.constant 0 : i32
    %c0_i32_0 = arith.constant 0 : i32
    %c0_i32_1 = arith.constant 0 : i32
    return %c0_i32, %c0_i32_0 : i32, i32
  }
  func.func @transform_14(%arg0: i32) -> (i32, i32) {
    %c0_i32 = arith.constant 0 : i32
    %c0_i32_0 = arith.constant 0 : i32
    %c0_i32_1 = arith.constant 0 : i32
    return %c0_i32, %c0_i32_0 : i32, i32
  }
  func.func @transform_15(%arg0: i32) -> (i32, i32) {
    %c0_i32 = arith.constant 0 : i32
    %c0_i32_0 = arith.constant 0 : i32
    %c0_i32_1 = arith.constant 0 : i32
    return %c0_i32, %c0_i32_0 : i32, i32
  }
  func.func @transform_16(%arg0: i32) -> (i32, i32) {
    %c0_i32 = arith.constant 0 : i32
    %c0_i32_0 = arith.constant 0 : i32
    %c0_i32_1 = arith.constant 0 : i32
    return %c0_i32, %c0_i32_0 : i32, i32
  }
  func.func @transform_17(%arg0: i32) -> (i32, i32) {
    %c0_i32 = arith.constant 0 : i32
    %c0_i32_0 = arith.constant 0 : i32
    %c0_i32_1 = arith.constant 0 : i32
    return %c0_i32, %c0_i32_0 : i32, i32
  }
  func.func @transform_18(%arg0: i32) -> (i32, i32) {
    %c0_i32 = arith.constant 0 : i32
    %c0_i32_0 = arith.constant 0 : i32
    return %arg0, %c0_i32 : i32, i32
  }
}

module attributes {stable_mosaic.version = 11 : i64} {
  func.func @kernel(%arg0: i32, %arg1: memref<16x8xi32, #tpu.memory_space<vmem>>, %arg2: memref<16x8xf32, #tpu.memory_space<vmem>>, %arg3: memref<50x32xbf16, #tpu.memory_space<vmem>>, %arg4: memref<8x32xf32, #tpu.memory_space<vmem>>, %arg5: memref<32x32xbf16, #tpu.memory_space<vmem>>, %arg6: memref<32x32xbf16, #tpu.memory_space<vmem>>, %arg7: memref<32x32xbf16, #tpu.memory_space<vmem>>, %arg8: memref<32x32xbf16, #tpu.memory_space<vmem>>, %arg9: memref<1x32xf32, #tpu.memory_space<vmem>>, %arg10: memref<1x32xf32, #tpu.memory_space<vmem>>, %arg11: memref<32x64xbf16, #tpu.memory_space<vmem>>, %arg12: memref<1x64xf32, #tpu.memory_space<vmem>>, %arg13: memref<64x32xbf16, #tpu.memory_space<vmem>>, %arg14: memref<1x32xf32, #tpu.memory_space<vmem>>, %arg15: memref<1x32xf32, #tpu.memory_space<vmem>>, %arg16: memref<1x32xf32, #tpu.memory_space<vmem>>, %arg17: memref<32x128xbf16, #tpu.memory_space<vmem>>, %arg18: memref<1x128xf32, #tpu.memory_space<vmem>>, %arg19: memref<16x128xf32, #tpu.memory_space<vmem>>) attributes {dimension_semantics = [#tpu.dimension_semantics<parallel>], iteration_bounds = array<i64: 2>, scalar_prefetch = 0 : i64, scratch_operands = 0 : i64, tpu.core_type = #tpu.core_type<tc>, window_params = [{transform_indices = @transform_0, window_bounds = array<i64: 16, 8>}, {transform_indices = @transform_1, window_bounds = array<i64: 16, 8>}, {pipeline_mode = #tpu.pipeline_mode<synchronous>, transform_indices = @transform_2, window_bounds = array<i64: 50, 32>}, {pipeline_mode = #tpu.pipeline_mode<synchronous>, transform_indices = @transform_3, window_bounds = array<i64: 8, 32>}, {pipeline_mode = #tpu.pipeline_mode<synchronous>, transform_indices = @transform_4, window_bounds = array<i64: 32, 32>}, {pipeline_mode = #tpu.pipeline_mode<synchronous>, transform_indices = @transform_5, window_bounds = array<i64: 32, 32>}, {pipeline_mode = #tpu.pipeline_mode<synchronous>, transform_indices = @transform_6, window_bounds = array<i64: 32, 32>}, {pipeline_mode = #tpu.pipeline_mode<synchronous>, transform_indices = @transform_7, window_bounds = array<i64: 32, 32>}, {pipeline_mode = #tpu.pipeline_mode<synchronous>, transform_indices = @transform_8, window_bounds = array<i64: 1, 32>}, {pipeline_mode = #tpu.pipeline_mode<synchronous>, transform_indices = @transform_9, window_bounds = array<i64: 1, 32>}, {pipeline_mode = #tpu.pipeline_mode<synchronous>, transform_indices = @transform_10, window_bounds = array<i64: 32, 64>}, {pipeline_mode = #tpu.pipeline_mode<synchronous>, transform_indices = @transform_11, window_bounds = array<i64: 1, 64>}, {pipeline_mode = #tpu.pipeline_mode<synchronous>, transform_indices = @transform_12, window_bounds = array<i64: 64, 32>}, {pipeline_mode = #tpu.pipeline_mode<synchronous>, transform_indices = @transform_13, window_bounds = array<i64: 1, 32>}, {pipeline_mode = #tpu.pipeline_mode<synchronous>, transform_indices = @transform_14, window_bounds = array<i64: 1, 32>}, {pipeline_mode = #tpu.pipeline_mode<synchronous>, transform_indices = @transform_15, window_bounds = array<i64: 1, 32>}, {pipeline_mode = #tpu.pipeline_mode<synchronous>, transform_indices = @transform_16, window_bounds = array<i64: 32, 128>}, {pipeline_mode = #tpu.pipeline_mode<synchronous>, transform_indices = @transform_17, window_bounds = array<i64: 1, 128>}, {transform_indices = @transform_18, window_bounds = array<i64: 16, 128>}]} {
    %c0 = arith.constant 0 : index
    %c0_0 = arith.constant 0 : index
    %0 = vector.load %arg1[%c0, %c0_0] : memref<16x8xi32, #tpu.memory_space<vmem>>, vector<16x8xi32>
    %1 = tpu.iota {dimensions = array<i32: 2>} : vector<16x8x50xi32>
    %2 = vector.shape_cast %0 : vector<16x8xi32> to vector<16x8x1xi32>
    %3 = vector.broadcast %2 : vector<16x8x1xi32> to vector<16x8x50xi32>
    %4 = arith.cmpi eq, %3, %1 : vector<16x8x50xi32>
    %cst = arith.constant 1.000000e+00 : f32
    %cst_1 = arith.constant 0.000000e+00 : f32
    %5 = vector.broadcast %cst : f32 to vector<16x8x50xf32>
    %6 = vector.broadcast %cst_1 : f32 to vector<16x8x50xf32>
    %7 = arith.select %4, %5, %6 : vector<16x8x50xi1>, vector<16x8x50xf32>
    %8 = arith.truncf %7 : vector<16x8x50xf32> to vector<16x8x50xbf16>
    %9 = vector.shape_cast %8 : vector<16x8x50xbf16> to vector<128x50xbf16>
    %c0_2 = arith.constant 0 : index
    %c0_3 = arith.constant 0 : index
    %10 = vector.load %arg3[%c0_2, %c0_3] : memref<50x32xbf16, #tpu.memory_space<vmem>>, vector<50x32xbf16>
    %cst_4 = arith.constant dense<0.000000e+00> : vector<128x32xf32>
    %11 = tpu.matmul %9, %10, %cst_4 {dimension_numbers = #tpu.dot_dimension_numbers<[1], [0], [0], [1], [0, 0, 1, 1], [], []>} : vector<128x50xbf16>, vector<50x32xbf16>, vector<128x32xf32> -> vector<128x32xf32>
    %c0_5 = arith.constant 0 : index
    %c0_6 = arith.constant 0 : index
    %12 = vector.load %arg4[%c0_5, %c0_6] : memref<8x32xf32, #tpu.memory_space<vmem>>, vector<8x32xf32>
    %13 = vector.shape_cast %12 : vector<8x32xf32> to vector<1x8x32xf32>
    %14 = vector.shape_cast %13 : vector<1x8x32xf32> to vector<1x8x32xf32>
    %15 = vector.broadcast %14 : vector<1x8x32xf32> to vector<16x8x32xf32>
    %16 = vector.shape_cast %15 : vector<16x8x32xf32> to vector<128x32xf32>
    %17 = arith.addf %11, %16 : vector<128x32xf32>
    %18 = arith.truncf %17 : vector<128x32xf32> to vector<128x32xbf16>
    %c0_7 = arith.constant 0 : index
    %c0_8 = arith.constant 0 : index
    %19 = vector.load %arg6[%c0_7, %c0_8] : memref<32x32xbf16, #tpu.memory_space<vmem>>, vector<32x32xbf16>
    %cst_9 = arith.constant dense<0.000000e+00> : vector<128x32xf32>
    %20 = tpu.matmul %18, %19, %cst_9 {dimension_numbers = #tpu.dot_dimension_numbers<[1], [0], [0], [1], [0, 0, 1, 1], [], []>} : vector<128x32xbf16>, vector<32x32xbf16>, vector<128x32xf32> -> vector<128x32xf32>
    %21 = vector.shape_cast %20 : vector<128x32xf32> to vector<16x8x32xf32>
    %c0_10 = arith.constant 0 : index
    %c0_11 = arith.constant 0 : index
    %22 = vector.load %arg7[%c0_10, %c0_11] : memref<32x32xbf16, #tpu.memory_space<vmem>>, vector<32x32xbf16>
    %cst_12 = arith.constant dense<0.000000e+00> : vector<128x32xf32>
    %23 = tpu.matmul %18, %22, %cst_12 {dimension_numbers = #tpu.dot_dimension_numbers<[1], [0], [0], [1], [0, 0, 1, 1], [], []>} : vector<128x32xbf16>, vector<32x32xbf16>, vector<128x32xf32> -> vector<128x32xf32>
    %24 = vector.shape_cast %23 : vector<128x32xf32> to vector<16x8x32xf32>
    %25 = vector.shape_cast %17 : vector<128x32xf32> to vector<16x8x32xf32>
    %26 = vector.extract_strided_slice %25 {offsets = [0, 0, 0], sizes = [16, 1, 32], strides = [1, 1, 1]} : vector<16x8x32xf32> to vector<16x1x32xf32>
    %27 = vector.shape_cast %26 : vector<16x1x32xf32> to vector<16x32xf32>
    %28 = arith.truncf %27 : vector<16x32xf32> to vector<16x32xbf16>
    %c0_13 = arith.constant 0 : index
    %c0_14 = arith.constant 0 : index
    %29 = vector.load %arg5[%c0_13, %c0_14] : memref<32x32xbf16, #tpu.memory_space<vmem>>, vector<32x32xbf16>
    %cst_15 = arith.constant dense<0.000000e+00> : vector<16x32xf32>
    %30 = tpu.matmul %28, %29, %cst_15 {dimension_numbers = #tpu.dot_dimension_numbers<[1], [0], [0], [1], [0, 0, 1, 1], [], []>} : vector<16x32xbf16>, vector<32x32xbf16>, vector<16x32xf32> -> vector<16x32xf32>
    %31 = vector.shape_cast %30 : vector<16x32xf32> to vector<16x1x32xf32>
    %32 = vector.broadcast %31 : vector<16x1x32xf32> to vector<16x8x32xf32>
    %33 = arith.mulf %32, %21 : vector<16x8x32xf32>
    %cst_16 = arith.constant dense<0.000000e+00> : vector<16x8xf32>
    %34 = vector.multi_reduction <add>, %33, %cst_16 [2] : vector<16x8x32xf32> to vector<16x8xf32>
    %cst_17 = arith.constant 0.176776692 : f32
    %35 = vector.broadcast %cst_17 : f32 to vector<16x8xf32>
    %36 = arith.mulf %34, %35 : vector<16x8xf32>
    %c0_18 = arith.constant 0 : index
    %c0_19 = arith.constant 0 : index
    %37 = vector.load %arg2[%c0_18, %c0_19] : memref<16x8xf32, #tpu.memory_space<vmem>>, vector<16x8xf32>
    %cst_20 = arith.constant 1.000000e+00 : f32
    %38 = vector.broadcast %cst_20 : f32 to vector<16x8xf32>
    %39 = arith.subf %38, %37 : vector<16x8xf32>
    %cst_21 = arith.constant -1.000000e+09 : f32
    %40 = vector.broadcast %cst_21 : f32 to vector<16x8xf32>
    %41 = arith.mulf %39, %40 : vector<16x8xf32>
    %42 = arith.addf %36, %41 : vector<16x8xf32>
    %cst_22 = arith.constant dense<0xFF800000> : vector<16xf32>
    %43 = vector.multi_reduction <maximumf>, %42, %cst_22 [1] : vector<16x8xf32> to vector<16xf32>
    %44 = vector.shape_cast %43 : vector<16xf32> to vector<16x1xf32>
    %45 = vector.broadcast %44 : vector<16x1xf32> to vector<16x8xf32>
    %46 = arith.subf %42, %45 : vector<16x8xf32>
    %47 = math.exp %46 : vector<16x8xf32>
    %cst_23 = arith.constant dense<0.000000e+00> : vector<16xf32>
    %48 = vector.multi_reduction <add>, %47, %cst_23 [1] : vector<16x8xf32> to vector<16xf32>
    %49 = vector.shape_cast %48 : vector<16xf32> to vector<16x1xf32>
    %50 = tpu.reciprocal %49 {approx = true} : vector<16x1xf32> -> vector<16x1xf32>
    %51 = vector.broadcast %50 : vector<16x1xf32> to vector<16x8xf32>
    %52 = arith.mulf %47, %51 : vector<16x8xf32>
    %53 = vector.shape_cast %52 : vector<16x8xf32> to vector<16x8x1xf32>
    %54 = vector.broadcast %53 : vector<16x8x1xf32> to vector<16x8x32xf32>
    %55 = arith.mulf %54, %24 : vector<16x8x32xf32>
    %cst_24 = arith.constant dense<0.000000e+00> : vector<16x32xf32>
    %56 = vector.multi_reduction <add>, %55, %cst_24 [1] : vector<16x8x32xf32> to vector<16x32xf32>
    %57 = arith.truncf %56 : vector<16x32xf32> to vector<16x32xbf16>
    %c0_25 = arith.constant 0 : index
    %c0_26 = arith.constant 0 : index
    %58 = vector.load %arg8[%c0_25, %c0_26] : memref<32x32xbf16, #tpu.memory_space<vmem>>, vector<32x32xbf16>
    %cst_27 = arith.constant dense<0.000000e+00> : vector<16x32xf32>
    %59 = tpu.matmul %57, %58, %cst_27 {dimension_numbers = #tpu.dot_dimension_numbers<[1], [0], [0], [1], [0, 0, 1, 1], [], []>} : vector<16x32xbf16>, vector<32x32xbf16>, vector<16x32xf32> -> vector<16x32xf32>
    %60 = arith.addf %27, %59 : vector<16x32xf32>
    %c0_28 = arith.constant 0 : index
    %c0_29 = arith.constant 0 : index
    %61 = vector.load %arg9[%c0_28, %c0_29] : memref<1x32xf32, #tpu.memory_space<vmem>>, vector<1x32xf32>
    %c0_30 = arith.constant 0 : index
    %c0_31 = arith.constant 0 : index
    %62 = vector.load %arg10[%c0_30, %c0_31] : memref<1x32xf32, #tpu.memory_space<vmem>>, vector<1x32xf32>
    %cst_32 = arith.constant dense<0.000000e+00> : vector<16xf32>
    %63 = vector.multi_reduction <add>, %60, %cst_32 [1] : vector<16x32xf32> to vector<16xf32>
    %64 = vector.shape_cast %63 : vector<16xf32> to vector<16x1xf32>
    %cst_33 = arith.constant 3.200000e+01 : f32
    %65 = vector.broadcast %cst_33 : f32 to vector<16x1xf32>
    %66 = arith.divf %64, %65 : vector<16x1xf32>
    %67 = vector.broadcast %66 : vector<16x1xf32> to vector<16x32xf32>
    %68 = arith.subf %60, %67 : vector<16x32xf32>
    %69 = arith.mulf %68, %68 : vector<16x32xf32>
    %cst_34 = arith.constant dense<0.000000e+00> : vector<16xf32>
    %70 = vector.multi_reduction <add>, %69, %cst_34 [1] : vector<16x32xf32> to vector<16xf32>
    %71 = vector.shape_cast %70 : vector<16xf32> to vector<16x1xf32>
    %cst_35 = arith.constant 3.200000e+01 : f32
    %72 = vector.broadcast %cst_35 : f32 to vector<16x1xf32>
    %73 = arith.divf %71, %72 : vector<16x1xf32>
    %cst_36 = arith.constant 9.99999996E-13 : f32
    %74 = vector.broadcast %cst_36 : f32 to vector<16x1xf32>
    %75 = arith.addf %73, %74 : vector<16x1xf32>
    %76 = math.rsqrt %75 : vector<16x1xf32>
    %77 = vector.broadcast %76 : vector<16x1xf32> to vector<16x32xf32>
    %78 = arith.mulf %68, %77 : vector<16x32xf32>
    %79 = vector.broadcast %61 : vector<1x32xf32> to vector<16x32xf32>
    %80 = arith.mulf %78, %79 : vector<16x32xf32>
    %81 = vector.broadcast %62 : vector<1x32xf32> to vector<16x32xf32>
    %82 = arith.addf %80, %81 : vector<16x32xf32>
    %83 = arith.truncf %82 : vector<16x32xf32> to vector<16x32xbf16>
    %c0_37 = arith.constant 0 : index
    %c0_38 = arith.constant 0 : index
    %84 = vector.load %arg11[%c0_37, %c0_38] : memref<32x64xbf16, #tpu.memory_space<vmem>>, vector<32x64xbf16>
    %cst_39 = arith.constant dense<0.000000e+00> : vector<16x64xf32>
    %85 = tpu.matmul %83, %84, %cst_39 {dimension_numbers = #tpu.dot_dimension_numbers<[1], [0], [0], [1], [0, 0, 1, 1], [], []>} : vector<16x32xbf16>, vector<32x64xbf16>, vector<16x64xf32> -> vector<16x64xf32>
    %c0_40 = arith.constant 0 : index
    %c0_41 = arith.constant 0 : index
    %86 = vector.load %arg12[%c0_40, %c0_41] : memref<1x64xf32, #tpu.memory_space<vmem>>, vector<1x64xf32>
    %87 = vector.broadcast %86 : vector<1x64xf32> to vector<16x64xf32>
    %88 = arith.addf %85, %87 : vector<16x64xf32>
    %89 = arith.mulf %88, %88 : vector<16x64xf32>
    %90 = arith.mulf %88, %89 : vector<16x64xf32>
    %cst_42 = arith.constant 4.471500e-02 : f32
    %91 = vector.broadcast %cst_42 : f32 to vector<16x64xf32>
    %92 = arith.mulf %91, %90 : vector<16x64xf32>
    %93 = arith.addf %88, %92 : vector<16x64xf32>
    %cst_43 = arith.constant 0.797884583 : f32
    %94 = vector.broadcast %cst_43 : f32 to vector<16x64xf32>
    %95 = arith.mulf %94, %93 : vector<16x64xf32>
    %96 = math.tanh %95 : vector<16x64xf32>
    %cst_44 = arith.constant 1.000000e+00 : f32
    %97 = vector.broadcast %cst_44 : f32 to vector<16x64xf32>
    %98 = arith.addf %97, %96 : vector<16x64xf32>
    %cst_45 = arith.constant 5.000000e-01 : f32
    %99 = vector.broadcast %cst_45 : f32 to vector<16x64xf32>
    %100 = arith.mulf %99, %98 : vector<16x64xf32>
    %101 = arith.mulf %88, %100 : vector<16x64xf32>
    %102 = arith.truncf %101 : vector<16x64xf32> to vector<16x64xbf16>
    %c0_46 = arith.constant 0 : index
    %c0_47 = arith.constant 0 : index
    %103 = vector.load %arg13[%c0_46, %c0_47] : memref<64x32xbf16, #tpu.memory_space<vmem>>, vector<64x32xbf16>
    %cst_48 = arith.constant dense<0.000000e+00> : vector<16x32xf32>
    %104 = tpu.matmul %102, %103, %cst_48 {dimension_numbers = #tpu.dot_dimension_numbers<[1], [0], [0], [1], [0, 0, 1, 1], [], []>} : vector<16x64xbf16>, vector<64x32xbf16>, vector<16x32xf32> -> vector<16x32xf32>
    %c0_49 = arith.constant 0 : index
    %c0_50 = arith.constant 0 : index
    %105 = vector.load %arg14[%c0_49, %c0_50] : memref<1x32xf32, #tpu.memory_space<vmem>>, vector<1x32xf32>
    %106 = vector.broadcast %105 : vector<1x32xf32> to vector<16x32xf32>
    %107 = arith.addf %104, %106 : vector<16x32xf32>
    %108 = arith.addf %82, %107 : vector<16x32xf32>
    %c0_51 = arith.constant 0 : index
    %c0_52 = arith.constant 0 : index
    %109 = vector.load %arg15[%c0_51, %c0_52] : memref<1x32xf32, #tpu.memory_space<vmem>>, vector<1x32xf32>
    %c0_53 = arith.constant 0 : index
    %c0_54 = arith.constant 0 : index
    %110 = vector.load %arg16[%c0_53, %c0_54] : memref<1x32xf32, #tpu.memory_space<vmem>>, vector<1x32xf32>
    %cst_55 = arith.constant dense<0.000000e+00> : vector<16xf32>
    %111 = vector.multi_reduction <add>, %108, %cst_55 [1] : vector<16x32xf32> to vector<16xf32>
    %112 = vector.shape_cast %111 : vector<16xf32> to vector<16x1xf32>
    %cst_56 = arith.constant 3.200000e+01 : f32
    %113 = vector.broadcast %cst_56 : f32 to vector<16x1xf32>
    %114 = arith.divf %112, %113 : vector<16x1xf32>
    %115 = vector.broadcast %114 : vector<16x1xf32> to vector<16x32xf32>
    %116 = arith.subf %108, %115 : vector<16x32xf32>
    %117 = arith.mulf %116, %116 : vector<16x32xf32>
    %cst_57 = arith.constant dense<0.000000e+00> : vector<16xf32>
    %118 = vector.multi_reduction <add>, %117, %cst_57 [1] : vector<16x32xf32> to vector<16xf32>
    %119 = vector.shape_cast %118 : vector<16xf32> to vector<16x1xf32>
    %cst_58 = arith.constant 3.200000e+01 : f32
    %120 = vector.broadcast %cst_58 : f32 to vector<16x1xf32>
    %121 = arith.divf %119, %120 : vector<16x1xf32>
    %cst_59 = arith.constant 9.99999996E-13 : f32
    %122 = vector.broadcast %cst_59 : f32 to vector<16x1xf32>
    %123 = arith.addf %121, %122 : vector<16x1xf32>
    %124 = math.rsqrt %123 : vector<16x1xf32>
    %125 = vector.broadcast %124 : vector<16x1xf32> to vector<16x32xf32>
    %126 = arith.mulf %116, %125 : vector<16x32xf32>
    %127 = vector.broadcast %109 : vector<1x32xf32> to vector<16x32xf32>
    %128 = arith.mulf %126, %127 : vector<16x32xf32>
    %129 = vector.broadcast %110 : vector<1x32xf32> to vector<16x32xf32>
    %130 = arith.addf %128, %129 : vector<16x32xf32>
    %131 = arith.truncf %130 : vector<16x32xf32> to vector<16x32xbf16>
    %c0_60 = arith.constant 0 : index
    %c0_61 = arith.constant 0 : index
    %132 = vector.load %arg17[%c0_60, %c0_61] : memref<32x128xbf16, #tpu.memory_space<vmem>>, vector<32x128xbf16>
    %cst_62 = arith.constant dense<0.000000e+00> : vector<16x128xf32>
    %133 = tpu.matmul %131, %132, %cst_62 {dimension_numbers = #tpu.dot_dimension_numbers<[1], [0], [0], [1], [0, 0, 1, 1], [], []>} : vector<16x32xbf16>, vector<32x128xbf16>, vector<16x128xf32> -> vector<16x128xf32>
    %c0_63 = arith.constant 0 : index
    %c0_64 = arith.constant 0 : index
    %134 = vector.load %arg18[%c0_63, %c0_64] : memref<1x128xf32, #tpu.memory_space<vmem>>, vector<1x128xf32>
    %135 = vector.broadcast %134 : vector<1x128xf32> to vector<16x128xf32>
    %136 = arith.addf %133, %135 : vector<16x128xf32>
    %cst_65 = arith.constant dense<0xFF800000> : vector<16xf32>
    %137 = vector.multi_reduction <maximumf>, %136, %cst_65 [1] : vector<16x128xf32> to vector<16xf32>
    %138 = vector.shape_cast %137 : vector<16xf32> to vector<16x1xf32>
    %139 = vector.broadcast %138 : vector<16x1xf32> to vector<16x128xf32>
    %140 = arith.subf %136, %139 : vector<16x128xf32>
    %141 = math.exp %140 : vector<16x128xf32>
    %cst_66 = arith.constant dense<0.000000e+00> : vector<16xf32>
    %142 = vector.multi_reduction <add>, %141, %cst_66 [1] : vector<16x128xf32> to vector<16xf32>
    %143 = vector.shape_cast %142 : vector<16xf32> to vector<16x1xf32>
    %144 = vector.broadcast %143 : vector<16x1xf32> to vector<16x128xf32>
    %145 = arith.divf %141, %144 : vector<16x128xf32>
    %c0_67 = arith.constant 0 : index
    %c0_68 = arith.constant 0 : index
    %146 = vector.load %arg19[%c0_67, %c0_68] : memref<16x128xf32, #tpu.memory_space<vmem>>, vector<16x128xf32>
    tpu.vector_store %arg19[%c0_67, %c0_68], %145 {strides = array<i32>} : memref<16x128xf32, #tpu.memory_space<vmem>>, vector<16x128xf32>,
    return
  }
  func.func @transform_0(%arg0: i32) -> (i32, i32) {
    %c0_i32 = arith.constant 0 : i32
    %c0_i32_0 = arith.constant 0 : i32
    return %arg0, %c0_i32 : i32, i32
  }
  func.func @transform_1(%arg0: i32) -> (i32, i32) {
    %c0_i32 = arith.constant 0 : i32
    %c0_i32_0 = arith.constant 0 : i32
    return %arg0, %c0_i32 : i32, i32
  }
  func.func @transform_2(%arg0: i32) -> (i32, i32) {
    %c0_i32 = arith.constant 0 : i32
    %c0_i32_0 = arith.constant 0 : i32
    %c0_i32_1 = arith.constant 0 : i32
    return %c0_i32, %c0_i32_0 : i32, i32
  }
  func.func @transform_3(%arg0: i32) -> (i32, i32) {
    %c0_i32 = arith.constant 0 : i32
    %c0_i32_0 = arith.constant 0 : i32
    %c0_i32_1 = arith.constant 0 : i32
    return %c0_i32, %c0_i32_0 : i32, i32
  }
  func.func @transform_4(%arg0: i32) -> (i32, i32) {
    %c0_i32 = arith.constant 0 : i32
    %c0_i32_0 = arith.constant 0 : i32
    %c0_i32_1 = arith.constant 0 : i32
    return %c0_i32, %c0_i32_0 : i32, i32
  }
  func.func @transform_5(%arg0: i32) -> (i32, i32) {
    %c0_i32 = arith.constant 0 : i32
    %c0_i32_0 = arith.constant 0 : i32
    %c0_i32_1 = arith.constant 0 : i32
    return %c0_i32, %c0_i32_0 : i32, i32
  }
  func.func @transform_6(%arg0: i32) -> (i32, i32) {
    %c0_i32 = arith.constant 0 : i32
    %c0_i32_0 = arith.constant 0 : i32
    %c0_i32_1 = arith.constant 0 : i32
    return %c0_i32, %c0_i32_0 : i32, i32
  }
  func.func @transform_7(%arg0: i32) -> (i32, i32) {
    %c0_i32 = arith.constant 0 : i32
    %c0_i32_0 = arith.constant 0 : i32
    %c0_i32_1 = arith.constant 0 : i32
    return %c0_i32, %c0_i32_0 : i32, i32
  }
  func.func @transform_8(%arg0: i32) -> (i32, i32) {
    %c0_i32 = arith.constant 0 : i32
    %c0_i32_0 = arith.constant 0 : i32
    %c0_i32_1 = arith.constant 0 : i32
    return %c0_i32, %c0_i32_0 : i32, i32
  }
  func.func @transform_9(%arg0: i32) -> (i32, i32) {
    %c0_i32 = arith.constant 0 : i32
    %c0_i32_0 = arith.constant 0 : i32
    %c0_i32_1 = arith.constant 0 : i32
    return %c0_i32, %c0_i32_0 : i32, i32
  }
  func.func @transform_10(%arg0: i32) -> (i32, i32) {
    %c0_i32 = arith.constant 0 : i32
    %c0_i32_0 = arith.constant 0 : i32
    %c0_i32_1 = arith.constant 0 : i32
    return %c0_i32, %c0_i32_0 : i32, i32
  }
  func.func @transform_11(%arg0: i32) -> (i32, i32) {
    %c0_i32 = arith.constant 0 : i32
    %c0_i32_0 = arith.constant 0 : i32
    %c0_i32_1 = arith.constant 0 : i32
    return %c0_i32, %c0_i32_0 : i32, i32
  }
  func.func @transform_12(%arg0: i32) -> (i32, i32) {
    %c0_i32 = arith.constant 0 : i32
    %c0_i32_0 = arith.constant 0 : i32
    %c0_i32_1 = arith.constant 0 : i32
    return %c0_i32, %c0_i32_0 : i32, i32
  }
  func.func @transform_13(%arg0: i32) -> (i32, i32) {
    %c0_i32 = arith.constant 0 : i32
    %c0_i32_0 = arith.constant 0 : i32
    %c0_i32_1 = arith.constant 0 : i32
    return %c0_i32, %c0_i32_0 : i32, i32
  }
  func.func @transform_14(%arg0: i32) -> (i32, i32) {
    %c0_i32 = arith.constant 0 : i32
    %c0_i32_0 = arith.constant 0 : i32
    %c0_i32_1 = arith.constant 0 : i32
    return %c0_i32, %c0_i32_0 : i32, i32
  }
  func.func @transform_15(%arg0: i32) -> (i32, i32) {
    %c0_i32 = arith.constant 0 : i32
    %c0_i32_0 = arith.constant 0 : i32
    %c0_i32_1 = arith.constant 0 : i32
    return %c0_i32, %c0_i32_0 : i32, i32
  }
  func.func @transform_16(%arg0: i32) -> (i32, i32) {
    %c0_i32 = arith.constant 0 : i32
    %c0_i32_0 = arith.constant 0 : i32
    %c0_i32_1 = arith.constant 0 : i32
    return %c0_i32, %c0_i32_0 : i32, i32
  }
  func.func @transform_17(%arg0: i32) -> (i32, i32) {
    %c0_i32 = arith.constant 0 : i32
    %c0_i32_0 = arith.constant 0 : i32
    %c0_i32_1 = arith.constant 0 : i32
    return %c0_i32, %c0_i32_0 : i32, i32
  }
  func.func @transform_18(%arg0: i32) -> (i32, i32) {
    %c0_i32 = arith.constant 0 : i32
    %c0_i32_0 = arith.constant 0 : i32
    return %arg0, %c0_i32 : i32, i32
  }
}

</mosaic_0001>

<bundles_post_ra>
// kernel: tpu_custom_call.1
= control target key start
LH: loop header
LB: loop body
LE: loop exit
PB: predicated region body
PF: predicated region fallthrough
CT: control target
= control target key end

     0   :  { %s5622_s0 = inlined_call_operand.vmem [shape: s32[32,8], index: 0, kind: input, shape index: {}]   ;;  %s5623_s1 = inlined_call_operand.vmem [shape: f32[32,8], index: 1, kind: input, shape index: {}]   ;;  %s5624_s2 = inlined_call_operand.vmem [shape: bf16[50,32], index: 2, kind: input, shape index: {}]   ;;  %s5625_s3 = inlined_call_operand.vmem [shape: f32[8,32], index: 3, kind: input, shape index: {}]   ;;  %s5626_s4 = inlined_call_operand.vmem [shape: bf16[32,32], index: 4, kind: input, shape index: {}]   ;;  %s5627_s5 = inlined_call_operand.vmem [shape: bf16[32,32], index: 5, kind: input, shape index: {}]   ;;  %s5628_s6 = inlined_call_operand.vmem [shape: bf16[32,32], index: 6, kind: input, shape index: {}]   ;;  %s5629_s7 = inlined_call_operand.vmem [shape: bf16[32,32], index: 7, kind: input, shape index: {}]   ;;  %s5630_s8 = inlined_call_operand.vmem [shape: f32[1,32], index: 8, kind: input, shape index: {}]   ;;  %s5631_s9 = inlined_call_operand.vmem [shape: f32[1,32], index: 9, kind: input, shape index: {}]   ;;  %s5632_s10 = inlined_call_operand.vmem [shape: bf16[32,64], index: 10, kind: input, shape index: {}]   ;;  %s5633_s11 = inlined_call_operand.vmem [shape: f32[1,64], index: 11, kind: input, shape index: {}]   ;;  %s5634_s12 = inlined_call_operand.vmem [shape: bf16[64,32], index: 12, kind: input, shape index: {}]   ;;  %s5635_s13 = inlined_call_operand.vmem [shape: f32[1,32], index: 13, kind: input, shape index: {}]   ;;  %s5636_s14 = inlined_call_operand.vmem [shape: f32[1,32], index: 14, kind: input, shape index: {}]   ;;  %s5637_s15 = inlined_call_operand.vmem [shape: f32[1,32], index: 15, kind: input, shape index: {}]   ;;  %s5638_s16 = inlined_call_operand.vmem [shape: bf16[32,128], index: 16, kind: input, shape index: {}]   ;;  %s5639_s17 = inlined_call_operand.vmem [shape: f32[1,128], index: 17, kind: input, shape index: {}]   ;;  %s5640_s18 = inlined_call_operand.hbm [shape: f32[32,128], index: 18, kind: output, shape index: {}]  }
   0x1   :  { %5649 = sst [smem:[#allocation8_spill]] %s5622_s0 }
   0x2   :  { %5650 = sst [smem:[#allocation9_spill]] %s5623_s1 }
   0x3   :  { %5651 = sst [smem:[#allocation10_spill]] %s5624_s2 }
   0x4   :  { %5652 = sst [smem:[#allocation11_spill]] %s5625_s3 }
   0x5   :  { %5653 = sst [smem:[#allocation12_spill]] %s5627_s5 }
   0x6   :  { %23 = vsyncpa [#allocation3], 0 }
   0x7   :  { %25 = vsyncpa [#allocation3 + $0x1], 0  ;;  %s4304_s27 = smov 0   ;;  %s4306_s28 = smov 0  }
   0x8   :  { %s4308_s29 = smov 0   ;;  %s4310_s30 = smov 0  }
   0x9 LB: > { %5654 = sst [smem:[#allocation5_spill]] %s4196_s29  ;;  %s4325_s0 = sadd.s32 4294967295, %s4200_s30   ;;  %s4200_s30 = sphi %s4310_s30, %s5666_s30   ;;  %s4196_s29 = sphi %s4308_s29, %s5671_s29   ;;  %s4192_s28 = sphi %s4306_s28, %s5670_s28   ;;  %s4188_s27 = sphi %s4304_s27, %s5669_s27  }
   0xa   : > { %s3772_s19 = sadd.s32 4294967294, %s4200_s30   ;;  %s4329_s1 = sadd.s32 1, %s4200_s30  }
   0xb   : > { %5655 = sst [smem:[#allocation6_spill]] %s4329_s1  ;;  %s426_s20 = sadd.s32 1, %s4196_s29 }
   0xc   : > { %s423_s21 = ssub.s32 %s4200_s30, %s4329_s1  ;;  %p436_p0 = scmp.ne.s32.totalorder %s4196_s29, %s4192_s28 }
   0xd   : > { %p424_p1 = scmp.eq.s32.totalorder %s423_s21, 0  ;;  %p437_p2 = scmp.eq.s32.totalorder %s4325_s0, 1 }
   0xe   : > { %p442_p3 = scmp.ne.s32.totalorder %s4192_s28, %s4188_s27  ;;  %p443_p4 = scmp.eq.s32.totalorder %s3772_s19, 1 }
   0xf   : > { %s4340_s22 = scalar_select %p424_p1, %s4196_s29, %s426_s20  }
  0x10   : > { %p4342_p5 = por %p437_p2, %p436_p0  ;;  %p4346_p6 = por %p443_p4, %p442_p3 }
  0x11   : > { %5656 = sst [smem:[#allocation7_spill]] %s4340_s22  ;;  %p3775_p7 = scmp.ge.s32.totalorder %s4200_s30, 1 }
  0x12   : > { %p527_p8 = scmp.lt.s32.totalorder %s4200_s30, 3 }
  0x14   : > { %p528_p9 = pnand %p3775_p7, %p527_p8 }
  0x15   : > { %s3777_s24 = sshll.u32 (!%p528_p9), %s4325_s0, 1  ;;  %s5659_s19 = sld [smem:[#allocation10_spill]] (!%p528_p9) }
  0x16   : > { %531 = sbr.rel (%p528_p9) target bundleno = 3415 (0xd57), region = 92  ;;  %p587_p10 = scmp.lt.s32.totalorder (!%p528_p9), %s3777_s24, 3 }
  0x17   : > { %s5660_s29 = sld [smem:[#allocation8_spill]] (!%p528_p9) }
  0x18   : > { %s5661_s5 = sld [smem:[#allocation12_spill]] (!%p528_p9) }
  0x19   : > { %s5663_s25 = sld [smem:[#allocation9_spill]] (!%p528_p9) }
  0x1a   : > { %s5664_s3 = sld [smem:[#allocation11_spill]] (!%p528_p9) }
  0x1b   : > { %v602_v0 = vlaneseq  ;;  %v4064_v1 = vld [vmem:[%s5659_s19 + $0x18] ss:$0 sps:$4 sm:$0x11]   ;;  %vm858_vm0 = vcmask 1040384   ;;  %v4065_v4 = vld [vmem:[%s5659_s19 + $0x10] sm:$0xff]   ;;  %s5673_s24 = smov (!%p587_p10, %s3777_s24), 3 }
  0x1c   : > { %4016 = vmatprep.subr.msk.bf16.mxu0 %vm858_vm0, %v4064_v1  ;;  %v860_v3 = vsel %vm858_vm0, %v4064_v1, 0  ;;  %v4066_v7 = vld [vmem:[%s5659_s19 + $0x8] sm:$0xff]   ;;  %s5645_s22 = sshll.u32 %s5673_s24, 3  ;;  %v4067_v15 = vld [vmem:[%s5659_s19] sm:$0xff]   ;;  %v5647_v22 = vmov 0.0   ;;  %vm833_vm5 = vcmask 408576  }
  0x1d   : > { %v4357_v2 = vshrl.u32 %v602_v0, 7  ;;  %3909 = vmatpush3.bf16.msra.mxu0 %v860_v3  ;;  %s590_s1 = scalar_lea.vmem %s5660_s29, %s5645_s22  ;;  %v4418_v34 = vand.u32 127, %v602_v0  ;;  %s5662_s20 = sshll.u32 %s5673_s24, 3 }
  0x1e   : > { %3910 = vmatprep.subr.bf16.mxu0 %v4065_v4  ;;  %v600_v10 = vld [vmem:[%s590_s1] sm:$0xff]  ;;  %v601_v23 = vld [vmem:[%s590_s1 + $0x8] sm:$0xff]  ;;  %s583_s29 = sand.u32 1, %s4192_s28  }
  0x1f   : > { %v4365_v5 = vsub.s32 0, %v4357_v2  ;;  %v4368_v6 = vsub.s32 2, %v4357_v2  ;;  %v4380_v8 = vsub.s32 3, %v4357_v2  ;;  %v4383_v9 = vsub.s32 1, %v4357_v2 }
  0x20   : > { %v4388_v13 = vsub.s32 5, %v4357_v2  ;;  %v4391_v14 = vsub.s32 4, %v4357_v2  ;;  %v4399_v18 = vsub.s32 7, %v4357_v2  ;;  %v4402_v19 = vsub.s32 6, %v4357_v2 }
  0x21   : > { %3911 = vmatpush3.bf16.msra.mxu0 %v4065_v4  ;;  %v621_v11 = vrot.slane %v600_v10, %v4368_v6  ;;  %v607_v12 = vrot.slane %v600_v10, %v4365_v5  ;;  %v628_v16 = vrot.slane %v600_v10, %v4380_v8  ;;  %v614_v17 = vrot.slane %v600_v10, %v4383_v9 }
  0x22   : > { %3912 = vmatprep.subr.bf16.mxu0 %v4066_v7  ;;  %v642_v20 = vrot.slane %v600_v10, %v4388_v13  ;;  %v635_v21 = vrot.slane %v600_v10, %v4391_v14  ;;  %v656_v24 = vrot.slane %v600_v10, %v4399_v18  ;;  %v649_v25 = vrot.slane %v600_v10, %v4402_v19 }
  0x23   : > { %623 = vbcast.lane.b32.xlu1 %v621_v11, 256  ;;  %609 = vbcast.lane.b32.xlu0 %v607_v12, 256  ;;  %v670_v26 = vrot.slane %v601_v23, %v4383_v9  ;;  %v663_v27 = vrot.slane %v601_v23, %v4365_v5  ;;  %v684_v28 = vrot.slane %v601_v23, %v4380_v8 }
  0x24   : > { %v677_v29 = vrot.slane %v601_v23, %v4368_v6  ;;  %v698_v30 = vrot.slane %v601_v23, %v4388_v13  ;;  %v691_v31 = vrot.slane %v601_v23, %v4391_v14  ;;  %v712_v32 = vrot.slane %v601_v23, %v4399_v18 }
  0x25   : > { %3913 = vmatpush3.bf16.msra.mxu0 %v4066_v7  ;;  %v705_v33 = vrot.slane %v601_v23, %v4402_v19  ;;  %v4070_v23 = vld [vmem:[%s5626_s4 + $0x8] sm:$0xff]  }
  0x26   : > { %3914 = vmatprep.subr.bf16.mxu0 %v4067_v15 }
  0x27   : > { %630 = vbcast.lane.b32.xlu1 %v628_v16, 256  ;;  %616 = vbcast.lane.b32.xlu0 %v614_v17, 256 }
  0x29   : > { %3915 = vmatpush3.bf16.msra.mxu0 %v4067_v15 }
  0x2a   : > { %3972 = vmatprep.subr.bf16.mxu0 %v5647_v22 }
  0x2b   : > { %644 = vbcast.lane.b32.xlu1 %v642_v20, 256  ;;  %637 = vbcast.lane.b32.xlu0 %v635_v21, 256  ;;  %v4068_v20 = vld [vmem:[%s5661_s5 + $0x8] sm:$0xff]   ;;  %v4069_v21 = vld [vmem:[%s5661_s5] sm:$0xff]   ;;  %s596_s5 = scalar_lea.vmem %s5663_s25, %s5662_s20  ;;  %s3776_s25 = sshll.u32 %s583_s29, 4 }
  0x2c   : > { %3932 = vmatprep.subr.bf16.mxu1 %v4068_v20  ;;  %s585_s22 = scalar_lea.vmem [#allocation2], %s3776_s25  ;;  %s5582_s20 = scalar_lea.sflag [#allocation3], %s583_s29 }
  0x2d   : > { %3933 = vmatpush3.bf16.msra.mxu1 %v4068_v20  ;;  %s3698_s24 = sshll.u32 %s585_s22, 4  ;;  %s5580_s24 = int_to_ptr.vmem [resolvable:$true] %s3698_s24 }
  0x2e   : > { %3934 = vmatprep.subr.bf16.mxu1 %v4069_v21  ;;  %s4140_s21 = scalar_lea.vmem %s5580_s24, 256 }
  0x2f   : > { %658 = vbcast.lane.b32.xlu1 %v656_v24, 256  ;;  %651 = vbcast.lane.b32.xlu0 %v649_v25, 256  ;;  %v4071_v24 = vld [vmem:[%s5626_s4] sm:$0xff]   ;;  %v4072_v25 = vld [vmem:[%s5628_s6 + $0x8] sm:$0xff]   ;;  %p4141_p11 = scmp.ne.s32.totalorder %s5580_s24, %s4140_s21 }
  0x31   : > { %3935 = vmatpush3.bf16.msra.mxu1 %v4069_v21  ;;  %p4142_p12 = pnand %p4141_p11, %p4342_p5 }
  0x32   : > { %3952 = vmatprep.subr.bf16.mxu1 %v4072_v25 }
  0x33   : > { %672 = vbcast.lane.b32.xlu1 %v670_v26, 256  ;;  %665 = vbcast.lane.b32.xlu0 %v663_v27, 256  ;;  %v1622_v26 = vld [vmem:[%s596_s5] sm:$0xff]  ;;  %v1623_v27 = vld [vmem:[%s596_s5 + $0x8] sm:$0xff]  ;;  %s3858_s5 = sshll.u32 %s4325_s0, 8  ;;  %p4143_p13 = pneg %p4142_p12 }
  0x34   : > { %s5578_s26 = scalar_lea.hbm %s5640_s18, %s3858_s5  ;;  %s4206_s0 = smov [#allocation2]  }
  0x35   : > { %s4144_s25 = sshll.u32 %s4206_s0, 4  ;;  %s4145_s25 = int_to_ptr.vmem [resolvable:$false] %s4144_s25 }
  0x36   : > { %s4146_s19 = scalar_lea.vmem %s4145_s25, 512  ;;  %p4147_p0 = scmp.lt.s32.totalorder %s5580_s24, %s4145_s25 }
  0x37   : > { %686 = vbcast.lane.b32.xlu1 %v684_v28, 256  ;;  %679 = vbcast.lane.b32.xlu0 %v677_v29, 256  ;;  %v1624_v28 = vsub.f32 1.0, %v1622_v26  ;;  %v1625_v29 = vsub.f32 1.0, %v1623_v27  ;;  %p4148_p1 = scmp.lt.s32.totalorder %s4146_s19, %s4140_s21 }
  0x39   : > { %p4149_p2 = por %p4148_p1, %p4147_p0 }
  0x3b   : > { %700 = vbcast.lane.b32.xlu1 %v698_v30, 256  ;;  %693 = vbcast.lane.b32.xlu0 %v691_v31, 256  ;;  %v4484_v30 = vmul.f32 -1e+09, %v1624_v28  ;;  %v4486_v31 = vmul.f32 -1e+09, %v1625_v29  ;;  %p4150_p3 = pnand %p4149_p2, %p4143_p13 }
  0x3f   : > { %714 = vbcast.lane.b32.xlu1 %v712_v32, 256  ;;  %707 = vbcast.lane.b32.xlu0 %v705_v33, 256  ;;  %v1633_v32 = vrot.slane %v4484_v30, %v4365_v5  ;;  %v1640_v33 = vrot.slane %v4484_v30, %v4383_v9 }
  0x43   : > { %1635 = vbcast.lane.b32.xlu1 %v1633_v32, 256  ;;  %1642 = vbcast.lane.b32.xlu0 %v1640_v33, 256 }
  0x95   : > { %v624_v35 = vpop.permute.xlu1 %623  ;;  %v610_v36 = vpop.permute.xlu0 %609 }
  0x96   : > { %vm718_vm1 = vcmp.eq.s32.totalorder %v624_v35, %v4418_v34  ;;  %vm716_vm2 = vcmp.eq.s32.totalorder %v610_v36, %v4418_v34  ;;  %v1689_v35 = vrot.slane %v4486_v31, %v4365_v5  ;;  %v1647_v36 = vrot.slane %v4484_v30, %v4368_v6 }
  0x97   : > { %v734_v39 = vsel %vm718_vm1, 1.0, %v5647_v22  ;;  %v732_v41 = vsel %vm716_vm2, 1.0, %v5647_v22  ;;  %vm4203_vm2 = vmmov 0  }
  0x98   : > { %1691 = vbcast.lane.b32.xlu1 %v1689_v35, 256  ;;  %1649 = vbcast.lane.b32.xlu0 %v1647_v36, 256 }
  0x99   : > { %v631_v37 = vpop.permute.xlu1 %630  ;;  %v617_v38 = vpop.permute.xlu0 %616 }
  0x9a   : > { %vm719_vm3 = vcmp.eq.s32.totalorder %v631_v37, %v4418_v34  ;;  %vm717_vm4 = vcmp.eq.s32.totalorder %v617_v38, %v4418_v34  ;;  %v1696_v37 = vrot.slane %v4486_v31, %v4383_v9  ;;  %v1654_v38 = vrot.slane %v4484_v30, %v4380_v8 }
  0x9b   : > { %v735_v40 = vsel %vm719_vm3, 1.0, %v5647_v22  ;;  %v733_v42 = vsel %vm717_vm4, 1.0, %v5647_v22  ;;  %vm983_vm3 = vcmask 261120   ;;  %vm1271_vm4 = vcmask 1041409  }
  0x9c   : > { %v3851_v43 = vpack.c.bf16 %v735_v40, %v734_v39  ;;  %v3850_v44 = vpack.c.bf16 %v733_v42, %v732_v41  ;;  %1698 = vbcast.lane.b32.xlu1 %v1696_v37, 256  ;;  %v1703_v39 = vrot.slane %v4486_v31, %v4368_v6  ;;  %1656 = vbcast.lane.b32.xlu0 %v1654_v38, 256 }
  0x9d   : > { %v645_v45 = vpop.permute.xlu1 %644  ;;  %v638_v46 = vpop.permute.xlu0 %637  ;;  %v1710_v40 = vrot.slane %v4486_v31, %v4380_v8  ;;  %v1717_v41 = vrot.slane %v4486_v31, %v4391_v14 }
  0x9e   : > { %vm721_vm6 = vcmp.eq.s32.totalorder %v645_v45, %v4418_v34  ;;  %3916 = vmatprep.mubr.msk.bf16.mxu0 %vm833_vm5, %v3850_v44  ;;  %vm720_vm7 = vcmp.eq.s32.totalorder %v638_v46, %v4418_v34  ;;  %v4509_v45 = vld [vmem:[%s5664_s3] sm:$0xff] }
  0x9f   : > { %v737_v47 = vsel %vm721_vm6, 1.0, %v5647_v22  ;;  %v736_v48 = vsel %vm720_vm7, 1.0, %v5647_v22  ;;  %3917 = vmatmul.mubr.msk.bf16.vlgmr.msra.gmra.mxu0 %vm833_vm5, %v3851_v43  ;;  %vm1277_vm6 = vcmask 1043459   ;;  %vm1280_vm7 = vcmask 1044484  }
  0xa0   : > { %v3852_v49 = vpack.c.bf16 %v737_v47, %v736_v48  ;;  %3973 = vmatpush3.bf16.msra.mxu0 %v4070_v23  ;;  %1705 = vbcast.lane.b32.xlu1 %v1703_v39, 256 }
  0xa1   : > { %v659_v50 = vpop.permute.xlu1 %658  ;;  %v652_v51 = vpop.permute.xlu0 %651  ;;  %3974 = vmatprep.subr.bf16.mxu0 %v5647_v22 }
  0xa2   : > { %vm723_vm8 = vcmp.eq.s32.totalorder %v659_v50, %v4418_v34  ;;  %vm722_vm9 = vcmp.eq.s32.totalorder %v652_v51, %v4418_v34  ;;  %3920 = vmatprep.mubr.msk.bf16.mxu0 %vm833_vm5, %v3852_v49 }
  0xa3   : > { %v739_v52 = vsel %vm723_vm8, 1.0, %v5647_v22  ;;  %v738_v53 = vsel %vm722_vm9, 1.0, %v5647_v22  ;;  %vm1283_vm8 = vcmask 1045509   ;;  %vm1286_vm9 = vcmask 1046534  }
  0xa4   : > { %v3853_v54 = vpack.c.bf16 %v739_v52, %v738_v53  ;;  %3975 = vmatpush3.bf16.msra.mxu0 %v4071_v24  ;;  %1712 = vbcast.lane.b32.xlu1 %v1710_v40, 256 }
  0xa5   : > { %v673_v55 = vpop.permute.xlu1 %672  ;;  %v666_v56 = vpop.permute.xlu0 %665  ;;  %3980 = vmatprep.subr.bf16.mxu0 %v5647_v22 }
  0xa6   : > { %vm725_vm10 = vcmp.eq.s32.totalorder %v673_v55, %v4418_v34  ;;  %vm724_vm11 = vcmp.eq.s32.totalorder %v666_v56, %v4418_v34  ;;  %v4073_v55 = vld [vmem:[%s5628_s6] sm:$0xff]  }
  0xa7   : > { %v741_v57 = vsel %vm725_vm10, 1.0, %v5647_v22  ;;  %v740_v58 = vsel %vm724_vm11, 1.0, %v5647_v22  ;;  %3921 = vmatmul.mubr.msk.bf16.gmra.mxu0 %vm833_vm5, %v3853_v54  ;;  %vm1289_vm10 = vcmask 1047559   ;;  %vm1918_vm11 = vcmask 64512  }
  0xa8   : > { %v3854_v59 = vpack.c.bf16 %v741_v57, %v740_v58  ;;  %1719 = vbcast.lane.b32.xlu1 %v1717_v41, 256 }
  0xa9   : > { %v687_v60 = vpop.permute.xlu1 %686  ;;  %v680_v61 = vpop.permute.xlu0 %679 }
  0xaa   : > { %vm727_vm12 = vcmp.eq.s32.totalorder %v687_v60, %v4418_v34  ;;  %vm726_vm13 = vcmp.eq.s32.totalorder %v680_v61, %v4418_v34  ;;  %3924 = vmatprep.mubr.msk.bf16.mxu0 %vm833_vm5, %v3854_v59 }
  0xab   : > { %v743_v62 = vsel %vm727_vm12, 1.0, %v5647_v22  ;;  %v742_v63 = vsel %vm726_vm13, 1.0, %v5647_v22  ;;  %vm3157_vm12 = vcmask 523264  }
  0xac   : > { %v3855_v0 = vpack.c.bf16 %v743_v62, %v742_v63 }
  0xad   : > { %v701_v1 = vpop.permute.xlu1 %700  ;;  %v694_v3 = vpop.permute.xlu0 %693 }
  0xae   : > { %vm729_vm14 = vcmp.eq.s32.totalorder %v701_v1, %v4418_v34  ;;  %vm728_vm15 = vcmp.eq.s32.totalorder %v694_v3, %v4418_v34 }
  0xaf   : > { %v745_v4 = vsel %vm729_vm14, 1.0, %v5647_v22  ;;  %v744_v7 = vsel %vm728_vm15, 1.0, %v5647_v22  ;;  %3925 = vmatmul.mubr.msk.bf16.gmra.mxu0 %vm833_vm5, %v3855_v0 }
  0xb0   : > { %v3856_v10 = vpack.c.bf16 %v745_v4, %v744_v7 }
  0xb1   : > { %v715_v11 = vpop.permute.xlu1 %714  ;;  %v708_v12 = vpop.permute.xlu0 %707 }
  0xb2   : > { %vm731_vm0 = vcmp.eq.s32.totalorder %v715_v11, %v4418_v34  ;;  %vm730_vm1 = vcmp.eq.s32.totalorder %v708_v12, %v4418_v34  ;;  %3928 = vmatprep.mubr.msk.bf16.mxu0 %vm833_vm5, %v3856_v10 }
  0xb3   : > { %v747_v15 = vsel %vm731_vm0, 1.0, %v5647_v22  ;;  %v746_v16 = vsel %vm730_vm1, 1.0, %v5647_v22 }
  0xb4   : > { %v3857_v17 = vpack.c.bf16 %v747_v15, %v746_v16 }
  0xb7   : > { %3929 = vmatmul.mubr.msk.bf16.gmra.mxu0 %vm833_vm5, %v3857_v17  ;;  %vm1274_vm5 = vcmask 1042434  }
  0xb8   : > { %3976 = vmatprep.mubr.msk.bf16.mxu0 %vm4203_vm2, %v5647_v22 }
 0x15f   : > { %v3918_v42 = vpop.f32.mrf.mxu0 }
 0x160   : > { %v4521_v51 = vadd.f32 %v3918_v42, %v4509_v45 }
 0x161   : > { %v896_v43 = vpop.f32.mrf.mxu0 }
 0x162   : > { %v4515_v48 = vadd.f32 %v896_v43, %v4509_v45  ;;  %v1220_v63 = vpack.c.bf16 %v4521_v51, %v4521_v51 }
 0x163   : > { %v3919_v44 = vpop.f32.mrf.mxu0 }
 0x164   : > { %v4512_v47 = vadd.f32 %v3919_v44, %v4509_v45  ;;  %v1218_v7 = vpack.c.bf16 %v4515_v48, %v4515_v48  ;;  %v1256_v16 = vunpack.c.l.b16 %v1220_v63 }
 0x165   : > { %v899_v46 = vpop.f32.mrf.mxu0 }
 0x166   : > { %v4518_v49 = vadd.f32 %v899_v46, %v4509_v45  ;;  %v4529_v54 = vpack.c.bf16 %v4512_v47, %v4521_v51  ;;  %v1221_v12 = vpack.c.bf16 %v4512_v47, %v4512_v47  ;;  %v1273_v33 = vrot.slane %v1256_v16, 6 }
 0x167   : > { %v3922_v50 = vpop.f32.mrf.mxu0 }
 0x168   : > { %v4525_v53 = vpack.c.bf16 %v4518_v49, %v4515_v48  ;;  %v1219_v57 = vpack.c.bf16 %v4518_v49, %v4518_v49  ;;  %v4552_v1 = vadd.f32 %v3922_v50, %v4509_v45  ;;  %v1257_v27 = vunpack.c.l.b16 %v1221_v12 }
 0x169   : > { %v912_v52 = vpop.f32.mrf.mxu0 }
 0x16a   : > { %3936 = vmatprep.mubr.msk.bf16.mxu1 %vm983_vm3, %v4525_v53  ;;  %v4544_v60 = vadd.f32 %v912_v52, %v4509_v45  ;;  %v1255_v0 = vunpack.c.l.b16 %v1219_v57  ;;  %v1276_v50 = vrot.slane %v1257_v27, 5 }
 0x16b   : > { %v3923_v56 = vpop.f32.mrf.mxu0  ;;  %3937 = vmatmul.mubr.msk.bf16.vlgmr.msra.gmra.mxu1 %vm983_vm3, %v4529_v54 }
 0x16c   : > { %3953 = vmatpush3.bf16.msra.mxu1 %v4072_v25  ;;  %v4541_v59 = vadd.f32 %v3923_v56, %v4509_v45  ;;  %v1270_v17 = vrot.slane %v1255_v0, 7  ;;  %v1222_v20 = vpack.c.bf16 %v4544_v60, %v4544_v60  ;;  %v1254_v25 = vunpack.c.l.b16 %v1218_v7 }
 0x16d   : > { %v915_v58 = vpop.f32.mrf.mxu0  ;;  %3954 = vmatprep.subr.bf16.mxu1 %v4073_v55 }
 0x16e   : > { %v4547_v61 = vadd.f32 %v915_v58, %v4509_v45  ;;  %v4562_v10 = vpack.c.bf16 %v4541_v59, %v4552_v1  ;;  %v1272_v35 = vsel %vm1271_vm4, %v1270_v17, %v1254_v25  ;;  %v1258_v36 = vunpack.c.l.b16 %v1222_v20 }
 0x16f   : > { %v3926_v62 = vpop.f32.mrf.mxu0  ;;  %v1275_v52 = vsel %vm1274_vm5, %v1273_v33, %v1272_v35  ;;  %v1224_v58 = vpack.c.bf16 %v4552_v1, %v4552_v1 }
 0x170   : > { %v4556_v3 = vpack.c.bf16 %v4547_v61, %v4544_v60  ;;  %3955 = vmatpush3.bf16.msra.mxu1 %v4073_v55  ;;  %v4565_v11 = vadd.f32 %v3926_v62, %v4509_v45  ;;  %v1223_v28 = vpack.c.bf16 %v4547_v61, %v4547_v61  ;;  %v1225_v62 = vpack.c.bf16 %v4541_v59, %v4541_v59 }
 0x171   : > { %v928_v4 = vpop.f32.mrf.mxu0  ;;  %3996 = vmatprep.subr.bf16.mxu1 %v5647_v22  ;;  %v1278_v17 = vsel %vm1277_vm6, %v1276_v50, %v1275_v52  ;;  %v1260_v33 = vunpack.c.l.b16 %v1224_v58 }
 0x172   : > { %3940 = vmatprep.mubr.msk.bf16.mxu1 %vm983_vm3, %v4556_v3  ;;  %v4577_v21 = vadd.f32 %v928_v4, %v4509_v45  ;;  %v1228_v26 = vpack.c.bf16 %v4565_v11, %v4565_v11  ;;  %v1259_v55 = vunpack.c.l.b16 %v1223_v28  ;;  %v1279_v4 = vrot.slane %v1258_v36, 4 }
 0x173   : > { %v3927_v15 = vpop.f32.mrf.mxu0  ;;  %3941 = vmatmul.mubr.msk.bf16.gmra.mxu1 %vm983_vm3, %v4562_v10  ;;  %v1261_v36 = vunpack.c.l.b16 %v1225_v62  ;;  %v1285_v58 = vrot.slane %v1260_v33, 2 }
 0x174   : > { %v4580_v23 = vadd.f32 %v3927_v15, %v4509_v45  ;;  %v1226_v37 = vpack.c.bf16 %v4577_v21, %v4577_v21  ;;  %v1264_v42 = vunpack.c.l.b16 %v1228_v26  ;;  %v1282_v26 = vrot.slane %v1259_v55, 3 }
 0x175   : > { %v931_v24 = vpop.f32.mrf.mxu0 }
 0x176   : > { %v4587_v29 = vadd.f32 %v931_v24, %v4509_v45  ;;  %v1229_v38 = vpack.c.bf16 %v4580_v23, %v4580_v23  ;;  %v4602_v43 = vpack.c.bf16 %v4580_v23, %v4565_v11  ;;  %v1262_v7 = vunpack.c.l.b16 %v1226_v37 }
 0x177   : > { %v3930_v32 = vpop.f32.mrf.mxu0  ;;  %v1293_v20 = vrot.slane %v1264_v42, 6 }
 0x178   : > { %v4596_v39 = vpack.c.bf16 %v4587_v29, %v4577_v21  ;;  %v1227_v40 = vpack.c.bf16 %v4587_v29, %v4587_v29  ;;  %v4605_v44 = vadd.f32 %v3930_v32, %v4509_v45  ;;  %v1265_v12 = vunpack.c.l.b16 %v1229_v38 }
 0x179   : > { %v944_v41 = vpop.f32.mrf.mxu0 }
 0x17a   : > { %v4608_v46 = vadd.f32 %v944_v41, %v4509_v45  ;;  %v1263_v56 = vunpack.c.l.b16 %v1227_v40  ;;  %3944 = vmatprep.mubr.msk.bf16.mxu1 %vm983_vm3, %v4596_v39  ;;  %v1232_v24 = vpack.c.bf16 %v4605_v44, %v4605_v44  ;;  %v1295_v37 = vrot.slane %v1265_v12, 5 }
 0x17b   : > { %v3931_v57 = vpop.f32.mrf.mxu0  ;;  %3945 = vmatmul.mubr.msk.bf16.gmra.mxu1 %vm983_vm3, %v4602_v43  ;;  %v1281_v41 = vsel %vm1280_vm7, %v1279_v4, %v1278_v17  ;;  %v1288_v12 = vrot.slane %v1261_v36, 1  ;;  %v4204_v36 = vmov 1966171168  }
 0x17c   : > { %v1230_v63 = vpack.c.bf16 %v4608_v46, %v4608_v46  ;;  %v4620_v0 = vadd.f32 %v3931_v57, %v4509_v45  ;;  %v1291_v15 = vrot.slane %v1263_v56, 7  ;;  %v1268_v42 = vunpack.c.l.b16 %v1232_v24 }
 0x17d   : > { %v947_v16 = vpop.f32.mrf.mxu0  ;;  %v1284_v52 = vsel %vm1283_vm8, %v1282_v26, %v1281_v41 }
 0x17e   : > { %v1266_v25 = vunpack.c.l.b16 %v1230_v63  ;;  %v1292_v27 = vsel %vm1271_vm4, %v1291_v15, %v1262_v7  ;;  %v1233_v28 = vpack.c.bf16 %v4620_v0, %v4620_v0  ;;  %v4631_v32 = vadd.f32 %v947_v16, %v4509_v45 }
 0x17f   : > { %v1294_v35 = vsel %vm1274_vm5, %v1293_v20, %v1292_v27  ;;  %v966_v45 = vpack.c.bf16 %v4620_v0, %v4605_v44  ;;  %v1287_v63 = vsel %vm1286_vm9, %v1285_v58, %v1284_v52  ;;  %v1301_v4 = vrot.slane %v1268_v42, 2 }
 0x180   : > { %v965_v38 = vpack.c.bf16 %v4631_v32, %v4608_v46  ;;  %v1231_v40 = vpack.c.bf16 %v4631_v32, %v4631_v32  ;;  %v1297_v50 = vrot.slane %v1266_v25, 4  ;;  %v1296_v55 = vsel %vm1277_vm6, %v1295_v37, %v1294_v35 }
 0x181   : > { %v1269_v56 = vunpack.c.l.b16 %v1233_v28  ;;  %v1290_v20 = vsel %vm1289_vm10, %v1288_v12, %v1287_v63  ;;  %v1366_v37 = vunpack.c.l.s4 %v4204_v36 }
 0x182   : > { %v1267_v57 = vunpack.c.l.b16 %v1231_v40  ;;  %3948 = vmatprep.mubr.msk.bf16.mxu1 %vm983_vm3, %v965_v38  ;;  %v1298_v7 = vsel %vm1280_vm7, %v1297_v50, %v1296_v55 }
 0x183   : > { %3949 = vmatmul.mubr.msk.bf16.gmra.mxu1 %vm983_vm3, %v966_v45  ;;  %v1303_v15 = vrot.slane %v1269_v56, 1  ;;  %v1367_v40 = vunpack.c.0.s8 %v1366_v37 }
 0x184   : > { %v1299_v62 = vrot.slane %v1267_v57, 3  ;;  %3956 = vmatprep.mubr.msk.bf16.mxu1 %vm983_vm3, %v4525_v53  ;;  %v1661_v53 = vrot.slane %v4484_v30, %v4391_v14 }
 0x185   : > { %v4687_v42 = vsub.s32 %v1367_v40, %v4357_v2 }
 0x186   : > { %v1300_v16 = vsel %vm1283_vm8, %v1299_v62, %v1298_v7  ;;  %1663 = vbcast.lane.b32.xlu0 %v1661_v53, 256 }
 0x187   : > { %v1302_v17 = vsel %vm1286_vm9, %v1301_v4, %v1300_v16 }
 0x188   : > { %v1304_v24 = vsel %vm1289_vm10, %v1303_v15, %v1302_v17 }
 0x189   : > { %v1305_v25 = vpack.c.b16 %v1304_v24, %v1290_v20 }
 0x18b   : > { %3957 = vmatmul.mubr.msk.bf16.vlgmr.msra.gmra.mxu1 %vm983_vm3, %v4529_v54  ;;  %3977 = vmatmul.mubr.msk.bf16.vlgmr.msra.gmra.mxu0 %vm983_vm3, %v1305_v25  ;;  %v1724_v54 = vrot.slane %v4486_v31, %v4388_v13 }
 0x18c   : > { %3960 = vmatprep.mubr.msk.bf16.mxu1 %vm983_vm3, %v4556_v3  ;;  %3984 = vmatprep.mubr.msk.bf16.mxu0 %vm4203_vm2, %v5647_v22  ;;  %v1668_v3 = vrot.slane %v4484_v30, %v4388_v13 }
 0x18d   : > { %1726 = vbcast.lane.b32.xlu1 %v1724_v54, 256 }
 0x18e   : > { %1670 = vbcast.lane.b32.xlu0 %v1668_v3, 256 }
 0x193   : > { %3961 = vmatmul.mubr.msk.bf16.gmra.mxu1 %vm983_vm3, %v4562_v10  ;;  %v1731_v10 = vrot.slane %v4486_v31, %v4402_v19 }
 0x194   : > { %3964 = vmatprep.mubr.msk.bf16.mxu1 %vm983_vm3, %v4596_v39  ;;  %v1675_v39 = vrot.slane %v4484_v30, %v4402_v19 }
 0x195   : > { %1733 = vbcast.lane.b32.xlu1 %v1731_v10, 256 }
 0x196   : > { %1677 = vbcast.lane.b32.xlu0 %v1675_v39, 256 }
 0x19b   : > { %3965 = vmatmul.mubr.msk.bf16.gmra.mxu1 %vm983_vm3, %v4602_v43 }
 0x19c   : > { %3968 = vmatprep.mubr.msk.bf16.mxu1 %vm983_vm3, %v965_v38 }
 0x1a3   : > { %3969 = vmatmul.mubr.msk.bf16.gmra.mxu1 %vm983_vm3, %v966_v45 }
 0x1a4   : > { %4004 = vmatprep.mubr.msk.bf16.mxu1 %vm4203_vm2, %v5647_v22 }
 0x22b   : > { %v3938_v43 = vpop.f32.mrf.mxu1 }
 0x22d   : > { %v1042_v26 = vpop.f32.mrf.mxu1 }
 0x22f   : > { %v3939_v27 = vpop.f32.mrf.mxu1 }
 0x231   : > { %v1045_v28 = vpop.f32.mrf.mxu1 }
 0x233   : > { %v4680_v33 = vpop.f32.mrf.mxu1 }
 0x235   : > { %v1058_v35 = vpop.f32.mrf.mxu1 }
 0x237   : > { %v4682_v38 = vpop.f32.mrf.mxu1 }
 0x239   : > { %v4684_v41 = vpop.f32.mrf.mxu1 }
 0x23b   : > { %v3946_v45 = vpop.f32.mrf.mxu1 }
 0x23d   : > { %v1074_v4 = vpop.f32.mrf.mxu1 }
 0x23f   : > { %v3947_v39 = vpop.f32.mrf.mxu1 }
 0x24b   : > { %v1355_v50 = vpop.f32.mrf.mxu0 }
 0x24c   : > { %v1364_v52 = vcombine.high %v1355_v50, %v1355_v50  ;;  %v1371_v55 = vrot.slane %v1355_v50, %v4687_v42 }
 0x24d   : > { %v3978_v56 = vpop.f32.mrf.mxu0 }
 0x24e   : > { %v1378_v57 = vrot.slane %v1364_v52, %v4687_v42  ;;  %v1379_v58 = vcombine.high %v1371_v55, %v1371_v55  ;;  %v1387_v62 = vrot.slane %v1371_v55, %v4687_v42 }
 0x24f   : > { %v1358_v63 = vpop.f32.mrf.mxu0 }
 0x250   : > { %v1394_v7 = vrot.slane %v1378_v57, %v4687_v42  ;;  %v1401_v12 = vrot.slane %v1379_v58, %v4687_v42  ;;  %v1409_v15 = vcombine.high %v1387_v62, %v1387_v62  ;;  %v1413_v16 = vcombine.high %v1358_v63, %v1358_v63 }
 0x251   : > { %v1420_v17 = vrot.slane %v1358_v63, %v4687_v42  ;;  %v3979_v20 = vpop.f32.mrf.mxu0  ;;  %v1465_v24 = vrot.slane %v1387_v62, %v4365_v5  ;;  %v1380_v36 = vcombine.high %v1378_v57, %v1378_v57 }
 0x252   : > { %v1469_v25 = vrot.slane %v1401_v12, %v4365_v5  ;;  %v1473_v53 = vrot.slane %v1409_v15, %v4365_v5  ;;  %v1481_v40 = vrot.slane %v1394_v7, %v4365_v5  ;;  %v1427_v50 = vrot.slane %v1413_v16, %v4687_v42 }
 0x253   : > { %v1428_v54 = vcombine.high %v1420_v17, %v1420_v17  ;;  %v1436_v3 = vrot.slane %v1420_v17, %v4687_v42  ;;  %v1542_v10 = vmul.f32 %v1465_v24, %v1042_v26  ;;  %v1411_v56 = vcombine.high %v1401_v12, %v1401_v12 }
 0x254   : > { %v1543_v37 = vmul.f32 %v1469_v25, %v1045_v28  ;;  %v1544_v55 = vmul.f32 %v3938_v43, %v1473_v53  ;;  %v1077_v28 = vpop.f32.mrf.mxu1  ;;  %v1443_v17 = vrot.slane %v1427_v50, %v4687_v42  ;;  %v1546_v20 = vmul.f32 %v1481_v40, %v1058_v35 }
 0x255   : > { %v1450_v52 = vrot.slane %v1428_v54, %v4687_v42  ;;  %v1458_v58 = vcombine.high %v1436_v3, %v1436_v3  ;;  %v1558_v62 = vsel %vm983_vm3, %v1542_v10, 0.0  ;;  %v1497_v15 = vrot.slane %v1436_v3, %v4365_v5 }
 0x256   : > { %v1561_v63 = vsel %vm983_vm3, %v1543_v37, 0.0  ;;  %1559 = vadd.xlane.f32.xlu0 %v1558_v62  ;;  %v1564_v16 = vsel %vm983_vm3, %v1544_v55, 0.0  ;;  %v1477_v43 = vrot.slane %v1411_v56, %v4365_v5  ;;  %v1408_v53 = vrot.slane %v1380_v36, %v4687_v42  ;;  %v3950_v54 = vpop.f32.mrf.mxu1 }
 0x257   : > { %1562 = vadd.xlane.f32.xlu1 %v1561_v63  ;;  %v1501_v26 = vrot.slane %v1450_v52, %v4365_v5  ;;  %v1550_v57 = vmul.f32 %v1497_v15, %v1074_v4  ;;  %v1505_v25 = vrot.slane %v1458_v58, %v4365_v5  ;;  %v1429_v3 = vcombine.high %v1427_v50, %v1427_v50 }
 0x258   : > { %v1545_v10 = vmul.f32 %v3939_v27, %v1477_v43  ;;  %v1513_v4 = vrot.slane %v1443_v17, %v4365_v5  ;;  %v1460_v37 = vcombine.high %v1450_v52, %v1450_v52  ;;  %v1410_v62 = vcombine.high %v1394_v7, %v1394_v7  ;;  %v1090_v58 = vpop.f32.mrf.mxu1 }
 0x259   : > { %v1582_v12 = vsel %vm983_vm3, %v1550_v57, 0.0  ;;  %v1551_v24 = vmul.f32 %v1501_v26, %v1077_v28  ;;  %v1570_v40 = vsel %vm983_vm3, %v1546_v20, 0.0  ;;  %v1552_v55 = vmul.f32 %v3946_v45, %v1505_v25 }
 0x25a   : > { %1583 = vadd.xlane.f32.xlu0 %v1582_v12  ;;  %v1485_v56 = vrot.slane %v1408_v53, %v4365_v5  ;;  %v1567_v36 = vsel %vm983_vm3, %v1545_v10, 0.0  ;;  %v1554_v63 = vmul.f32 %v1513_v4, %v1090_v58  ;;  %v1509_v50 = vrot.slane %v1460_v37, %v4365_v5  ;;  %v3951_v28 = vpop.f32.mrf.mxu1 }
 0x25b   : > { %1565 = vadd.xlane.f32.xlu1 %v1564_v16  ;;  %v1585_v35 = vsel %vm983_vm3, %v1551_v24, 0.0  ;;  %v1489_v27 = vrot.slane %v1410_v62, %v4365_v5  ;;  %v1588_v52 = vsel %vm983_vm3, %v1552_v55, 0.0  ;;  %v1457_v15 = vrot.slane %v1429_v3, %v4687_v42 }
 0x25c   : > { %v1547_v7 = vmul.f32 %v1485_v56, %v4684_v41  ;;  %v1412_v26 = vcombine.high %v1408_v53, %v1408_v53  ;;  %v4205_v45 = vmov 0   ;;  %v1594_v57 = vsel %vm983_vm3, %v1554_v63, 0.0  ;;  %v1093_v42 = vpop.f32.mrf.mxu1 }
 0x25d   : > { %4062 = vset.pattern.permute.xlu0 %v4205_v45  ;;  %4063 = vset.pattern.permute.xlu1 %v4205_v45  ;;  %v1553_v16 = vmul.f32 %v3947_v39, %v1509_v50  ;;  %v1548_v20 = vmul.f32 %v4680_v33, %v1489_v27  ;;  %v1517_v12 = vrot.slane %v1457_v15, %v4365_v5 }
 0x25e   : > { %1586 = vadd.xlane.f32.xlu0 %v1585_v35  ;;  %v1573_v43 = vsel %vm983_vm3, %v1547_v7, 0.0  ;;  %v1493_v41 = vrot.slane %v1412_v26, %v4365_v5  ;;  %v1459_v24 = vcombine.high %v1443_v17, %v1443_v17  ;;  %v1461_v53 = vcombine.high %v1457_v15, %v1457_v15 }
 0x25f   : > { %1571 = vadd.xlane.f32.xlu1 %v1570_v40  ;;  %v1591_v25 = vsel %vm983_vm3, %v1553_v16, 0.0  ;;  %v1576_v3 = vsel %vm983_vm3, %v1548_v20, 0.0  ;;  %v1555_v10 = vmul.f32 %v1517_v12, %v1093_v42  ;;  %v1682_v56 = vrot.slane %v4484_v30, %v4399_v18 }
 0x260   : > { %v1549_v39 = vmul.f32 %v4682_v38, %v1493_v41  ;;  %v1521_v33 = vrot.slane %v1459_v24, %v4365_v5  ;;  %v1525_v62 = vrot.slane %v1461_v53, %v4365_v5  ;;  %v1738_v38 = vrot.slane %v4486_v31, %v4399_v18 }
 0x261   : > { %v1597_v4 = vsel %vm983_vm3, %v1555_v10, 0.0 }
 0x262   : > { %1589 = vadd.xlane.f32.xlu0 %v1588_v52  ;;  %v1579_v37 = vsel %vm983_vm3, %v1549_v39, 0.0  ;;  %v1556_v17 = vmul.f32 %v3950_v54, %v1521_v33  ;;  %v1557_v40 = vmul.f32 %v3951_v28, %v1525_v62  ;;  %v1636_v54 = vpop.permute.xlu1 %1635 }
 0x263   : > { %1568 = vadd.xlane.f32.xlu1 %v1567_v36  ;;  %v1643_v36 = vpop.permute.xlu0 %1642 }
 0x264   : > { %v1600_v35 = vsel %vm983_vm3, %v1556_v17, 0.0  ;;  %v1603_v55 = vsel %vm983_vm3, %v1557_v40, 0.0 }
 0x266   : > { %1595 = vadd.xlane.f32.xlu0 %v1594_v57  ;;  %v1692_v58 = vpop.permute.xlu1 %1691 }
 0x267   : > { %1574 = vadd.xlane.f32.xlu1 %v1573_v43  ;;  %v1650_v50 = vpop.permute.xlu0 %1649 }
 0x26a   : > { %1592 = vadd.xlane.f32.xlu0 %v1591_v25  ;;  %v1699_v63 = vpop.permute.xlu1 %1698 }
 0x26b   : > { %1577 = vadd.xlane.f32.xlu1 %v1576_v3  ;;  %v1657_v52 = vpop.permute.xlu0 %1656 }
 0x26e   : > { %1598 = vadd.xlane.f32.xlu0 %v1597_v4  ;;  %v1706_v27 = vpop.permute.xlu1 %1705 }
 0x26f   : > { %1580 = vadd.xlane.f32.xlu1 %v1579_v37  ;;  %v1664_v15 = vpop.permute.xlu0 %1663 }
 0x272   : > { %1601 = vadd.xlane.f32.xlu0 %v1600_v35  ;;  %v1713_v7 = vpop.permute.xlu1 %1712 }
 0x273   : > { %v1671_v45 = vpop.permute.xlu0 %1670 }
 0x276   : > { %1604 = vadd.xlane.f32.xlu0 %v1603_v55  ;;  %v1720_v26 = vpop.permute.xlu1 %1719 }
 0x277   : > { %v1678_v57 = vpop.permute.xlu0 %1677 }
 0x27a   : > { %v1727_v28 = vpop.permute.xlu1 %1726 }
 0x27e   : > { %v1734_v16 = vpop.permute.xlu1 %1733 }
 0x280   : > { %1740 = vbcast.lane.b32.xlu1 %v1738_v38, 256 }
 0x28c   : > { %1684 = vbcast.lane.b32.xlu0 %v1682_v56, 256 }
 0x2df   : > { %v1560_v31 = vpop.xlane.xlu0 %1559 }
 0x2e0   : > { %v1563_v20 = vpop.xlane.xlu1 %1562  ;;  %v1606_v43 = vmul.f32 0.17677669, %v1560_v31 }
 0x2e1   : > { %v1607_v12 = vmul.f32 0.17677669, %v1563_v20 }
 0x2e2   : > { %v4740_v30 = vadd.f32 %v1636_v54, %v1606_v43 }
 0x2e3   : > { %v4742_v41 = vadd.f32 %v1643_v36, %v1607_v12  ;;  %v1584_v24 = vpop.xlane.xlu0 %1583 }
 0x2e4   : > { %v1566_v42 = vpop.xlane.xlu1 %1565  ;;  %1791 = vperm.xlu0 %4062, %v4740_v30   ;;  %v1614_v4 = vmul.f32 0.17677669, %v1584_v24 }
 0x2e5   : > { %v1608_v25 = vmul.f32 0.17677669, %v1566_v42  ;;  %1794 = vperm.xlu1 %4063, %v4742_v41  }
 0x2e6   : > { %v4755_v55 = vadd.f32 %v1692_v58, %v1614_v4 }
 0x2e7   : > { %v4746_v53 = vadd.f32 %v1650_v50, %v1608_v25  ;;  %v1587_v3 = vpop.xlane.xlu0 %1586 }
 0x2e8   : > { %v1572_v10 = vpop.xlane.xlu1 %1571  ;;  %v1615_v39 = vmul.f32 0.17677669, %v1587_v3 }
 0x2e9   : > { %v1610_v33 = vmul.f32 0.17677669, %v1572_v10  ;;  %1797 = vperm.xlu1 %4063, %v4746_v53  }
 0x2ea   : > { %v4749_v37 = vadd.f32 %v1699_v63, %v1615_v39 }
 0x2eb   : > { %v4751_v17 = vadd.f32 %v1664_v15, %v1610_v33  ;;  %v1590_v62 = vpop.xlane.xlu0 %1589 }
 0x2ec   : > { %v1569_v35 = vpop.xlane.xlu1 %1568  ;;  %v1616_v40 = vmul.f32 0.17677669, %v1590_v62  ;;  %1818 = vperm.xlu0 %4062, %v4749_v37  }
 0x2ed   : > { %1803 = vperm.xlu1 %4063, %v4751_v17   ;;  %v1609_v56 = vmul.f32 0.17677669, %v1569_v35 }
 0x2ee   : > { %v4757_v38 = vadd.f32 %v1706_v27, %v1616_v40 }
 0x2ef   : > { %v1596_v54 = vpop.xlane.xlu0 %1595  ;;  %v4761_v63 = vadd.f32 %v1657_v52, %v1609_v56 }
 0x2f0   : > { %v1575_v36 = vpop.xlane.xlu1 %1574  ;;  %v1618_v50 = vmul.f32 0.17677669, %v1596_v54  ;;  %1821 = vperm.xlu0 %4062, %v4757_v38  }
 0x2f1   : > { %1815 = vperm.xlu1 %4063, %v4755_v55   ;;  %v1611_v31 = vmul.f32 0.17677669, %v1575_v36 }
 0x2f2   : > { %v4763_v15 = vadd.f32 %v1720_v26, %v1618_v50 }
 0x2f3   : > { %v1593_v20 = vpop.xlane.xlu0 %1592  ;;  %v4767_v58 = vadd.f32 %v1671_v45, %v1611_v31 }
 0x2f4   : > { %v1578_v43 = vpop.xlane.xlu1 %1577  ;;  %v1617_v12 = vmul.f32 0.17677669, %v1593_v20  ;;  %1827 = vperm.xlu0 %4062, %v4763_v15  }
 0x2f5   : > { %1800 = vperm.xlu1 %4063, %v4761_v63   ;;  %v1612_v24 = vmul.f32 0.17677669, %v1578_v43 }
 0x2f6   : > { %v4769_v27 = vadd.f32 %v1713_v7, %v1617_v12  ;;  %v4790_v12 = vsub.s32 %v4418_v34, %v4357_v2 }
 0x2f7   : > { %v1599_v42 = vpop.xlane.xlu0 %1598  ;;  %v4773_v52 = vadd.f32 %v1678_v57, %v1612_v24 }
 0x2f8   : > { %v1619_v25 = vmul.f32 0.17677669, %v1599_v42  ;;  %1824 = vperm.xlu0 %4062, %v4769_v27   ;;  %v1581_v3 = vpop.xlane.xlu1 %1580 }
 0x2f9   : > { %1806 = vperm.xlu1 %4063, %v4767_v58   ;;  %v1613_v62 = vmul.f32 0.17677669, %v1581_v3 }
 0x2fa   : > { %v4775_v26 = vadd.f32 %v1727_v28, %v1619_v25 }
 0x2fb   : > { %v1602_v10 = vpop.xlane.xlu0 %1601 }
 0x2fc   : > { %v1620_v39 = vmul.f32 0.17677669, %v1602_v10  ;;  %1830 = vperm.xlu0 %4062, %v4775_v26   ;;  %v1741_v33 = vpop.permute.xlu1 %1740 }
 0x2fd   : > { %1809 = vperm.xlu1 %4063, %v4773_v52  }
 0x2fe   : > { %v4779_v7 = vadd.f32 %v1734_v16, %v1620_v39 }
 0x2ff   : > { %v1605_v45 = vpop.xlane.xlu0 %1604 }
 0x300   : > { %v1621_v4 = vmul.f32 0.17677669, %v1605_v45  ;;  %1833 = vperm.xlu0 %4062, %v4779_v7  }
 0x302   : > { %v4782_v35 = vadd.f32 %v1741_v33, %v1621_v4 }
 0x303   : > { %v1685_v57 = vpop.permute.xlu0 %1684 }
 0x304   : > { %v4784_v28 = vadd.f32 %v1685_v57, %v1613_v62  ;;  %1836 = vperm.xlu0 %4062, %v4782_v35  }
 0x306   : > { %1812 = vperm.xlu1 %4063, %v4784_v28  }
 0x35f   : > { %v1792_v56 = vpop.permute.xlu0 %1791 }
 0x360   : > { %v1795_v40 = vpop.permute.xlu1 %1794  ;;  %v1841_v2 = vrot.slane %v1792_v56, %v4790_v12 }
 0x361   : > { %v1845_v39 = vrot.slane %v1795_v40, %v4790_v12 }
 0x364   : > { %v1798_v54 = vpop.permute.xlu1 %1797 }
 0x365   : > { %v1849_v4 = vrot.slane %v1798_v54, %v4790_v12 }
 0x367   : > { %v1819_v16 = vpop.permute.xlu0 %1818 }
 0x368   : > { %v1804_v36 = vpop.permute.xlu1 %1803  ;;  %v1877_v25 = vrot.slane %v1819_v16, %v4790_v12  ;;  %v1902_v16 = vsel %vm1271_vm4, %v1845_v39, %v1841_v2 }
 0x36b   : > { %v1822_v50 = vpop.permute.xlu0 %1821 }
 0x36c   : > { %v1816_v31 = vpop.permute.xlu1 %1815  ;;  %v1881_v62 = vrot.slane %v1822_v50, %v4790_v12 }
 0x36d   : > { %v1873_v42 = vrot.slane %v1816_v31, %v4790_v12 }
 0x36f   : > { %v1828_v20 = vpop.permute.xlu0 %1827  ;;  %v1909_v45 = vsel %vm1271_vm4, %v1877_v25, %v1873_v42  ;;  %v1857_v25 = vrot.slane %v1804_v36, %v4790_v12 }
 0x370   : > { %v1801_v43 = vpop.permute.xlu1 %1800  ;;  %v1910_v57 = vsel %vm1274_vm5, %v1881_v62, %v1909_v45  ;;  %v1889_v54 = vrot.slane %v1828_v20, %v4790_v12 }
 0x371   : > { %v1853_v34 = vrot.slane %v1801_v43, %v4790_v12 }
 0x373   : > { %v1825_v24 = vpop.permute.xlu0 %1824 }
 0x374   : > { %v1807_v3 = vpop.permute.xlu1 %1806  ;;  %v1885_v33 = vrot.slane %v1825_v24, %v4790_v12  ;;  %v1903_v24 = vsel %vm1274_vm5, %v1849_v4, %v1902_v16 }
 0x375   : > { %v1904_v56 = vsel %vm1277_vm6, %v1853_v34, %v1903_v24  ;;  %v1861_v43 = vrot.slane %v1807_v3, %v4790_v12 }
 0x376   : > { %v1911_v22 = vsel %vm1277_vm6, %v1885_v33, %v1910_v57  ;;  %v1905_v20 = vsel %vm1280_vm7, %v1857_v25, %v1904_v56 }
 0x377   : > { %v1831_v10 = vpop.permute.xlu0 %1830  ;;  %v1912_v45 = vsel %vm1280_vm7, %v1889_v54, %v1911_v22  ;;  %v1906_v34 = vsel %vm1283_vm8, %v1861_v43, %v1905_v20 }
 0x378   : > { %v1893_v40 = vrot.slane %v1831_v10, %v4790_v12  ;;  %v1810_v42 = vpop.permute.xlu1 %1809 }
 0x379   : > { %v1865_v39 = vrot.slane %v1810_v42, %v4790_v12 }
 0x37a   : > { %v1913_v10 = vsel %vm1283_vm8, %v1893_v40, %v1912_v45 }
 0x37b   : > { %v1834_v31 = vpop.permute.xlu0 %1833  ;;  %v1907_v57 = vsel %vm1286_vm9, %v1865_v39, %v1906_v34 }
 0x37c   : > { %v1897_v50 = vrot.slane %v1834_v31, %v4790_v12 }
 0x37e   : > { %v1914_v2 = vsel %vm1286_vm9, %v1897_v50, %v1913_v10 }
 0x37f   : > { %v1837_v33 = vpop.permute.xlu0 %1836 }
 0x380   : > { %v1901_v62 = vrot.slane %v1837_v33, %v4790_v12 }
 0x381   : > { %v1813_v4 = vpop.permute.xlu1 %1812 }
 0x382   : > { %v1869_v3 = vrot.slane %v1813_v4, %v4790_v12  ;;  %v1915_v36 = vsel %vm1289_vm10, %v1901_v62, %v1914_v2 }
 0x383   : > { %v1922_v22 = vsel %vm1918_vm11, %v1915_v36, -inf }
 0x384   : > { %1923 = vmax.xlane.f32.xlu0 %v1922_v22  ;;  %v1908_v31 = vsel %vm1289_vm10, %v1869_v3, %v1907_v57 }
 0x385   : > { %v1919_v16 = vsel %vm1918_vm11, %v1908_v31, -inf }
 0x386   : > { %1920 = vmax.xlane.f32.xlu1 %v1919_v16 }
 0x40d   : > { %v1924_v42 = vpop.xlane.xlu0 %1923 }
 0x40e   : > { %v1966_v50 = vrot.slane %v1924_v42, %v4383_v9  ;;  %v1970_v45 = vrot.slane %v1924_v42, %v4368_v6  ;;  %v1974_v4 = vrot.slane %v1924_v42, %v4380_v8  ;;  %v1978_v3 = vrot.slane %v1924_v42, %v4391_v14 }
 0x40f   : > { %v4824_v40 = vpop.xlane.xlu1 %1920  ;;  %v1982_v31 = vrot.slane %v1924_v42, %v4388_v13 }
 0x410   : > { %v1930_v24 = vrot.slane %v4824_v40, %v4365_v5  ;;  %v1934_v54 = vrot.slane %v4824_v40, %v4383_v9  ;;  %v1938_v56 = vrot.slane %v4824_v40, %v4368_v6  ;;  %v2016_v39 = vsub.f32 %v4749_v37, %v1966_v50 }
 0x411   : > { %v1942_v33 = vrot.slane %v4824_v40, %v4380_v8  ;;  %v2017_v2 = vsub.f32 %v4757_v38, %v1970_v45  ;;  %v2018_v36 = vsub.f32 %v4769_v27, %v1974_v4  ;;  %v1950_v22 = vrot.slane %v4824_v40, %v4388_v13 }
 0x412   : > { %v2007_v43 = vsub.f32 %v4740_v30, %v1930_v24  ;;  %v2008_v25 = vsub.f32 %v4742_v41, %v1934_v54  ;;  %v2009_v10 = vsub.f32 %v4746_v53, %v1938_v56  ;;  %v2041_v34 = vmul.f32 1.442695, %v2016_v39 }
 0x413   : > { %v1946_v30 = vrot.slane %v4824_v40, %v4391_v14  ;;  %v2010_v41 = vsub.f32 %v4761_v63, %v1942_v33  ;;  %v2043_v53 = vmul.f32 1.442695, %v2017_v2  ;;  %v2019_v16 = vsub.f32 %v4763_v15, %v1978_v3 }
 0x414   : > { %v2023_v62 = vmul.f32 1.442695, %v2007_v43  ;;  %v2025_v20 = vmul.f32 1.442695, %v2008_v25  ;;  %v2027_v37 = vmul.f32 1.442695, %v2009_v10  ;;  %v1962_v24 = vrot.slane %v1924_v42, %v4365_v5 }
 0x415   : > { %v2011_v38 = vsub.f32 %v4751_v17, %v1946_v30  ;;  %v2029_v57 = vmul.f32 1.442695, %v2010_v41  ;;  %v2045_v63 = vmul.f32 1.442695, %v2018_v36  ;;  %v2012_v54 = vsub.f32 %v4767_v58, %v1950_v22 }
 0x416   : > { %4084 = vpow2.f32 %v2023_v62  ;;  %v1986_v50 = vrot.slane %v1924_v42, %v4402_v19  ;;  %v2020_v56 = vsub.f32 %v4775_v26, %v1982_v31  ;;  %v2047_v17 = vmul.f32 1.442695, %v2019_v16 }
 0x417   : > { %4086 = vpow2.f32 %v2025_v20  ;;  %v2031_v27 = vmul.f32 1.442695, %v2011_v38  ;;  %v2015_v25 = vsub.f32 %v4755_v55, %v1962_v24  ;;  %v1954_v15 = vrot.slane %v4824_v40, %v4402_v19 }
 0x418   : > { %4088 = vpow2.f32 %v2041_v34  ;;  %v2033_v45 = vmul.f32 1.442695, %v2012_v54  ;;  %v1990_v58 = vrot.slane %v1924_v42, %v4399_v18  ;;  %v2021_v26 = vsub.f32 %v4779_v7, %v1986_v50 }
 0x419   : > { %4090 = vpow2.f32 %v2027_v37  ;;  %v2049_v33 = vmul.f32 1.442695, %v2020_v56  ;;  %v2039_v55 = vmul.f32 1.442695, %v2015_v25  ;;  %v1958_v62 = vrot.slane %v4824_v40, %v4399_v18 }
 0x41a   : > { %4092 = vpow2.f32 %v2043_v53  ;;  %v2013_v20 = vsub.f32 %v4773_v52, %v1954_v15  ;;  %v2022_v42 = vsub.f32 %v4782_v35, %v1990_v58  ;;  %v2051_v7 = vmul.f32 1.442695, %v2021_v26 }
 0x41b   : > { %4094 = vpow2.f32 %v2029_v57  ;;  %v2014_v34 = vsub.f32 %v4784_v28, %v1958_v62 }
 0x41c   : > { %4096 = vpow2.f32 %v2045_v63  ;;  %v2035_v30 = vmul.f32 1.442695, %v2013_v20  ;;  %v2053_v52 = vmul.f32 1.442695, %v2022_v42 }
 0x41d   : > { %4098 = vpow2.f32 %v2031_v27  ;;  %v2037_v35 = vmul.f32 1.442695, %v2014_v34 }
 0x41e   : > { %4100 = vpow2.f32 %v2047_v17 }
 0x41f   : > { %4102 = vpow2.f32 %v2033_v45 }
 0x420   : > { %4104 = vpow2.f32 %v2049_v33 }
 0x421   : > { %4106 = vpow2.f32 %v2039_v55 }
 0x422   : > { %4108 = vpow2.f32 %v2051_v7 }
 0x423   : > { %v4856_v43 = vpop.eup %4084  ;;  %4110 = vpow2.f32 %v2035_v30 }
 0x424   : > { %v4861_v39 = vpop.eup %4086  ;;  %2072 = vperm.xlu0 %4062, %v4856_v43   ;;  %4112 = vpow2.f32 %v2053_v52 }
 0x425   : > { %2075 = vperm.xlu1 %4063, %v4861_v39   ;;  %v4867_v10 = vpop.eup %4088  ;;  %4114 = vpow2.f32 %v2037_v35 }
 0x426   : > { %v4872_v4 = vpop.eup %4090 }
 0x427   : > { %v4877_v2 = vpop.eup %4092 }
 0x428   : > { %2099 = vperm.xlu0 %4062, %v4867_v10   ;;  %v4880_v40 = vpop.eup %4094 }
 0x429   : > { %2078 = vperm.xlu1 %4063, %v4872_v4   ;;  %v4884_v41 = vpop.eup %4096 }
 0x42a   : > { %v4886_v37 = vpop.eup %4098 }
 0x42b   : > { %v4890_v28 = vpop.eup %4100 }
 0x42c   : > { %2102 = vperm.xlu0 %4062, %v4877_v2   ;;  %v4892_v3 = vpop.eup %4102 }
 0x42d   : > { %2081 = vperm.xlu1 %4063, %v4880_v40   ;;  %v4896_v36 = vpop.eup %4104 }
 0x42e   : > { %v4898_v53 = vpop.eup %4106 }
 0x42f   : > { %v4902_v22 = vpop.eup %4108 }
 0x430   : > { %2105 = vperm.xlu0 %4062, %v4884_v41   ;;  %v4904_v38 = vpop.eup %4110 }
 0x431   : > { %2084 = vperm.xlu1 %4063, %v4886_v37   ;;  %v4908_v57 = vpop.eup %4112 }
 0x432   : > { %v4910_v31 = vpop.eup %4114 }
 0x434   : > { %2108 = vperm.xlu0 %4062, %v4890_v28  }
 0x435   : > { %2087 = vperm.xlu1 %4063, %v4892_v3  }
 0x438   : > { %2111 = vperm.xlu0 %4062, %v4896_v36  }
 0x439   : > { %2096 = vperm.xlu1 %4063, %v4898_v53  }
 0x43c   : > { %2114 = vperm.xlu0 %4062, %v4902_v22  }
 0x43d   : > { %2090 = vperm.xlu1 %4063, %v4904_v38  }
 0x440   : > { %2117 = vperm.xlu0 %4062, %v4908_v57  }
 0x441   : > { %2093 = vperm.xlu1 %4063, %v4910_v31  }
 0x49f   : > { %v2073_v16 = vpop.permute.xlu0 %2072 }
 0x4a0   : > { %v2076_v63 = vpop.permute.xlu1 %2075  ;;  %v2122_v26 = vrot.slane %v2073_v16, %v4790_v12 }
 0x4a1   : > { %v2126_v58 = vrot.slane %v2076_v63, %v4790_v12 }
 0x4a3   : > { %v2100_v24 = vpop.permute.xlu0 %2099  ;;  %v2183_v35 = vsel %vm1271_vm4, %v2126_v58, %v2122_v26 }
 0x4a4   : > { %v2079_v54 = vpop.permute.xlu1 %2078  ;;  %v2158_v55 = vrot.slane %v2100_v24, %v4790_v12 }
 0x4a5   : > { %v2130_v20 = vrot.slane %v2079_v54, %v4790_v12 }
 0x4a7   : > { %v2103_v27 = vpop.permute.xlu0 %2102 }
 0x4a8   : > { %v2082_v50 = vpop.permute.xlu1 %2081  ;;  %v2162_v42 = vrot.slane %v2103_v27, %v4790_v12 }
 0x4a9   : > { %v2134_v7 = vrot.slane %v2082_v50, %v4790_v12 }
 0x4ab   : > { %v2106_v56 = vpop.permute.xlu0 %2105 }
 0x4ac   : > { %v2085_v17 = vpop.permute.xlu1 %2084  ;;  %v2166_v34 = vrot.slane %v2106_v56, %v4790_v12 }
 0x4ad   : > { %v2138_v16 = vrot.slane %v2085_v17, %v4790_v12 }
 0x4af   : > { %v2109_v25 = vpop.permute.xlu0 %2108 }
 0x4b0   : > { %v2088_v15 = vpop.permute.xlu1 %2087  ;;  %v2170_v63 = vrot.slane %v2109_v25, %v4790_v12 }
 0x4b1   : > { %v2142_v54 = vrot.slane %v2088_v15, %v4790_v12 }
 0x4b3   : > { %v2112_v45 = vpop.permute.xlu0 %2111 }
 0x4b4   : > { %v2097_v33 = vpop.permute.xlu1 %2096  ;;  %v2174_v50 = vrot.slane %v2112_v45, %v4790_v12 }
 0x4b5   : > { %v2154_v62 = vrot.slane %v2097_v33, %v4790_v12 }
 0x4b7   : > { %v2190_v30 = vsel %vm1271_vm4, %v2158_v55, %v2154_v62  ;;  %v2115_v52 = vpop.permute.xlu0 %2114  ;;  %v2184_v55 = vsel %vm1274_vm5, %v2130_v20, %v2183_v35 }
 0x4b8   : > { %v2191_v24 = vsel %vm1274_vm5, %v2162_v42, %v2190_v30  ;;  %v2091_v33 = vpop.permute.xlu1 %2090  ;;  %v2178_v56 = vrot.slane %v2115_v52, %v4790_v12  ;;  %v2185_v17 = vsel %vm1277_vm6, %v2134_v7, %v2184_v55 }
 0x4b9   : > { %v2192_v27 = vsel %vm1277_vm6, %v2166_v34, %v2191_v24  ;;  %v2146_v58 = vrot.slane %v2091_v33, %v4790_v12  ;;  %v2186_v42 = vsel %vm1280_vm7, %v2138_v16, %v2185_v17 }
 0x4ba   : > { %v2193_v62 = vsel %vm1280_vm7, %v2170_v63, %v2192_v27  ;;  %v2187_v45 = vsel %vm1283_vm8, %v2142_v54, %v2186_v42 }
 0x4bb   : > { %v2194_v25 = vsel %vm1283_vm8, %v2174_v50, %v2193_v62  ;;  %v2118_v26 = vpop.permute.xlu0 %2117  ;;  %v2188_v52 = vsel %vm1286_vm9, %v2146_v58, %v2187_v45 }
 0x4bc   : > { %v2094_v15 = vpop.permute.xlu1 %2093  ;;  %v2182_v34 = vrot.slane %v2118_v26, %v4790_v12  ;;  %v2195_v20 = vsel %vm1286_vm9, %v2178_v56, %v2194_v25 }
 0x4bd   : > { %v2150_v30 = vrot.slane %v2094_v15, %v4790_v12 }
 0x4be   : > { %v2196_v35 = vsel %vm1289_vm10, %v2182_v34, %v2195_v20 }
 0x4bf   : > { %v2189_v7 = vsel %vm1289_vm10, %v2150_v30, %v2188_v52  ;;  %v2202_v63 = vsel %vm1918_vm11, %v2196_v35, 0.0 }
 0x4c0   : > { %v2199_v24 = vsel %vm1918_vm11, %v2189_v7, 0.0  ;;  %2203 = vadd.xlane.f32.xlu0 %v2202_v63 }
 0x4c1   : > { %2200 = vadd.xlane.f32.xlu1 %v2199_v24 }
 0x549   : > { %v2204_v16 = vpop.xlane.xlu0 %2203 }
 0x54a   : > { %v2201_v33 = vpop.xlane.xlu1 %2200  ;;  %4116 = vrcp.f32 %v2204_v16 }
 0x54b   : > { %4118 = vrcp.f32 %v2201_v33 }
 0x557   : > { %v4117_v54 = vpop.eup %4116 }
 0x558   : > { %v4119_v12 = vpop.eup %4118  ;;  %v2248_v58 = vrot.slane %v4117_v54, %v4383_v9  ;;  %v2252_v42 = vrot.slane %v4117_v54, %v4368_v6  ;;  %v2264_v45 = vrot.slane %v4117_v54, %v4388_v13  ;;  %v2268_v30 = vrot.slane %v4117_v54, %v4402_v19 }
 0x559   : > { %v2216_v27 = vrot.slane %v4119_v12, %v4383_v9  ;;  %v2212_v50 = vrot.slane %v4119_v12, %v4365_v5  ;;  %v2220_v62 = vrot.slane %v4119_v12, %v4368_v6  ;;  %v2224_v26 = vrot.slane %v4119_v12, %v4380_v8 }
 0x55a   : > { %v2298_v25 = vmul.f32 %v4867_v10, %v2248_v58  ;;  %v2228_v15 = vrot.slane %v4119_v12, %v4391_v14  ;;  %v2256_v9 = vrot.slane %v4117_v54, %v4380_v8  ;;  %v2232_v34 = vrot.slane %v4119_v12, %v4388_v13 }
 0x55b   : > { %v2290_v56 = vmul.f32 %v4861_v39, %v2216_v27  ;;  %v2289_v55 = vmul.f32 %v4856_v43, %v2212_v50  ;;  %v2291_v17 = vmul.f32 %v4872_v4, %v2220_v62  ;;  %v2292_v39 = vmul.f32 %v4880_v40, %v2224_v26 }
 0x55c   : > { %v2299_v43 = vmul.f32 %v4877_v2, %v2252_v42  ;;  %v2293_v4 = vmul.f32 %v4886_v37, %v2228_v15  ;;  %v2300_v10 = vmul.f32 %v4884_v41, %v2256_v9  ;;  %v2260_v6 = vrot.slane %v4117_v54, %v4391_v14 }
 0x55d   : > { %2312 = vperm.xlu1 %4063, %v2290_v56   ;;  %2307 = vperm.xlu0 %4062, %v2289_v55   ;;  %v2294_v40 = vmul.f32 %v4892_v3, %v2232_v34  ;;  %v2244_v8 = vrot.slane %v4117_v54, %v4365_v5  ;;  %v2302_v37 = vmul.f32 %v4896_v36, %v2264_v45 }
 0x55e   : > { %v2301_v2 = vmul.f32 %v4890_v28, %v2260_v6  ;;  %v2236_v14 = vrot.slane %v4119_v12, %v4402_v19  ;;  %v2303_v3 = vmul.f32 %v4902_v22, %v2268_v30  ;;  %v2272_v13 = vrot.slane %v4117_v54, %v4399_v18  ;;  %v4074_v19 = vld [vmem:[%s5629_s7 + $0x8] sm:$0xff]  }
 0x55f   : > { %v2297_v41 = vmul.f32 %v4898_v53, %v2244_v8  ;;  %v2240_v5 = vrot.slane %v4119_v12, %v4399_v18  ;;  %3981 = vmatpush3.bf16.msra.mxu0 %v4074_v19  ;;  %v5665_v22 = vmov 0.0   ;;  %v3958_v18 = vpop.f32.mrf.mxu1 }
 0x560   : > { %v2295_v28 = vmul.f32 %v4904_v38, %v2236_v14  ;;  %v2304_v36 = vmul.f32 %v4908_v57, %v2272_v13  ;;  %3982 = vmatprep.subr.bf16.mxu0 %v5665_v22  ;;  %v4075_v38 = vld [vmem:[%s5629_s7] sm:$0xff]  }
 0x561   : > { %2317 = vperm.xlu1 %4063, %v2291_v17   ;;  %2352 = vperm.xlu0 %4062, %v2298_v25   ;;  %v2296_v53 = vmul.f32 %v4910_v31, %v2240_v5  ;;  %v1155_v57 = vpop.f32.mrf.mxu1 }
 0x563   : > { %3983 = vmatpush3.bf16.msra.mxu0 %v4075_v38  ;;  %v3959_v20 = vpop.f32.mrf.mxu1 }
 0x564   : > { %3988 = vmatprep.subr.bf16.mxu0 %v5665_v22 }
 0x565   : > { %2322 = vperm.xlu1 %4063, %v2292_v39   ;;  %2357 = vperm.xlu0 %4062, %v2299_v43   ;;  %v1158_v31 = vpop.f32.mrf.mxu1 }
 0x567   : > { %v4986_v52 = vpop.f32.mrf.mxu1 }
 0x569   : > { %2327 = vperm.xlu1 %4063, %v2293_v4   ;;  %2362 = vperm.xlu0 %4062, %v2300_v10   ;;  %v1171_v35 = vpop.f32.mrf.mxu1 }
 0x56b   : > { %v4988_v7 = vpop.f32.mrf.mxu1 }
 0x56d   : > { %2332 = vperm.xlu1 %4063, %v2294_v40   ;;  %2367 = vperm.xlu0 %4062, %v2301_v2   ;;  %v4990_v63 = vpop.f32.mrf.mxu1 }
 0x56f   : > { %v3966_v24 = vpop.f32.mrf.mxu1 }
 0x571   : > { %2372 = vperm.xlu0 %4062, %v2302_v37   ;;  %2347 = vperm.xlu1 %4063, %v2297_v41   ;;  %v4992_v16 = vpop.f32.mrf.mxu1 }
 0x573   : > { %v3967_v33 = vpop.f32.mrf.mxu1 }
 0x575   : > { %2377 = vperm.xlu0 %4062, %v2303_v3   ;;  %2337 = vperm.xlu1 %4063, %v2295_v28   ;;  %v1190_v56 = vpop.f32.mrf.mxu1 }
 0x577   : > { %v5000_v38 = vpop.f32.mrf.mxu1 }
 0x579   : > { %2382 = vperm.xlu0 %4062, %v2304_v36   ;;  %2342 = vperm.xlu1 %4063, %v2296_v53  }
 0x5d8   : > { %v2313_v54 = vpop.permute.xlu1 %2312  ;;  %v2308_v12 = vpop.permute.xlu0 %2307 }
 0x5d9   : > { %v2386_v27 = vmul.f32 %v2313_v54, %v1158_v31  ;;  %v2385_v50 = vmul.f32 %v2308_v12, %v1155_v57 }
 0x5db   : > { %v2408_v55 = vsel %vm983_vm3, %v2386_v27, 0.0  ;;  %v2401_v62 = vsel %vm983_vm3, %v2385_v50, 0.0 }
 0x5dc   : > { %v2409_v58 = vrot.slane %v2408_v55, 4  ;;  %v2402_v17 = vrot.slane %v2401_v62, 4  ;;  %v2318_v25 = vpop.permute.xlu1 %2317  ;;  %v2353_v26 = vpop.permute.xlu0 %2352 }
 0x5dd   : > { %v2387_v42 = vmul.f32 %v3958_v18, %v2318_v25  ;;  %v2394_v39 = vmul.f32 %v2353_v26, %v1190_v56  ;;  %v1203_v26 = vpop.f32.mrf.mxu1 }
 0x5de   : > { %v2410_v43 = vadd.f32 %v2409_v58, %v2408_v55  ;;  %v2403_v15 = vadd.f32 %v2402_v17, %v2401_v62 }
 0x5df   : > { %v2415_v9 = vsel %vm983_vm3, %v2387_v42, 0.0  ;;  %v2464_v4 = vsel %vm983_vm3, %v2394_v39, 0.0 }
 0x5e0   : > { %v2411_v10 = vrot.slane %v2410_v43, 2  ;;  %v2404_v34 = vrot.slane %v2403_v15, 2  ;;  %v2416_v6 = vrot.slane %v2415_v9, 4  ;;  %v2465_v40 = vrot.slane %v2464_v4, 4  ;;  %v2323_v2 = vpop.permute.xlu1 %2322  ;;  %v2358_v45 = vpop.permute.xlu0 %2357 }
 0x5e1   : > { %v2388_v8 = vmul.f32 %v3959_v20, %v2323_v2  ;;  %v2395_v37 = vmul.f32 %v3966_v24, %v2358_v45 }
 0x5e2   : > { %v2412_v41 = vadd.f32 %v2411_v10, %v2410_v43  ;;  %v2405_v30 = vadd.f32 %v2404_v34, %v2403_v15  ;;  %v2417_v14 = vadd.f32 %v2416_v6, %v2415_v9  ;;  %v2466_v3 = vadd.f32 %v2465_v40, %v2464_v4  ;;  %v3971_v40 = vpop.f32.mrf.mxu1 }
 0x5e3   : > { %v2422_v28 = vsel %vm983_vm3, %v2388_v8, 0.0  ;;  %v2471_v13 = vsel %vm983_vm3, %v2395_v37, 0.0 }
 0x5e4   : > { %v2418_v5 = vrot.slane %v2417_v14, 2  ;;  %v2467_v36 = vrot.slane %v2466_v3, 2  ;;  %v2328_v53 = vpop.permute.xlu1 %2327  ;;  %v2363_v19 = vpop.permute.xlu0 %2362  ;;  %v2423_v18 = vrot.slane %v2422_v28, 4  ;;  %v2472_v57 = vrot.slane %v2471_v13, 4 }
 0x5e5   : > { %v2389_v31 = vmul.f32 %v2328_v53, %v1171_v35  ;;  %v2396_v54 = vmul.f32 %v3967_v33, %v2363_v19  ;;  %v2413_v20 = vrot.slane %v2412_v41, 1  ;;  %v2406_v24 = vrot.slane %v2405_v30, 1 }
 0x5e6   : > { %v2419_v12 = vadd.f32 %v2418_v5, %v2417_v14  ;;  %v2468_v27 = vadd.f32 %v2467_v36, %v2466_v3  ;;  %v2424_v50 = vadd.f32 %v2423_v18, %v2422_v28  ;;  %v2473_v56 = vadd.f32 %v2472_v57, %v2471_v13 }
 0x5e7   : > { %v2429_v55 = vsel %vm983_vm3, %v2389_v31, 0.0  ;;  %v2478_v62 = vsel %vm983_vm3, %v2396_v54, 0.0  ;;  %v2414_v35 = vadd.f32 %v2413_v20, %v2412_v41  ;;  %v2407_v33 = vadd.f32 %v2406_v24, %v2405_v30 }
 0x5e8   : > { %v2420_v58 = vrot.slane %v2419_v12, 1  ;;  %v2333_v17 = vpop.permute.xlu1 %2332  ;;  %v2368_v25 = vpop.permute.xlu0 %2367  ;;  %v2469_v42 = vrot.slane %v2468_v27, 1  ;;  %v2425_v39 = vrot.slane %v2424_v50, 2  ;;  %v2430_v43 = vrot.slane %v2429_v55, 4 }
 0x5e9   : > { %v2479_v15 = vrot.slane %v2478_v62, 4  ;;  %v2474_v9 = vrot.slane %v2473_v56, 2  ;;  %v2390_v10 = vmul.f32 %v2333_v17, %v4990_v63  ;;  %v2397_v3 = vmul.f32 %v2368_v25, %v1203_v26  ;;  %v1206_v63 = vpop.f32.mrf.mxu1 }
 0x5ea   : > { %v2421_v2 = vadd.f32 %v2420_v58, %v2419_v12  ;;  %v2470_v45 = vadd.f32 %v2469_v42, %v2468_v27  ;;  %v2426_v8 = vadd.f32 %v2425_v39, %v2424_v50  ;;  %v2431_v37 = vadd.f32 %v2430_v43, %v2429_v55 }
 0x5eb   : > { %v2480_v4 = vadd.f32 %v2479_v15, %v2478_v62  ;;  %v2436_v14 = vsel %vm983_vm3, %v2390_v10, 0.0  ;;  %v2514_v28 = vpack.c.bf16 %v2414_v35, %v2414_v35  ;;  %v2513_v13 = vpack.c.bf16 %v2407_v33, %v2407_v33 }
 0x5ec   : > { %v2348_v34 = vpop.permute.xlu1 %2347  ;;  %v2373_v6 = vpop.permute.xlu0 %2372  ;;  %v2475_v5 = vadd.f32 %v2474_v9, %v2473_v56  ;;  %v2437_v41 = vrot.slane %v2436_v14, 4  ;;  %v2485_v30 = vsel %vm983_vm3, %v2397_v3, 0.0  ;;  %v2515_v19 = vpack.c.bf16 %v2421_v2, %v2421_v2 }
 0x5ed   : > { %v2481_v36 = vrot.slane %v2480_v4, 2  ;;  %v2393_v53 = vmul.f32 %v2348_v34, %v4992_v16  ;;  %v2522_v18 = vpack.c.bf16 %v2470_v45, %v2470_v45  ;;  %v2427_v57 = vrot.slane %v2426_v8, 1 }
 0x5ee   : > { %v2432_v31 = vrot.slane %v2431_v37, 2  ;;  %v2438_v54 = vadd.f32 %v2437_v41, %v2436_v14  ;;  %v2486_v20 = vrot.slane %v2485_v30, 4  ;;  %v2398_v12 = vmul.f32 %v2373_v6, %v1206_v63 }
 0x5ef   : > { %v2457_v24 = vsel %vm983_vm3, %v2393_v53, 0.0  ;;  %v5009_v55 = vunpack.c.l.b16 %v2514_v28  ;;  %v5011_v56 = vunpack.c.l.b16 %v2513_v13  ;;  %v2476_v62 = vrot.slane %v2475_v5, 1 }
 0x5f0   : > { %v2338_v27 = vpop.permute.xlu1 %2337  ;;  %v2378_v50 = vpop.permute.xlu0 %2377  ;;  %v2482_v58 = vadd.f32 %v2481_v36, %v2480_v4  ;;  %v2439_v17 = vrot.slane %v2438_v54, 2  ;;  %v2487_v16 = vadd.f32 %v2486_v20, %v2485_v30  ;;  %v2458_v25 = vrot.slane %v2457_v24, 4 }
 0x5f1   : > { %v2492_v26 = vsel %vm983_vm3, %v2398_v12, 0.0  ;;  %v5014_v42 = vunpack.c.l.b16 %v2515_v19  ;;  %v5016_v39 = vunpack.c.l.b16 %v2522_v18  ;;  %v5018_v43 = vadd.f32 %v2427_v57, %v2426_v8 }
 0x5f2   : > { %v2493_v15 = vrot.slane %v2492_v26, 4  ;;  %v2433_v35 = vadd.f32 %v2432_v31, %v2431_v37  ;;  %v2488_v33 = vrot.slane %v2487_v16, 2  ;;  %v2459_v9 = vadd.f32 %v2458_v25, %v2457_v24 }
 0x5f3   : > { %v2391_v10 = vmul.f32 %v4986_v52, %v2338_v27  ;;  %v2477_v34 = vadd.f32 %v2476_v62, %v2475_v5  ;;  %v2483_v6 = vrot.slane %v2482_v58, 1  ;;  %v2399_v2 = vmul.f32 %v5000_v38, %v2378_v50 }
 0x5f4   : > { %v2494_v4 = vadd.f32 %v2493_v15, %v2492_v26  ;;  %v2440_v45 = vadd.f32 %v2439_v17, %v2438_v54  ;;  %v2489_v14 = vadd.f32 %v2488_v33, %v2487_v16  ;;  %v2460_v3 = vrot.slane %v2459_v9, 2  ;;  %v2343_v13 = vpop.permute.xlu1 %2342  ;;  %v2383_v36 = vpop.permute.xlu0 %2382 }
 0x5f5   : > { %v2443_v28 = vsel %vm983_vm3, %v2391_v10, 0.0  ;;  %v2516_v8 = vpack.c.bf16 %v5018_v43, %v5018_v43  ;;  %v2499_v30 = vsel %vm983_vm3, %v2399_v2, 0.0  ;;  %v2434_v52 = vrot.slane %v2433_v35, 1 }
 0x5f6   : > { %v2495_v37 = vrot.slane %v2494_v4, 2  ;;  %v2444_v41 = vrot.slane %v2443_v28, 4  ;;  %v2490_v5 = vrot.slane %v2489_v14, 1  ;;  %v2461_v53 = vadd.f32 %v2460_v3, %v2459_v9 }
 0x5f7   : > { %v2500_v63 = vrot.slane %v2499_v30, 4  ;;  %v2392_v18 = vmul.f32 %v4988_v7, %v2343_v13  ;;  %v2400_v57 = vmul.f32 %v3971_v40, %v2383_v36  ;;  %v2484_v31 = vadd.f32 %v2483_v6, %v2482_v58 }
 0x5f8   : > { %v2496_v19 = vadd.f32 %v2495_v37, %v2494_v4  ;;  %v2445_v38 = vadd.f32 %v2444_v41, %v2443_v28  ;;  %v2441_v54 = vrot.slane %v2440_v45, 1  ;;  %v2462_v20 = vrot.slane %v2461_v53, 1 }
 0x5f9   : > { %v2501_v24 = vadd.f32 %v2500_v63, %v2499_v30  ;;  %v2450_v50 = vsel %vm983_vm3, %v2392_v18, 0.0  ;;  %v2506_v62 = vsel %vm983_vm3, %v2400_v57, 0.0  ;;  %v2523_v17 = vpack.c.bf16 %v2477_v34, %v2477_v34 }
 0x5fa   : > { %v2497_v12 = vrot.slane %v2496_v19, 1  ;;  %v2446_v27 = vrot.slane %v2445_v38, 2  ;;  %v2491_v16 = vadd.f32 %v2490_v5, %v2489_v14  ;;  %v2463_v25 = vadd.f32 %v2462_v20, %v2461_v53 }
 0x5fb   : > { %v2502_v26 = vrot.slane %v2501_v24, 2  ;;  %v2435_v43 = vadd.f32 %v2434_v52, %v2433_v35  ;;  %v2451_v33 = vrot.slane %v2450_v50, 4  ;;  %v2507_v9 = vrot.slane %v2506_v62, 4 }
 0x5fc   : > { %v2447_v15 = vadd.f32 %v2446_v27, %v2445_v38  ;;  %v2524_v7 = vpack.c.bf16 %v2484_v31, %v2484_v31  ;;  %v2442_v40 = vadd.f32 %v2441_v54, %v2440_v45  ;;  %v2521_v58 = vpack.c.bf16 %v2463_v25, %v2463_v25 }
 0x5fd   : > { %v2503_v10 = vadd.f32 %v2502_v26, %v2501_v24  ;;  %v2498_v6 = vadd.f32 %v2497_v12, %v2496_v19  ;;  %v2452_v2 = vadd.f32 %v2451_v33, %v2450_v50  ;;  %v2508_v3 = vadd.f32 %v2507_v9, %v2506_v62 }
 0x5fe   : > { %v2448_v4 = vrot.slane %v2447_v15, 1  ;;  %v2559_v28 = vunpack.c.l.b16 %v2523_v17  ;;  %v2525_v13 = vpack.c.bf16 %v2491_v16, %v2491_v16  ;;  %v2557_v36 = vunpack.c.l.b16 %v2521_v58 }
 0x5ff   : > { %v2504_v37 = vrot.slane %v2503_v10, 1  ;;  %v2517_v34 = vpack.c.bf16 %v2435_v43, %v2435_v43  ;;  %v2453_v41 = vrot.slane %v2452_v2, 2  ;;  %v2509_v30 = vrot.slane %v2508_v3, 2 }
 0x600   : > { %v2449_v14 = vadd.f32 %v2448_v4, %v2447_v15  ;;  %v2560_v35 = vunpack.c.l.b16 %v2524_v7  ;;  %v2518_v52 = vpack.c.bf16 %v2442_v40, %v2442_v40  ;;  %v2572_v5 = vsel %vm1271_vm4, %v5016_v39, %v2557_v36 }
 0x601   : > { %v2505_v45 = vadd.f32 %v2504_v37, %v2503_v10  ;;  %v2573_v53 = vsel %vm1274_vm5, %v2559_v28, %v2572_v5  ;;  %v2526_v63 = vpack.c.bf16 %v2498_v6, %v2498_v6  ;;  %v2454_v19 = vadd.f32 %v2453_v41, %v2452_v2 }
 0x602   : > { %v2510_v38 = vadd.f32 %v2509_v30, %v2508_v3  ;;  %v2561_v18 = vunpack.c.l.b16 %v2525_v13  ;;  %v2574_v57 = vsel %vm1277_vm6, %v2560_v35, %v2573_v53  ;;  %v2519_v31 = vpack.c.bf16 %v2449_v14, %v2449_v14 }
 0x603   : > { %v2527_v54 = vpack.c.bf16 %v2505_v45, %v2505_v45  ;;  %v2552_v20 = vunpack.c.l.b16 %v2516_v8  ;;  %v2455_v24 = vrot.slane %v2454_v19, 1  ;;  %v2565_v27 = vsel %vm1271_vm4, %v5009_v55, %v5011_v56 }
 0x604   : > { %v2511_v12 = vrot.slane %v2510_v38, 1  ;;  %v2553_v50 = vunpack.c.l.b16 %v2517_v34  ;;  %v2575_v39 = vsel %vm1280_vm7, %v2561_v18, %v2574_v57  ;;  %v2554_v62 = vunpack.c.l.b16 %v2518_v52 }
 0x605   : > { %v2562_v17 = vunpack.c.l.b16 %v2526_v63  ;;  %v2456_v16 = vadd.f32 %v2455_v24, %v2454_v19  ;;  %v2566_v26 = vsel %vm1274_vm5, %v5014_v42, %v2565_v27  ;;  %v2555_v43 = vunpack.c.l.b16 %v2519_v31 }
 0x606   : > { %v2512_v25 = vadd.f32 %v2511_v12, %v2510_v38  ;;  %v2563_v15 = vunpack.c.l.b16 %v2527_v54  ;;  %v2567_v8 = vsel %vm1277_vm6, %v2552_v20, %v2566_v26 }
 0x607   : > { %v2576_v33 = vsel %vm1283_vm8, %v2562_v17, %v2575_v39  ;;  %v2520_v9 = vpack.c.bf16 %v2456_v16, %v2456_v16  ;;  %v2568_v55 = vsel %vm1280_vm7, %v2553_v50, %v2567_v8 }
 0x608   : > { %v2528_v7 = vpack.c.bf16 %v2512_v25, %v2512_v25  ;;  %v2569_v56 = vsel %vm1283_vm8, %v2554_v62, %v2568_v55  ;;  %v2577_v6 = vsel %vm1286_vm9, %v2563_v15, %v2576_v33 }
 0x609   : > { %v2556_v40 = vunpack.c.l.b16 %v2520_v9  ;;  %v2570_v10 = vsel %vm1286_vm9, %v2555_v43, %v2569_v56 }
 0x60a   : > { %v2564_v58 = vunpack.c.l.b16 %v2528_v7 }
 0x60b   : > { %v2571_v42 = vsel %vm1289_vm10, %v2556_v40, %v2570_v10 }
 0x60c   : > { %v2578_v4 = vsel %vm1289_vm10, %v2564_v58, %v2577_v6 }
 0x60d   : > { %v2579_v2 = vpack.c.b16 %v2578_v4, %v2571_v42 }
 0x60f   : > { %3985 = vmatmul.mubr.msk.bf16.vlgmr.msra.gmra.mxu0 %vm983_vm3, %v2579_v2 }
 0x610   : > { %3992 = vmatprep.mubr.msk.bf16.mxu0 %vm4203_vm2, %v5665_v22 }
 0x6cf   : > { %v2629_v3 = vpop.f32.mrf.mxu0 }
 0x6d0   : > { %v2638_v28 = vrot.slane %v2629_v3, 1  ;;  %v2639_v13 = vrot.slane %v2629_v3, 2  ;;  %v2640_v36 = vrot.slane %v2629_v3, 3  ;;  %v2641_v34 = vrot.slane %v2629_v3, 4 }
 0x6d1   : > { %v3986_v37 = vpop.f32.mrf.mxu0  ;;  %v2642_v14 = vrot.slane %v2629_v3, 5  ;;  %v2643_v41 = vrot.slane %v2629_v3, 6  ;;  %v2644_v30 = vrot.slane %v2629_v3, 7  ;;  %v5060_v45 = vadd.f32 %v2629_v3, %v4515_v48 }
 0x6d2   : > { %v5051_v35 = vadd.f32 %v2638_v28, %v4518_v49  ;;  %v5054_v52 = vadd.f32 %v2639_v13, %v4521_v51  ;;  %v5057_v5 = vadd.f32 %v2640_v36, %v4512_v47  ;;  %v5063_v63 = vadd.f32 %v2641_v34, %v4544_v60 }
 0x6d3   : > { %v2632_v53 = vpop.f32.mrf.mxu0  ;;  %v5066_v57 = vadd.f32 %v2642_v14, %v4547_v61  ;;  %v5069_v51 = vadd.f32 %v2643_v41, %v4552_v1  ;;  %v5072_v47 = vadd.f32 %v2644_v30, %v4541_v59 }
 0x6d4   : > { %v2645_v19 = vrot.slane %v2632_v53, 1  ;;  %v2646_v38 = vrot.slane %v2632_v53, 2  ;;  %v2647_v18 = vrot.slane %v2632_v53, 3  ;;  %v2702_v48 = vrot.slane %v5051_v35, 7 }
 0x6d5   : > { %v3987_v49 = vpop.f32.mrf.mxu0  ;;  %v2704_v31 = vrot.slane %v5054_v52, 6  ;;  %v5077_v60 = vadd.f32 %v2632_v53, %v4577_v21  ;;  %v2706_v61 = vrot.slane %v5057_v5, 5  ;;  %v2708_v20 = vrot.slane %v5063_v63, 4 }
 0x6d6   : > { %v5080_v54 = vadd.f32 %v2645_v19, %v4587_v29  ;;  %v2703_v1 = vsel %vm1271_vm4, %v2702_v48, %v5060_v45  ;;  %v2648_v24 = vrot.slane %v2632_v53, 4  ;;  %v2649_v59 = vrot.slane %v2632_v53, 5 }
 0x6d7   : > { %v2650_v12 = vrot.slane %v2632_v53, 6  ;;  %v2705_v27 = vsel %vm1274_vm5, %v2704_v31, %v2703_v1  ;;  %v2651_v50 = vrot.slane %v2632_v53, 7  ;;  %v5088_v39 = vadd.f32 %v2646_v38, %v4565_v11 }
 0x6d8   : > { %v5091_v21 = vadd.f32 %v2647_v18, %v4580_v23  ;;  %v2707_v29 = vsel %vm1277_vm6, %v2706_v61, %v2705_v27  ;;  %v2710_v62 = vrot.slane %v5066_v57, 3  ;;  %v2712_v17 = vrot.slane %v5069_v51, 2 }
 0x6d9   : > { %v5097_v16 = vadd.f32 %v2648_v24, %v4608_v46  ;;  %v2709_v25 = vsel %vm1280_vm7, %v2708_v20, %v2707_v29  ;;  %v5101_v26 = vadd.f32 %v2649_v59, %v4631_v32  ;;  %v2716_v11 = vrot.slane %v5080_v54, 7 }
 0x6da   : > { %v2718_v43 = vrot.slane %v5088_v39, 6  ;;  %v2711_v23 = vsel %vm1283_vm8, %v2710_v62, %v2709_v25  ;;  %v2714_v15 = vrot.slane %v5072_v47, 1  ;;  %v5108_v8 = vadd.f32 %v2650_v12, %v4605_v44 }
 0x6db   : > { %v2713_v33 = vsel %vm1286_vm9, %v2712_v17, %v2711_v23  ;;  %v5112_v46 = vadd.f32 %v2651_v50, %v4620_v0  ;;  %v2717_v32 = vsel %vm1271_vm4, %v2716_v11, %v5077_v60  ;;  %v2720_v9 = vrot.slane %v5091_v21, 5 }
 0x6dc   : > { %v2715_v7 = vsel %vm1289_vm10, %v2714_v15, %v2713_v33  ;;  %v2719_v55 = vsel %vm1274_vm5, %v2718_v43, %v2717_v32  ;;  %v2722_v56 = vrot.slane %v5097_v16, 4  ;;  %v2724_v58 = vrot.slane %v5101_v26, 3 }
 0x6dd   : > { %v2732_v40 = vsel %vm983_vm3, %v2715_v7, 0.0  ;;  %v2721_v44 = vsel %vm1277_vm6, %v2720_v9, %v2719_v55  ;;  %v2726_v10 = vrot.slane %v5108_v8, 2  ;;  %v2728_v42 = vrot.slane %v5112_v46, 1 }
 0x6de   : > { %2733 = vadd.xlane.f32.xlu1 %v2732_v40  ;;  %v2723_v0 = vsel %vm1280_vm7, %v2722_v56, %v2721_v44 }
 0x6df   : > { %v2725_v6 = vsel %vm1283_vm8, %v2724_v58, %v2723_v0 }
 0x6e0   : > { %v2727_v4 = vsel %vm1286_vm9, %v2726_v10, %v2725_v6 }
 0x6e1   : > { %v2729_v2 = vsel %vm1289_vm10, %v2728_v42, %v2727_v4 }
 0x6e2   : > { %v2735_v3 = vsel %vm983_vm3, %v2729_v2, 0.0 }
 0x6e3   : > { %2736 = vadd.xlane.f32.xlu0 %v2735_v3 }
 0x767   : > { %v2734_v28 = vpop.xlane.xlu1 %2733 }
 0x768   : > { %v2739_v13 = vmul.f32 0.03125, %v2734_v28 }
 0x76a   : > { %v2743_v36 = vrot.slane %v2739_v13, 1  ;;  %v2744_v37 = vrot.slane %v2739_v13, 2  ;;  %v2745_v34 = vrot.slane %v2739_v13, 3  ;;  %v2746_v14 = vrot.slane %v2739_v13, 4 }
 0x76b   : > { %v2747_v41 = vrot.slane %v2739_v13, 5  ;;  %v2748_v30 = vrot.slane %v2739_v13, 6  ;;  %v2749_v53 = vrot.slane %v2739_v13, 7  ;;  %v5131_v19 = vsub.f32 %v5060_v45, %v2739_v13 }
 0x76c   : > { %v2737_v38 = vpop.xlane.xlu0 %2736  ;;  %v5134_v18 = vsub.f32 %v5051_v35, %v2743_v36  ;;  %v5137_v49 = vsub.f32 %v5054_v52, %v2744_v37  ;;  %v5140_v48 = vsub.f32 %v5057_v5, %v2745_v34  ;;  %v5143_v31 = vsub.f32 %v5063_v63, %v2746_v14 }
 0x76d   : > { %v2740_v61 = vmul.f32 0.03125, %v2737_v38  ;;  %v5146_v20 = vsub.f32 %v5066_v57, %v2747_v41  ;;  %v5149_v45 = vsub.f32 %v5069_v51, %v2748_v30  ;;  %v5152_v1 = vsub.f32 %v5072_v47, %v2749_v53 }
 0x76e   : > { %v2790_v35 = vmul.f32 %v5134_v18, %v5134_v18  ;;  %v2791_v52 = vmul.f32 %v5137_v49, %v5137_v49  ;;  %v2792_v5 = vmul.f32 %v5140_v48, %v5140_v48  ;;  %v2789_v63 = vmul.f32 %v5131_v19, %v5131_v19 }
 0x76f   : > { %v2793_v57 = vmul.f32 %v5143_v31, %v5143_v31  ;;  %v2794_v51 = vmul.f32 %v5146_v20, %v5146_v20  ;;  %v2795_v47 = vmul.f32 %v5149_v45, %v5149_v45  ;;  %v2796_v24 = vmul.f32 %v5152_v1, %v5152_v1 }
 0x770   : > { %v2821_v59 = vrot.slane %v2790_v35, 7  ;;  %v2823_v12 = vrot.slane %v2791_v52, 6  ;;  %v2750_v27 = vrot.slane %v2740_v61, 1  ;;  %v2825_v50 = vrot.slane %v2792_v5, 5 }
 0x771   : > { %v2827_v29 = vrot.slane %v2793_v57, 4  ;;  %v2829_v62 = vrot.slane %v2794_v51, 3  ;;  %v2831_v17 = vrot.slane %v2795_v47, 2  ;;  %v2751_v11 = vrot.slane %v2740_v61, 2  ;;  %v4076_v47 = vld [vmem:[%s5632_s10 + $0x8] sm:$0xff]  }
 0x772   : > { %v2822_v25 = vsel %vm1271_vm4, %v2821_v59, %v2789_v63  ;;  %v2752_v43 = vrot.slane %v2740_v61, 3  ;;  %v2753_v23 = vrot.slane %v2740_v61, 4  ;;  %v2754_v33 = vrot.slane %v2740_v61, 5  ;;  %3989 = vmatpush3.bf16.msra.mxu0 %v4076_v47 }
 0x773   : > { %v2824_v15 = vsel %vm1274_vm5, %v2823_v12, %v2822_v25  ;;  %v2755_v32 = vrot.slane %v2740_v61, 6  ;;  %v2756_v9 = vrot.slane %v2740_v61, 7  ;;  %v5174_v55 = vsub.f32 %v5077_v60, %v2740_v61  ;;  %3990 = vmatprep.subr.bf16.mxu0 %v5665_v22  ;;  %v3827_v25 = vld [vmem:[%s5630_s8] ss:$0 sm:$0xff] }
 0x774   : > { %v2826_v7 = vsel %vm1277_vm6, %v2825_v50, %v2824_v15  ;;  %v5177_v56 = vsub.f32 %v5080_v54, %v2750_v27  ;;  %v5180_v40 = vsub.f32 %v5088_v39, %v2751_v11  ;;  %v5184_v58 = vsub.f32 %v5091_v21, %v2752_v43 }
 0x775   : > { %v2828_v44 = vsel %vm1280_vm7, %v2827_v29, %v2826_v7  ;;  %v5187_v0 = vsub.f32 %v5097_v16, %v2753_v23  ;;  %v5190_v10 = vsub.f32 %v5101_v26, %v2754_v33  ;;  %v2833_v6 = vrot.slane %v2796_v24, 1  ;;  %v4077_v24 = vld [vmem:[%s5632_s10] sm:$0xff]  }
 0x776   : > { %v2830_v60 = vsel %vm1283_vm8, %v2829_v62, %v2828_v44  ;;  %v5194_v54 = vsub.f32 %v5108_v8, %v2755_v32  ;;  %v5197_v39 = vsub.f32 %v5112_v46, %v2756_v9  ;;  %v2798_v21 = vmul.f32 %v5177_v56, %v5177_v56  ;;  %3991 = vmatpush3.bf16.msra.mxu0 %v4077_v24 }
 0x777   : > { %v2832_v42 = vsel %vm1286_vm9, %v2831_v17, %v2830_v60  ;;  %v2799_v16 = vmul.f32 %v5180_v40, %v5180_v40  ;;  %v2800_v26 = vmul.f32 %v5184_v58, %v5184_v58  ;;  %v2797_v8 = vmul.f32 %v5174_v55, %v5174_v55  ;;  %4008 = vmatprep.subr.bf16.mxu0 %v5665_v22 }
 0x778   : > { %v2834_v4 = vsel %vm1289_vm10, %v2833_v6, %v2832_v42  ;;  %v2801_v46 = vmul.f32 %v5187_v0, %v5187_v0  ;;  %v2802_v3 = vmul.f32 %v5190_v10, %v5190_v10  ;;  %v2835_v28 = vrot.slane %v2798_v21, 7 }
 0x779   : > { %v2851_v2 = vsel %vm983_vm3, %v2834_v4, 0.0  ;;  %v2837_v13 = vrot.slane %v2799_v16, 6  ;;  %v2803_v36 = vmul.f32 %v5194_v54, %v5194_v54  ;;  %v2804_v37 = vmul.f32 %v5197_v39, %v5197_v39 }
 0x77a   : > { %2852 = vadd.xlane.f32.xlu0 %v2851_v2  ;;  %v2836_v34 = vsel %vm1271_vm4, %v2835_v28, %v2797_v8  ;;  %v2839_v14 = vrot.slane %v2800_v26, 5  ;;  %v2841_v30 = vrot.slane %v2801_v46, 4  ;;  %v2843_v38 = vrot.slane %v2802_v3, 3  ;;  %v3828_v8 = vld [vmem:[%s5631_s9] ss:$0 sm:$0xff] }
 0x77b   : > { %v2838_v41 = vsel %vm1274_vm5, %v2837_v13, %v2836_v34  ;;  %v2845_v35 = vrot.slane %v2803_v36, 2  ;;  %v2847_v5 = vrot.slane %v2804_v37, 1 }
 0x77c   : > { %v2840_v53 = vsel %vm1277_vm6, %v2839_v14, %v2838_v41 }
 0x77d   : > { %v2842_v61 = vsel %vm1280_vm7, %v2841_v30, %v2840_v53 }
 0x77e   : > { %v2844_v52 = vsel %vm1283_vm8, %v2843_v38, %v2842_v61 }
 0x77f   : > { %v2846_v63 = vsel %vm1286_vm9, %v2845_v35, %v2844_v52 }
 0x780   : > { %v2848_v57 = vsel %vm1289_vm10, %v2847_v5, %v2846_v63 }
 0x781   : > { %v2854_v51 = vsel %vm983_vm3, %v2848_v57, 0.0 }
 0x782   : > { %2855 = vadd.xlane.f32.xlu1 %v2854_v51 }
 0x803   : > { %v2853_v59 = vpop.xlane.xlu0 %2852 }
 0x804   : > { %v2857_v12 = vmul.f32 0.03125, %v2853_v59 }
 0x806   : > { %v2859_v27 = vadd.f32 1e-12, %v2857_v12 }
 0x808   : > { %4120 = vrsqrt.f32 %v2859_v27 }
 0x80b   : > { %v2856_v50 = vpop.xlane.xlu1 %2855 }
 0x80c   : > { %v2858_v29 = vmul.f32 0.03125, %v2856_v50 }
 0x80e   : > { %v2860_v62 = vadd.f32 1e-12, %v2858_v29 }
 0x810   : > { %4122 = vrsqrt.f32 %v2860_v62 }
 0x815   : > { %v4121_v17 = vpop.eup %4120 }
 0x816   : > { %v2865_v11 = vrot.slane %v4121_v17, 1  ;;  %v2866_v43 = vrot.slane %v4121_v17, 2  ;;  %v2867_v23 = vrot.slane %v4121_v17, 3  ;;  %v2868_v15 = vrot.slane %v4121_v17, 4 }
 0x817   : > { %v2869_v33 = vrot.slane %v4121_v17, 5  ;;  %v2870_v32 = vrot.slane %v4121_v17, 6  ;;  %v2871_v9 = vrot.slane %v4121_v17, 7  ;;  %v2895_v7 = vmul.f32 %v4121_v17, %v5131_v19 }
 0x818   : > { %v2896_v44 = vmul.f32 %v2865_v11, %v5134_v18  ;;  %v2897_v60 = vmul.f32 %v2866_v43, %v5137_v49  ;;  %v2898_v6 = vmul.f32 %v2867_v23, %v5140_v48  ;;  %v2899_v42 = vmul.f32 %v2868_v15, %v5143_v31 }
 0x819   : > { %v2900_v21 = vmul.f32 %v2869_v33, %v5146_v20  ;;  %v2901_v16 = vmul.f32 %v2870_v32, %v5149_v45  ;;  %v2902_v26 = vmul.f32 %v2871_v9, %v5152_v1  ;;  %v2917_v4 = vmul.f32 %v3827_v25, %v2895_v7 }
 0x81a   : > { %v2918_v19 = vmul.f32 %v3827_v25, %v2896_v44  ;;  %v2919_v46 = vmul.f32 %v3827_v25, %v2897_v60  ;;  %v2920_v18 = vmul.f32 %v3827_v25, %v2898_v6  ;;  %v2921_v2 = vmul.f32 %v3827_v25, %v2899_v42 }
 0x81b   : > { %v2922_v49 = vmul.f32 %v3827_v25, %v2900_v21  ;;  %v2923_v3 = vmul.f32 %v3827_v25, %v2901_v16  ;;  %v2924_v48 = vmul.f32 %v3827_v25, %v2902_v26  ;;  %v5248_v28 = vadd.f32 %v3828_v8, %v2917_v4 }
 0x81c   : > { %v5250_v31 = vadd.f32 %v3828_v8, %v2918_v19  ;;  %v5252_v20 = vadd.f32 %v3828_v8, %v2919_v46  ;;  %v5254_v1 = vadd.f32 %v3828_v8, %v2920_v18  ;;  %v5256_v13 = vadd.f32 %v3828_v8, %v2921_v2 }
 0x81d   : > { %v4123_v45 = vpop.eup %4122  ;;  %v5258_v36 = vadd.f32 %v3828_v8, %v2922_v49  ;;  %v5260_v37 = vadd.f32 %v3828_v8, %v2923_v3  ;;  %v5270_v17 = vadd.f32 %v3828_v8, %v2924_v48  ;;  %v2955_v32 = vpack.c.bf16 %v5248_v28, %v5248_v28 }
 0x81e   : > { %v2872_v34 = vrot.slane %v4123_v45, 1  ;;  %v2873_v14 = vrot.slane %v4123_v45, 2  ;;  %v2874_v41 = vrot.slane %v4123_v45, 3  ;;  %v2875_v30 = vrot.slane %v4123_v45, 4 }
 0x81f   : > { %v2876_v53 = vrot.slane %v4123_v45, 5  ;;  %v2877_v38 = vrot.slane %v4123_v45, 6  ;;  %v2878_v61 = vrot.slane %v4123_v45, 7  ;;  %v2903_v35 = vmul.f32 %v4123_v45, %v5174_v55 }
 0x820   : > { %v2904_v52 = vmul.f32 %v2872_v34, %v5177_v56  ;;  %v2905_v5 = vmul.f32 %v2873_v14, %v5180_v40  ;;  %v2906_v63 = vmul.f32 %v2874_v41, %v5184_v58  ;;  %v2907_v57 = vmul.f32 %v2875_v30, %v5187_v0 }
 0x821   : > { %v2908_v51 = vmul.f32 %v2876_v53, %v5190_v10  ;;  %v2909_v47 = vmul.f32 %v2877_v38, %v5194_v54  ;;  %v2910_v24 = vmul.f32 %v2878_v61, %v5197_v39  ;;  %v2925_v59 = vmul.f32 %v3827_v25, %v2903_v35 }
 0x822   : > { %v2926_v12 = vmul.f32 %v3827_v25, %v2904_v52  ;;  %v2927_v27 = vmul.f32 %v3827_v25, %v2905_v5  ;;  %v2928_v50 = vmul.f32 %v3827_v25, %v2906_v63  ;;  %v2929_v29 = vmul.f32 %v3827_v25, %v2907_v57 }
 0x823   : > { %v2930_v55 = vmul.f32 %v3827_v25, %v2908_v51  ;;  %v2931_v62 = vmul.f32 %v3827_v25, %v2909_v47  ;;  %v2932_v56 = vmul.f32 %v3827_v25, %v2910_v24  ;;  %v2956_v10 = vpack.c.bf16 %v5250_v31, %v5250_v31 }
 0x824   : > { %v5272_v40 = vadd.f32 %v3828_v8, %v2926_v12  ;;  %v5274_v58 = vadd.f32 %v3828_v8, %v2927_v27  ;;  %v5276_v0 = vadd.f32 %v3828_v8, %v2928_v50  ;;  %v5280_v54 = vadd.f32 %v3828_v8, %v2925_v59 }
 0x825   : > { %v5282_v39 = vadd.f32 %v3828_v8, %v2929_v29  ;;  %v5284_v11 = vadd.f32 %v3828_v8, %v2930_v55  ;;  %v2957_v25 = vpack.c.bf16 %v5252_v20, %v5252_v20  ;;  %v5288_v43 = vadd.f32 %v3828_v8, %v2931_v62 }
 0x826   : > { %v5290_v23 = vadd.f32 %v3828_v8, %v2932_v56  ;;  %v2958_v15 = vpack.c.bf16 %v5254_v1, %v5254_v1  ;;  %v2964_v33 = vpack.c.bf16 %v5272_v40, %v5272_v40  ;;  %v2959_v9 = vpack.c.bf16 %v5256_v13, %v5256_v13 }
 0x827   : > { %v2960_v7 = vpack.c.bf16 %v5258_v36, %v5258_v36  ;;  %v2965_v44 = vpack.c.bf16 %v5274_v58, %v5274_v58  ;;  %v2961_v60 = vpack.c.bf16 %v5260_v37, %v5260_v37  ;;  %v2962_v6 = vpack.c.bf16 %v5270_v17, %v5270_v17 }
 0x828   : > { %v2966_v42 = vpack.c.bf16 %v5276_v0, %v5276_v0  ;;  %v2999_v21 = vunpack.c.l.b16 %v2956_v10  ;;  %v2963_v16 = vpack.c.bf16 %v5280_v54, %v5280_v54  ;;  %v2967_v26 = vpack.c.bf16 %v5282_v39, %v5282_v39 }
 0x829   : > { %v2968_v4 = vpack.c.bf16 %v5284_v11, %v5284_v11  ;;  %v3000_v8 = vunpack.c.l.b16 %v2957_v25  ;;  %v2969_v19 = vpack.c.bf16 %v5288_v43, %v5288_v43  ;;  %v2970_v46 = vpack.c.bf16 %v5290_v23, %v5290_v23 }
 0x82a   : > { %v3001_v18 = vunpack.c.l.b16 %v2958_v15  ;;  %v3007_v2 = vunpack.c.l.b16 %v2964_v33  ;;  %v2998_v49 = vunpack.c.l.b16 %v2955_v32  ;;  %v3002_v3 = vunpack.c.l.b16 %v2959_v9 }
 0x82b   : > { %v3003_v48 = vunpack.c.l.b16 %v2960_v7  ;;  %v3008_v45 = vunpack.c.l.b16 %v2965_v44  ;;  %v3004_v34 = vunpack.c.l.b16 %v2961_v60  ;;  %v3009_v14 = vunpack.c.l.b16 %v2966_v42 }
 0x82c   : > { %v3014_v41 = vrot.slane %v2999_v21, 7  ;;  %v3016_v30 = vrot.slane %v3000_v8, 6  ;;  %v3005_v53 = vunpack.c.l.b16 %v2962_v6  ;;  %v3006_v38 = vunpack.c.l.b16 %v2963_v16  ;;  %v4079_v8 = vld [vmem:[%s5634_s12 + $0x10] sm:$0xff]  }
 0x82d   : > { %v3010_v61 = vunpack.c.l.b16 %v2967_v26  ;;  %v3011_v35 = vunpack.c.l.b16 %v2968_v4  ;;  %v3018_v5 = vrot.slane %v3001_v18, 5  ;;  %v3028_v63 = vrot.slane %v3007_v2, 7  ;;  %v4078_v4 = vld [vmem:[%s5634_s12 + $0x18] sm:$0xff]   ;;  %v3829_v18 = vld [vmem:[%s5633_s11] ss:$0 sm:$0xff] }
 0x82e   : > { %v3015_v52 = vsel %vm1271_vm4, %v3014_v41, %v2998_v49  ;;  %v3030_v57 = vrot.slane %v3008_v45, 6  ;;  %v3012_v51 = vunpack.c.l.b16 %v2969_v19  ;;  %v3013_v47 = vunpack.c.l.b16 %v2970_v46  ;;  %3997 = vmatpush3.bf16.msra.mxu1 %v4078_v4  ;;  %v4080_v19 = vld [vmem:[%s5634_s12 + $0x8] sm:$0xff]   ;;  %v4081_v46 = vld [vmem:[%s5634_s12] sm:$0xff]  }
 0x82f   : > { %v3017_v24 = vsel %vm1274_vm5, %v3016_v30, %v3015_v52  ;;  %v3020_v59 = vrot.slane %v3002_v3, 4  ;;  %v3022_v27 = vrot.slane %v3003_v48, 3  ;;  %v3029_v50 = vsel %vm1271_vm4, %v3028_v63, %v3006_v38  ;;  %3998 = vmatprep.subr.bf16.mxu1 %v5665_v22 }
 0x830   : > { %v3019_v12 = vsel %vm1277_vm6, %v3018_v5, %v3017_v24  ;;  %v3032_v29 = vrot.slane %v3009_v14, 5  ;;  %v3024_v62 = vrot.slane %v3004_v34, 2  ;;  %v3031_v56 = vsel %vm1274_vm5, %v3030_v57, %v3029_v50 }
 0x831   : > { %v3021_v55 = vsel %vm1280_vm7, %v3020_v59, %v3019_v12  ;;  %v3034_v10 = vrot.slane %v3010_v61, 4  ;;  %v3036_v33 = vrot.slane %v3011_v35, 3  ;;  %v3038_v7 = vrot.slane %v3012_v51, 2 }
 0x832   : > { %v3023_v25 = vsel %vm1283_vm8, %v3022_v27, %v3021_v55  ;;  %v3033_v15 = vsel %vm1277_vm6, %v3032_v29, %v3031_v56  ;;  %v3026_v44 = vrot.slane %v3005_v53, 1  ;;  %v3040_v6 = vrot.slane %v3013_v47, 1  ;;  %3999 = vmatpush3.bf16.msra.mxu1 %v4079_v8  ;;  %v3833_v55 = vld [vmem:[%s5635_s13] ss:$0 sm:$0xff] }
 0x833   : > { %v3025_v32 = vsel %vm1286_vm9, %v3024_v62, %v3023_v25  ;;  %v3035_v9 = vsel %vm1280_vm7, %v3034_v10, %v3033_v15  ;;  %4000 = vmatprep.subr.bf16.mxu1 %v5665_v22 }
 0x834   : > { %v3037_v60 = vsel %vm1283_vm8, %v3036_v33, %v3035_v9  ;;  %v3027_v21 = vsel %vm1289_vm10, %v3026_v44, %v3025_v32 }
 0x835   : > { %v3039_v42 = vsel %vm1286_vm9, %v3038_v7, %v3037_v60 }
 0x836   : > { %v3041_v16 = vsel %vm1289_vm10, %v3040_v6, %v3039_v42  ;;  %4001 = vmatpush3.bf16.msra.mxu1 %v4080_v19 }
 0x837   : > { %v3042_v26 = vpack.c.b16 %v3041_v16, %v3027_v21  ;;  %4002 = vmatprep.subr.bf16.mxu1 %v5665_v22 }
 0x839   : > { %3993 = vmatmul.mubr.msk.bf16.vlgmr.msra.gmra.mxu0 %vm983_vm3, %v3042_v26 }
 0x83a   : > { %4012 = vmatprep.mubr.msk.bf16.mxu0 %vm4203_vm2, %v5665_v22  ;;  %4003 = vmatpush3.bf16.msra.mxu1 %v4081_v46 }
 0x8f9   : > { %v3092_v2 = vpop.f32.mrf.mxu0 }
 0x8fa   : > { %v3093_v49 = vadd.f32 %v3829_v18, %v3092_v2 }
 0x8fb   : > { %v3994_v3 = vpop.f32.mrf.mxu0 }
 0x8fc   : > { %v3099_v48 = vmul.f32 %v3093_v49, %v3093_v49 }
 0x8fd   : > { %v3095_v45 = vpop.f32.mrf.mxu0 }
 0x8fe   : > { %v3101_v34 = vmul.f32 %v3099_v48, %v3093_v49  ;;  %v3096_v14 = vadd.f32 %v3829_v18, %v3095_v45 }
 0x8ff   : > { %v3995_v41 = vpop.f32.mrf.mxu0 }
 0x900   : > { %v3103_v30 = vmul.f32 0.044715, %v3101_v34  ;;  %v3100_v53 = vmul.f32 %v3096_v14, %v3096_v14 }
 0x902   : > { %v3105_v38 = vadd.f32 %v3103_v30, %v3093_v49  ;;  %v3102_v61 = vmul.f32 %v3100_v53, %v3096_v14 }
 0x904   : > { %v3107_v35 = vmul.f32 0.7978846, %v3105_v38  ;;  %v3104_v52 = vmul.f32 0.044715, %v3102_v61 }
 0x906   : > { %4124 = vtanh.f32 %v3107_v35  ;;  %v3106_v5 = vadd.f32 %v3104_v52, %v3096_v14 }
 0x908   : > { %v3108_v63 = vmul.f32 0.7978846, %v3106_v5 }
 0x90a   : > { %4126 = vtanh.f32 %v3108_v63 }
 0x913   : > { %v4125_v57 = vpop.eup %4124 }
 0x914   : > { %v3111_v51 = vadd.f32 1.0, %v4125_v57 }
 0x916   : > { %v3113_v24 = vmul.f32 0.5, %v3111_v51 }
 0x917   : > { %v4127_v47 = vpop.eup %4126 }
 0x918   : > { %v3112_v59 = vadd.f32 1.0, %v4127_v47  ;;  %v3115_v27 = vmul.f32 %v3113_v24, %v3093_v49 }
 0x91a   : > { %v3114_v12 = vmul.f32 0.5, %v3112_v59 }
 0x91c   : > { %v3116_v50 = vmul.f32 %v3114_v12, %v3096_v14 }
 0x91e   : > { %v3117_v29 = vpack.c.bf16 %v3116_v50, %v3115_v27 }
 0x920   : > { %4005 = vmatmul.mubr.msk.bf16.vlgmr.msra.gmra.mxu1 %vm3157_vm12, %v3117_v29 }
 0x9e0   : > { %v3195_v62 = vpop.f32.mrf.mxu1 }
 0x9e1   : > { %v3196_v56 = vadd.f32 %v3833_v55, %v3195_v62 }
 0x9e2   : > { %v4006_v10 = vpop.f32.mrf.mxu1 }
 0x9e3   : > { %v3204_v25 = vrot.slane %v3196_v56, 1  ;;  %v3205_v15 = vrot.slane %v3196_v56, 2  ;;  %v3206_v33 = vrot.slane %v3196_v56, 3  ;;  %v3207_v32 = vrot.slane %v3196_v56, 4 }
 0x9e4   : > { %v3198_v9 = vpop.f32.mrf.mxu1  ;;  %v3208_v7 = vrot.slane %v3196_v56, 5  ;;  %v3209_v44 = vrot.slane %v3196_v56, 6  ;;  %v3210_v60 = vrot.slane %v3196_v56, 7  ;;  %v3234_v46 = vadd.f32 %v3196_v56, %v5248_v28 }
 0x9e5   : > { %v3199_v6 = vadd.f32 %v3833_v55, %v3198_v9  ;;  %v5359_v42 = vadd.f32 %v3204_v25, %v5250_v31  ;;  %v5362_v21 = vadd.f32 %v3205_v15, %v5252_v20  ;;  %v5365_v16 = vadd.f32 %v3206_v33, %v5254_v1 }
 0x9e6   : > { %v4007_v26 = vpop.f32.mrf.mxu1  ;;  %v5368_v4 = vadd.f32 %v3207_v32, %v5256_v13  ;;  %v5371_v8 = vadd.f32 %v3208_v7, %v5258_v36  ;;  %v5374_v19 = vadd.f32 %v3209_v44, %v5260_v37  ;;  %v3241_v1 = vadd.f32 %v3210_v60, %v5270_v17 }
 0x9e7   : > { %v3268_v31 = vrot.slane %v5359_v42, 7  ;;  %v3270_v20 = vrot.slane %v5362_v21, 6  ;;  %v3211_v18 = vrot.slane %v3199_v6, 1  ;;  %v3272_v2 = vrot.slane %v5365_v16, 5 }
 0x9e8   : > { %v3274_v13 = vrot.slane %v5368_v4, 4  ;;  %v3276_v49 = vrot.slane %v5371_v8, 3  ;;  %v3212_v3 = vrot.slane %v3199_v6, 2  ;;  %v3213_v37 = vrot.slane %v3199_v6, 3 }
 0x9e9   : > { %v3269_v36 = vsel %vm1271_vm4, %v3268_v31, %v3234_v46  ;;  %v3214_v48 = vrot.slane %v3199_v6, 4  ;;  %v3278_v45 = vrot.slane %v5374_v19, 2  ;;  %v3215_v34 = vrot.slane %v3199_v6, 5 }
 0x9ea   : > { %v3271_v28 = vsel %vm1274_vm5, %v3270_v20, %v3269_v36  ;;  %v3216_v14 = vrot.slane %v3199_v6, 6  ;;  %v3217_v17 = vrot.slane %v3199_v6, 7  ;;  %v5388_v30 = vadd.f32 %v3211_v18, %v5272_v40 }
 0x9eb   : > { %v3273_v41 = vsel %vm1277_vm6, %v3272_v2, %v3271_v28  ;;  %v5391_v53 = vadd.f32 %v3212_v3, %v5274_v58  ;;  %v3280_v61 = vrot.slane %v3241_v1, 1  ;;  %v5395_v35 = vadd.f32 %v3213_v37, %v5276_v0 }
 0x9ec   : > { %v3275_v38 = vsel %vm1280_vm7, %v3274_v13, %v3273_v41  ;;  %v5398_v52 = vadd.f32 %v3214_v48, %v5282_v39  ;;  %v5402_v63 = vadd.f32 %v3199_v6, %v5280_v54  ;;  %v5405_v40 = vadd.f32 %v3215_v34, %v5284_v11 }
 0x9ed   : > { %v3277_v5 = vsel %vm1283_vm8, %v3276_v49, %v3275_v38  ;;  %v3282_v58 = vrot.slane %v5388_v30, 7  ;;  %v5410_v51 = vadd.f32 %v3216_v14, %v5288_v43  ;;  %v3284_v0 = vrot.slane %v5391_v53, 6 }
 0x9ee   : > { %v3279_v57 = vsel %vm1286_vm9, %v3278_v45, %v3277_v5  ;;  %v5415_v47 = vadd.f32 %v3217_v17, %v5290_v23  ;;  %v3286_v11 = vrot.slane %v5395_v35, 5  ;;  %v3288_v12 = vrot.slane %v5398_v52, 4 }
 0x9ef   : > { %v3281_v39 = vsel %vm1289_vm10, %v3280_v61, %v3279_v57  ;;  %v3283_v54 = vsel %vm1271_vm4, %v3282_v58, %v5402_v63  ;;  %v3290_v27 = vrot.slane %v5405_v40, 3  ;;  %v3292_v23 = vrot.slane %v5410_v51, 2 }
 0x9f0   : > { %v3298_v24 = vsel %vm983_vm3, %v3281_v39, 0.0  ;;  %v3285_v59 = vsel %vm1274_vm5, %v3284_v0, %v3283_v54  ;;  %v3294_v55 = vrot.slane %v5415_v47, 1 }
 0x9f1   : > { %3299 = vadd.xlane.f32.xlu0 %v3298_v24  ;;  %v3287_v43 = vsel %vm1277_vm6, %v3286_v11, %v3285_v59 }
 0x9f2   : > { %v3289_v50 = vsel %vm1280_vm7, %v3288_v12, %v3287_v43 }
 0x9f3   : > { %v3291_v29 = vsel %vm1283_vm8, %v3290_v27, %v3289_v50 }
 0x9f4   : > { %v3293_v62 = vsel %vm1286_vm9, %v3292_v23, %v3291_v29 }
 0x9f5   : > { %v3295_v56 = vsel %vm1289_vm10, %v3294_v55, %v3293_v62 }
 0x9f6   : > { %v3301_v10 = vsel %vm983_vm3, %v3295_v56, 0.0 }
 0x9f7   : > { %3302 = vadd.xlane.f32.xlu1 %v3301_v10 }
 0xa7a   : > { %v3300_v25 = vpop.xlane.xlu0 %3299 }
 0xa7b   : > { %v3304_v15 = vmul.f32 0.03125, %v3300_v25 }
 0xa7d   : > { %v3308_v33 = vrot.slane %v3304_v15, 1  ;;  %v3309_v32 = vrot.slane %v3304_v15, 2  ;;  %v3310_v9 = vrot.slane %v3304_v15, 3  ;;  %v3311_v7 = vrot.slane %v3304_v15, 4 }
 0xa7e   : > { %v3312_v44 = vrot.slane %v3304_v15, 5  ;;  %v3313_v60 = vrot.slane %v3304_v15, 6  ;;  %v3314_v6 = vrot.slane %v3304_v15, 7  ;;  %v5432_v26 = vsub.f32 %v3234_v46, %v3304_v15 }
 0xa7f   : > { %v5435_v31 = vsub.f32 %v5359_v42, %v3308_v33  ;;  %v5438_v20 = vsub.f32 %v5362_v21, %v3309_v32  ;;  %v5441_v18 = vsub.f32 %v5365_v16, %v3310_v9  ;;  %v5444_v2 = vsub.f32 %v5368_v4, %v3311_v7 }
 0xa80   : > { %v3303_v13 = vpop.xlane.xlu1 %3302  ;;  %v5447_v49 = vsub.f32 %v5371_v8, %v3312_v44  ;;  %v5450_v36 = vsub.f32 %v5374_v19, %v3313_v60  ;;  %v5452_v46 = vsub.f32 %v3241_v1, %v3314_v6  ;;  %v3354_v3 = vmul.f32 %v5432_v26, %v5432_v26 }
 0xa81   : > { %v3305_v42 = vmul.f32 0.03125, %v3303_v13  ;;  %v3355_v21 = vmul.f32 %v5435_v31, %v5435_v31  ;;  %v3356_v16 = vmul.f32 %v5438_v20, %v5438_v20  ;;  %v3357_v4 = vmul.f32 %v5441_v18, %v5441_v18 }
 0xa82   : > { %v3358_v8 = vmul.f32 %v5444_v2, %v5444_v2  ;;  %v3359_v19 = vmul.f32 %v5447_v49, %v5447_v49  ;;  %v3360_v1 = vmul.f32 %v5450_v36, %v5450_v36  ;;  %v3361_v37 = vmul.f32 %v5452_v46, %v5452_v46 }
 0xa83   : > { %v3386_v48 = vrot.slane %v3355_v21, 7  ;;  %v3388_v28 = vrot.slane %v3356_v16, 6  ;;  %v3315_v45 = vrot.slane %v3305_v42, 1  ;;  %v3390_v34 = vrot.slane %v3357_v4, 5 }
 0xa84   : > { %v3392_v14 = vrot.slane %v3358_v8, 4  ;;  %v3394_v41 = vrot.slane %v3359_v19, 3  ;;  %v3396_v17 = vrot.slane %v3360_v1, 2  ;;  %v3316_v61 = vrot.slane %v3305_v42, 2  ;;  %v4082_v1 = vld [vmem:[%s5638_s16 + $0x8] sm:$0xff]  }
 0xa85   : > { %v3387_v38 = vsel %vm1271_vm4, %v3386_v48, %v3354_v3  ;;  %v3317_v5 = vrot.slane %v3305_v42, 3  ;;  %v3318_v58 = vrot.slane %v3305_v42, 4  ;;  %v3319_v0 = vrot.slane %v3305_v42, 5  ;;  %4009 = vmatpush3.bf16.msra.mxu0 %v4082_v1 }
 0xa86   : > { %v3389_v57 = vsel %vm1274_vm5, %v3388_v28, %v3387_v38  ;;  %v3320_v39 = vrot.slane %v3305_v42, 6  ;;  %v3321_v54 = vrot.slane %v3305_v42, 7  ;;  %v5474_v24 = vsub.f32 %v5402_v63, %v3305_v42  ;;  %4010 = vmatprep.subr.bf16.mxu0 %v5665_v22  ;;  %v3839_v38 = vld [vmem:[%s5636_s14] ss:$0 sm:$0xff] }
 0xa87   : > { %v3391_v11 = vsel %vm1277_vm6, %v3390_v34, %v3389_v57  ;;  %v5477_v59 = vsub.f32 %v5388_v30, %v3315_v45  ;;  %v5480_v12 = vsub.f32 %v5391_v53, %v3316_v61  ;;  %v5484_v27 = vsub.f32 %v5395_v35, %v3317_v5 }
 0xa88   : > { %v3393_v43 = vsel %vm1280_vm7, %v3392_v14, %v3391_v11  ;;  %v5487_v50 = vsub.f32 %v5398_v52, %v3318_v58  ;;  %v5490_v23 = vsub.f32 %v5405_v40, %v3319_v0  ;;  %v3398_v29 = vrot.slane %v3361_v37, 1  ;;  %v4083_v37 = vld [vmem:[%s5638_s16] sm:$0xff]  }
 0xa89   : > { %v3395_v63 = vsel %vm1283_vm8, %v3394_v41, %v3393_v43  ;;  %v5494_v30 = vsub.f32 %v5410_v51, %v3320_v39  ;;  %v5497_v53 = vsub.f32 %v5415_v47, %v3321_v54  ;;  %v3363_v35 = vmul.f32 %v5477_v59, %v5477_v59  ;;  %4011 = vmatpush3.bf16.msra.mxu0 %v4083_v37 }
 0xa8a   : > { %v3397_v55 = vsel %vm1286_vm9, %v3396_v17, %v3395_v63  ;;  %v3364_v52 = vmul.f32 %v5480_v12, %v5480_v12  ;;  %v3365_v40 = vmul.f32 %v5484_v27, %v5484_v27  ;;  %v3362_v51 = vmul.f32 %v5474_v24, %v5474_v24 }
 0xa8b   : > { %v3399_v62 = vsel %vm1289_vm10, %v3398_v29, %v3397_v55  ;;  %v3366_v47 = vmul.f32 %v5487_v50, %v5487_v50  ;;  %v3367_v10 = vmul.f32 %v5490_v23, %v5490_v23  ;;  %v3400_v25 = vrot.slane %v3363_v35, 7 }
 0xa8c   : > { %v3416_v56 = vsel %vm983_vm3, %v3399_v62, 0.0  ;;  %v3402_v15 = vrot.slane %v3364_v52, 6  ;;  %v3368_v33 = vmul.f32 %v5494_v30, %v5494_v30  ;;  %v3369_v32 = vmul.f32 %v5497_v53, %v5497_v53  ;;  %v3840_v62 = vld [vmem:[%s5637_s15] ss:$0 sm:$0xff] }
 0xa8d   : > { %3417 = vadd.xlane.f32.xlu0 %v3416_v56  ;;  %v3401_v9 = vsel %vm1271_vm4, %v3400_v25, %v3362_v51  ;;  %v3404_v7 = vrot.slane %v3365_v40, 5  ;;  %v3406_v60 = vrot.slane %v3366_v47, 4  ;;  %v3408_v13 = vrot.slane %v3367_v10, 3 }
 0xa8e   : > { %v3403_v44 = vsel %vm1274_vm5, %v3402_v15, %v3401_v9  ;;  %v3410_v21 = vrot.slane %v3368_v33, 2  ;;  %v3412_v4 = vrot.slane %v3369_v32, 1 }
 0xa8f   : > { %v3405_v6 = vsel %vm1277_vm6, %v3404_v7, %v3403_v44 }
 0xa90   : > { %v3407_v42 = vsel %vm1280_vm7, %v3406_v60, %v3405_v6 }
 0xa91   : > { %v3409_v16 = vsel %vm1283_vm8, %v3408_v13, %v3407_v42 }
 0xa92   : > { %v3411_v3 = vsel %vm1286_vm9, %v3410_v21, %v3409_v16 }
 0xa93   : > { %v3413_v8 = vsel %vm1289_vm10, %v3412_v4, %v3411_v3 }
 0xa94   : > { %v3419_v19 = vsel %vm983_vm3, %v3413_v8, 0.0 }
 0xa95   : > { %3420 = vadd.xlane.f32.xlu1 %v3419_v19 }
 0xb16   : > { %v3418_v48 = vpop.xlane.xlu0 %3417 }
 0xb17   : > { %v3422_v28 = vmul.f32 0.03125, %v3418_v48 }
 0xb19   : > { %v3424_v45 = vadd.f32 1e-12, %v3422_v28 }
 0xb1b   : > { %4128 = vrsqrt.f32 %v3424_v45 }
 0xb1e   : > { %v3421_v34 = vpop.xlane.xlu1 %3420 }
 0xb1f   : > { %v3423_v14 = vmul.f32 0.03125, %v3421_v34 }
 0xb21   : > { %v3425_v41 = vadd.f32 1e-12, %v3423_v14 }
 0xb23   : > { %4130 = vrsqrt.f32 %v3425_v41 }
 0xb28   : > { %v4129_v17 = vpop.eup %4128 }
 0xb29   : > { %v3430_v61 = vrot.slane %v4129_v17, 1  ;;  %v3431_v5 = vrot.slane %v4129_v17, 2  ;;  %v3432_v58 = vrot.slane %v4129_v17, 3  ;;  %v3433_v57 = vrot.slane %v4129_v17, 4 }
 0xb2a   : > { %v3434_v0 = vrot.slane %v4129_v17, 5  ;;  %v3435_v22 = vrot.slane %v4129_v17, 6  ;;  %v3436_v39 = vrot.slane %v4129_v17, 7  ;;  %v3460_v54 = vmul.f32 %v4129_v17, %v5432_v26 }
 0xb2b   : > { %v3461_v11 = vmul.f32 %v3430_v61, %v5435_v31  ;;  %v3462_v43 = vmul.f32 %v3431_v5, %v5438_v20  ;;  %v3463_v63 = vmul.f32 %v3432_v58, %v5441_v18  ;;  %v3464_v29 = vmul.f32 %v3433_v57, %v5444_v2 }
 0xb2c   : > { %v3465_v55 = vmul.f32 %v3434_v0, %v5447_v49  ;;  %v3466_v35 = vmul.f32 %v3435_v22, %v5450_v36  ;;  %v3467_v52 = vmul.f32 %v3436_v39, %v5452_v46  ;;  %v3482_v40 = vmul.f32 %v3839_v38, %v3460_v54 }
 0xb2d   : > { %v3483_v26 = vmul.f32 %v3839_v38, %v3461_v11  ;;  %v3484_v51 = vmul.f32 %v3839_v38, %v3462_v43  ;;  %v3485_v31 = vmul.f32 %v3839_v38, %v3463_v63  ;;  %v3486_v47 = vmul.f32 %v3839_v38, %v3464_v29 }
 0xb2e   : > { %v3487_v20 = vmul.f32 %v3839_v38, %v3465_v55  ;;  %v3488_v56 = vmul.f32 %v3839_v38, %v3466_v35  ;;  %v3489_v18 = vmul.f32 %v3839_v38, %v3467_v52  ;;  %v3504_v10 = vadd.f32 %v3840_v62, %v3482_v40 }
 0xb2f   : > { %v3505_v2 = vadd.f32 %v3840_v62, %v3483_v26  ;;  %v3506_v25 = vadd.f32 %v3840_v62, %v3484_v51  ;;  %v3507_v15 = vadd.f32 %v3840_v62, %v3485_v31  ;;  %v3508_v36 = vadd.f32 %v3840_v62, %v3486_v47 }
 0xb30   : > { %v4131_v49 = vpop.eup %4130  ;;  %v3509_v33 = vadd.f32 %v3840_v62, %v3487_v20  ;;  %v3510_v46 = vadd.f32 %v3840_v62, %v3488_v56  ;;  %v3511_v41 = vadd.f32 %v3840_v62, %v3489_v18  ;;  %v3520_v22 = vpack.c.bf16 %v3504_v10, %v3504_v10 }
 0xb31   : > { %v3437_v32 = vrot.slane %v4131_v49, 1  ;;  %v3438_v9 = vrot.slane %v4131_v49, 2  ;;  %v3439_v7 = vrot.slane %v4131_v49, 3  ;;  %v3440_v44 = vrot.slane %v4131_v49, 4 }
 0xb32   : > { %v3441_v60 = vrot.slane %v4131_v49, 5  ;;  %v3442_v6 = vrot.slane %v4131_v49, 6  ;;  %v3443_v13 = vrot.slane %v4131_v49, 7  ;;  %v3468_v42 = vmul.f32 %v4131_v49, %v5474_v24 }
 0xb33   : > { %v3469_v21 = vmul.f32 %v3437_v32, %v5477_v59  ;;  %v3470_v16 = vmul.f32 %v3438_v9, %v5480_v12  ;;  %v3471_v4 = vmul.f32 %v3439_v7, %v5484_v27  ;;  %v3472_v3 = vmul.f32 %v3440_v44, %v5487_v50 }
 0xb34   : > { %v3473_v8 = vmul.f32 %v3441_v60, %v5490_v23  ;;  %v3474_v19 = vmul.f32 %v3442_v6, %v5494_v30  ;;  %v3475_v1 = vmul.f32 %v3443_v13, %v5497_v53  ;;  %v3490_v37 = vmul.f32 %v3839_v38, %v3468_v42 }
 0xb35   : > { %v3491_v48 = vmul.f32 %v3839_v38, %v3469_v21  ;;  %v3492_v28 = vmul.f32 %v3839_v38, %v3470_v16  ;;  %v3493_v45 = vmul.f32 %v3839_v38, %v3471_v4  ;;  %v3494_v34 = vmul.f32 %v3839_v38, %v3472_v3 }
 0xb36   : > { %v3495_v24 = vmul.f32 %v3839_v38, %v3473_v8  ;;  %v3496_v14 = vmul.f32 %v3839_v38, %v3474_v19  ;;  %v3497_v59 = vmul.f32 %v3839_v38, %v3475_v1  ;;  %v3521_v61 = vpack.c.bf16 %v3505_v2, %v3505_v2 }
 0xb37   : > { %v3513_v12 = vadd.f32 %v3840_v62, %v3491_v48  ;;  %v3514_v17 = vadd.f32 %v3840_v62, %v3492_v28  ;;  %v3515_v27 = vadd.f32 %v3840_v62, %v3493_v45  ;;  %v3512_v50 = vadd.f32 %v3840_v62, %v3490_v37 }
 0xb38   : > { %v3516_v5 = vadd.f32 %v3840_v62, %v3494_v34  ;;  %v3517_v23 = vadd.f32 %v3840_v62, %v3495_v24  ;;  %v3522_v58 = vpack.c.bf16 %v3506_v25, %v3506_v25  ;;  %v3518_v30 = vadd.f32 %v3840_v62, %v3496_v14 }
 0xb39   : > { %v3519_v57 = vadd.f32 %v3840_v62, %v3497_v59  ;;  %v3523_v53 = vpack.c.bf16 %v3507_v15, %v3507_v15  ;;  %v3529_v0 = vpack.c.bf16 %v3513_v12, %v3513_v12  ;;  %v3524_v39 = vpack.c.bf16 %v3508_v36, %v3508_v36 }
 0xb3a   : > { %v3525_v54 = vpack.c.bf16 %v3509_v33, %v3509_v33  ;;  %v3530_v11 = vpack.c.bf16 %v3514_v17, %v3514_v17  ;;  %v3526_v43 = vpack.c.bf16 %v3510_v46, %v3510_v46  ;;  %v3527_v63 = vpack.c.bf16 %v3511_v41, %v3511_v41 }
 0xb3b   : > { %v3531_v38 = vpack.c.bf16 %v3515_v27, %v3515_v27  ;;  %v3564_v29 = vunpack.c.l.b16 %v3521_v61  ;;  %v3528_v55 = vpack.c.bf16 %v3512_v50, %v3512_v50  ;;  %v3532_v35 = vpack.c.bf16 %v3516_v5, %v3516_v5  ;;  %v3841_v5 = vld [vmem:[%s5639_s17] ss:$0 sm:$0xff] }
 0xb3c   : > { %v3533_v52 = vpack.c.bf16 %v3517_v23, %v3517_v23  ;;  %v3565_v40 = vunpack.c.l.b16 %v3522_v58  ;;  %v3534_v26 = vpack.c.bf16 %v3518_v30, %v3518_v30  ;;  %v3535_v51 = vpack.c.bf16 %v3519_v57, %v3519_v57 }
 0xb3d   : > { %v3566_v31 = vunpack.c.l.b16 %v3523_v53  ;;  %v3572_v47 = vunpack.c.l.b16 %v3529_v0  ;;  %v3563_v20 = vunpack.c.l.b16 %v3520_v22  ;;  %v3567_v62 = vunpack.c.l.b16 %v3524_v39 }
 0xb3e   : > { %v3568_v56 = vunpack.c.l.b16 %v3525_v54  ;;  %v3573_v18 = vunpack.c.l.b16 %v3530_v11  ;;  %v3569_v10 = vunpack.c.l.b16 %v3526_v43  ;;  %v3574_v2 = vunpack.c.l.b16 %v3531_v38 }
 0xb3f   : > { %v3579_v25 = vrot.slane %v3564_v29, 7  ;;  %v3581_v49 = vrot.slane %v3565_v40, 6  ;;  %v3570_v15 = vunpack.c.l.b16 %v3527_v63  ;;  %v3571_v36 = vunpack.c.l.b16 %v3528_v55 }
 0xb40   : > { %v3575_v33 = vunpack.c.l.b16 %v3532_v35  ;;  %v3576_v46 = vunpack.c.l.b16 %v3533_v52  ;;  %v3583_v9 = vrot.slane %v3566_v31, 5  ;;  %v3593_v7 = vrot.slane %v3572_v47, 7 }
 0xb41   : > { %v3580_v32 = vsel %vm1271_vm4, %v3579_v25, %v3563_v20  ;;  %v3595_v44 = vrot.slane %v3573_v18, 6  ;;  %v3577_v60 = vunpack.c.l.b16 %v3534_v26  ;;  %v3578_v6 = vunpack.c.l.b16 %v3535_v51 }
 0xb42   : > { %v3582_v13 = vsel %vm1274_vm5, %v3581_v49, %v3580_v32  ;;  %v3585_v42 = vrot.slane %v3567_v62, 4  ;;  %v3587_v16 = vrot.slane %v3568_v56, 3  ;;  %v3594_v4 = vsel %vm1271_vm4, %v3593_v7, %v3571_v36 }
 0xb43   : > { %v3584_v21 = vsel %vm1277_vm6, %v3583_v9, %v3582_v13  ;;  %v3597_v3 = vrot.slane %v3574_v2, 5  ;;  %v3589_v19 = vrot.slane %v3569_v10, 2  ;;  %v3596_v1 = vsel %vm1274_vm5, %v3595_v44, %v3594_v4 }
 0xb44   : > { %v3586_v8 = vsel %vm1280_vm7, %v3585_v42, %v3584_v21  ;;  %v3599_v37 = vrot.slane %v3575_v33, 4  ;;  %v3601_v45 = vrot.slane %v3576_v46, 3  ;;  %v3603_v14 = vrot.slane %v3577_v60, 2 }
 0xb45   : > { %v3588_v48 = vsel %vm1283_vm8, %v3587_v16, %v3586_v8  ;;  %v3598_v28 = vsel %vm1277_vm6, %v3597_v3, %v3596_v1  ;;  %v3591_v59 = vrot.slane %v3570_v15, 1  ;;  %v3605_v12 = vrot.slane %v3578_v6, 1 }
 0xb46   : > { %v3590_v34 = vsel %vm1286_vm9, %v3589_v19, %v3588_v48  ;;  %v3600_v24 = vsel %vm1280_vm7, %v3599_v37, %v3598_v28 }
 0xb47   : > { %v3602_v41 = vsel %vm1283_vm8, %v3601_v45, %v3600_v24  ;;  %v3592_v27 = vsel %vm1289_vm10, %v3591_v59, %v3590_v34 }
 0xb48   : > { %v3604_v17 = vsel %vm1286_vm9, %v3603_v14, %v3602_v41 }
 0xb49   : > { %v3606_v61 = vsel %vm1289_vm10, %v3605_v12, %v3604_v17 }
 0xb4a   : > { %v3607_v50 = vpack.c.b16 %v3606_v61, %v3592_v27 }
 0xb4c   : > { %4013 = vmatmul.mubr.msk.bf16.vlgmr.msra.gmra.mxu0 %vm983_vm3, %v3607_v50 }
 0xc0c   : > { %v3657_v23 = vpop.f32.mrf.mxu0 }
 0xc0d   : > { %v3658_v58 = vadd.f32 %v3841_v5, %v3657_v23 }
 0xc0e   : > { %v4014_v30 = vpop.f32.mrf.mxu0 }
 0xc0f   : > { %3664 = vmax.xlane.f32.xlu0 %v3658_v58 }
 0xc10   : > { %v3660_v57 = vpop.f32.mrf.mxu0 }
 0xc11   : > { %v3661_v53 = vadd.f32 %v3841_v5, %v3660_v57 }
 0xc12   : > { %v4015_v0 = vpop.f32.mrf.mxu0 }
 0xc13   : > { %3666 = vmax.xlane.f32.xlu1 %v3661_v53 }
 0xc98   : > { %v3665_v22 = vpop.xlane.xlu0 %3664 }
 0xc99   : > { %v3668_v39 = vsub.f32 %v3658_v58, %v3665_v22 }
 0xc9b   : > { %v3670_v54 = vmul.f32 1.442695, %v3668_v39 }
 0xc9c   : > { %v3667_v11 = vpop.xlane.xlu1 %3666 }
 0xc9d   : > { %4132 = vpow2.f32 %v3670_v54  ;;  %v3669_v43 = vsub.f32 %v3661_v53, %v3667_v11 }
 0xc9f   : > { %v3672_v63 = vmul.f32 1.442695, %v3669_v43 }
 0xca1   : > { %4134 = vpow2.f32 %v3672_v63 }
 0xcaa   : > { %v4133_v38 = vpop.eup %4132 }
 0xcab   : > { %3674 = vadd.xlane.f32.xlu0 %v4133_v38 }
 0xcae   : > { %v4135_v29 = vpop.eup %4134 }
 0xcaf   : > { %3676 = vadd.xlane.f32.xlu1 %v4135_v29 }
 0xd34   : > { %v3675_v55 = vpop.xlane.xlu0 %3674 }
 0xd35   : > { %4136 = vrcp.f32 %v3675_v55 }
 0xd38   : > { %v3677_v35 = vpop.xlane.xlu1 %3676 }
 0xd39   : > { %4138 = vrcp.f32 %v3677_v35 }
 0xd42   : > { %v4137_v52 = vpop.eup %4136 }
 0xd43   : > { %v3679_v40 = vmul.f32 %v4137_v52, %v4133_v38 }
 0xd45   : > { %3682 = vst [vmem:[%s585_s22] sm:$0xff] %v3679_v40 }
 0xd46   : > { %v4139_v26 = vpop.eup %4138 }
 0xd47   : > { %v3681_v51 = vmul.f32 %v4139_v26, %v4135_v29 }
 0xd49   : > { %3683 = vst [vmem:[%s585_s22 + $0x8] sm:$0xff] %v3681_v51 }
 0xd4a   : > { %4153 = shalt.err (!%p4150_p3)
}
 0xd4b   : > { %s4154_s29 = scalar_lea.hbm %s5578_s26, 256  ;;  %s4158_s1 = scalar_lea.hbm %s5640_s18, 512 }
 0xd4c   : > { %p4155_p4 = scmp.ne.s32.totalorder %s5578_s26, %s4154_s29  ;;  %p4159_p9 = scmp.lt.s32.totalorder %s5578_s26, %s5640_s18 }
 0xd4d   : > { %p4160_p10 = scmp.lt.s32.totalorder %s4158_s1, %s4154_s29 }
 0xd4e   : > { %p4156_p7 = pnand %p4155_p4, %p4342_p5 }
 0xd4f   : > { %p4161_p11 = por %p4160_p10, %p4159_p9 }
 0xd50   : > { %p4157_p8 = pneg %p4156_p7 }
 0xd52   : > { %p4162_p12 = pnand %p4161_p11, %p4157_p8 }
 0xd54   : > { %4165 = shalt.err (!%p4162_p12)
}
 0xd55   : > { %s4207_s21 = smov 128   ;;  %s4208_s25 = smov 8  }
 0xd56   : > { %4017 = dma.vmem_to_hbm [thread:$0]  (%p4342_p5), %s5580_s24, 256, %s5578_s26, %s5582_s20, %s4207_s21, %s4207_s21, %s4208_s25  }
 0xd57 PF: > { %p4023_p13 = scmp.ge.s32.totalorder %s4200_s30, 2  ;;  %s3713_s19 = sand.u32 1, %s4188_s27  }
 0xd58   : > { %s3714_s3 = scalar_lea.sflag [#allocation3], %s3713_s19 }
 0xd59   : > { %p4020_p0 = pnand %p4023_p13, %p4346_p6 }
 0xd5b   : > { %p4021_p1 = pneg %p4020_p0 }
 0xd5d   : > { %4183 = dma.done.wait (%p4021_p1), %s3714_s3, 256  }
 0xd5e   : > { %4185 = vsyncadd (%p4021_p1), %s3714_s3, 4294967040  ;;  %s5666_s30 = sld [smem:[#allocation6_spill]]  ;;  %s5669_s27 = smov %s4192_s28 }
 0xd5f   : > { %s5667_s29 = sld [smem:[#allocation5_spill]] }
 0xd60   : > { %s5668_s5 = sld [smem:[#allocation7_spill]] }
 0xd64   : > { %p28_p2 = scmp.ge.s32.totalorder %s5666_s30, 4  }
 0xd65   : > { %s5670_s28 = smov %s5667_s29 }
 0xd66   : > { %s5671_s29 = smov %s5668_s5  ;;  %30 = sbr.rel (!%p28_p2) target bundleno = 9 (0x9), region = 130 }
 0xd6b   :  { %3719 = vsyncpa [#allocation3], 1 }
 0xd6c   :  { %3721 = vsyncpa [#allocation3 + $0x1], 1 }

// kernel: tpu_custom_call.1
= control target key start
LH: loop header
LB: loop body
LE: loop exit
PB: predicated region body
PF: predicated region fallthrough
CT: control target
= control target key end

     0   :  { %s5622_s0 = inlined_call_operand.vmem [shape: s32[32,8], index: 0, kind: input, shape index: {}]   ;;  %s5623_s1 = inlined_call_operand.vmem [shape: f32[32,8], index: 1, kind: input, shape index: {}]   ;;  %s5624_s2 = inlined_call_operand.vmem [shape: bf16[50,32], index: 2, kind: input, shape index: {}]   ;;  %s5625_s3 = inlined_call_operand.vmem [shape: f32[8,32], index: 3, kind: input, shape index: {}]   ;;  %s5626_s4 = inlined_call_operand.vmem [shape: bf16[32,32], index: 4, kind: input, shape index: {}]   ;;  %s5627_s5 = inlined_call_operand.vmem [shape: bf16[32,32], index: 5, kind: input, shape index: {}]   ;;  %s5628_s6 = inlined_call_operand.vmem [shape: bf16[32,32], index: 6, kind: input, shape index: {}]   ;;  %s5629_s7 = inlined_call_operand.vmem [shape: bf16[32,32], index: 7, kind: input, shape index: {}]   ;;  %s5630_s8 = inlined_call_operand.vmem [shape: f32[1,32], index: 8, kind: input, shape index: {}]   ;;  %s5631_s9 = inlined_call_operand.vmem [shape: f32[1,32], index: 9, kind: input, shape index: {}]   ;;  %s5632_s10 = inlined_call_operand.vmem [shape: bf16[32,64], index: 10, kind: input, shape index: {}]   ;;  %s5633_s11 = inlined_call_operand.vmem [shape: f32[1,64], index: 11, kind: input, shape index: {}]   ;;  %s5634_s12 = inlined_call_operand.vmem [shape: bf16[64,32], index: 12, kind: input, shape index: {}]   ;;  %s5635_s13 = inlined_call_operand.vmem [shape: f32[1,32], index: 13, kind: input, shape index: {}]   ;;  %s5636_s14 = inlined_call_operand.vmem [shape: f32[1,32], index: 14, kind: input, shape index: {}]   ;;  %s5637_s15 = inlined_call_operand.vmem [shape: f32[1,32], index: 15, kind: input, shape index: {}]   ;;  %s5638_s16 = inlined_call_operand.vmem [shape: bf16[32,128], index: 16, kind: input, shape index: {}]   ;;  %s5639_s17 = inlined_call_operand.vmem [shape: f32[1,128], index: 17, kind: input, shape index: {}]   ;;  %s5640_s18 = inlined_call_operand.hbm [shape: f32[32,128], index: 18, kind: output, shape index: {}]  }
   0x1   :  { %5649 = sst [smem:[#allocation8_spill]] %s5622_s0 }
   0x2   :  { %5650 = sst [smem:[#allocation9_spill]] %s5623_s1 }
   0x3   :  { %5651 = sst [smem:[#allocation10_spill]] %s5624_s2 }
   0x4   :  { %5652 = sst [smem:[#allocation11_spill]] %s5625_s3 }
   0x5   :  { %5653 = sst [smem:[#allocation12_spill]] %s5627_s5 }
   0x6   :  { %23 = vsyncpa [#allocation3], 0 }
   0x7   :  { %25 = vsyncpa [#allocation3 + $0x1], 0  ;;  %s4304_s27 = smov 0   ;;  %s4306_s28 = smov 0  }
   0x8   :  { %s4308_s29 = smov 0   ;;  %s4310_s30 = smov 0  }
   0x9 LB: > { %5654 = sst [smem:[#allocation5_spill]] %s4196_s29  ;;  %s4325_s0 = sadd.s32 4294967295, %s4200_s30   ;;  %s4200_s30 = sphi %s4310_s30, %s5666_s30   ;;  %s4196_s29 = sphi %s4308_s29, %s5671_s29   ;;  %s4192_s28 = sphi %s4306_s28, %s5670_s28   ;;  %s4188_s27 = sphi %s4304_s27, %s5669_s27  }
   0xa   : > { %s3772_s19 = sadd.s32 4294967294, %s4200_s30   ;;  %s4329_s1 = sadd.s32 1, %s4200_s30  }
   0xb   : > { %5655 = sst [smem:[#allocation6_spill]] %s4329_s1  ;;  %s426_s20 = sadd.s32 1, %s4196_s29 }
   0xc   : > { %s423_s21 = ssub.s32 %s4200_s30, %s4329_s1  ;;  %p436_p0 = scmp.ne.s32.totalorder %s4196_s29, %s4192_s28 }
   0xd   : > { %p424_p1 = scmp.eq.s32.totalorder %s423_s21, 0  ;;  %p437_p2 = scmp.eq.s32.totalorder %s4325_s0, 1 }
   0xe   : > { %p442_p3 = scmp.ne.s32.totalorder %s4192_s28, %s4188_s27  ;;  %p443_p4 = scmp.eq.s32.totalorder %s3772_s19, 1 }
   0xf   : > { %s4340_s22 = scalar_select %p424_p1, %s4196_s29, %s426_s20  }
  0x10   : > { %p4342_p5 = por %p437_p2, %p436_p0  ;;  %p4346_p6 = por %p443_p4, %p442_p3 }
  0x11   : > { %5656 = sst [smem:[#allocation7_spill]] %s4340_s22  ;;  %p3775_p7 = scmp.ge.s32.totalorder %s4200_s30, 1 }
  0x12   : > { %p527_p8 = scmp.lt.s32.totalorder %s4200_s30, 3 }
  0x14   : > { %p528_p9 = pnand %p3775_p7, %p527_p8 }
  0x15   : > { %s3777_s24 = sshll.u32 (!%p528_p9), %s4325_s0, 1  ;;  %s5659_s19 = sld [smem:[#allocation10_spill]] (!%p528_p9) }
  0x16   : > { %531 = sbr.rel (%p528_p9) target bundleno = 3415 (0xd57), region = 92  ;;  %p587_p10 = scmp.lt.s32.totalorder (!%p528_p9), %s3777_s24, 3 }
  0x17   : > { %s5660_s29 = sld [smem:[#allocation8_spill]] (!%p528_p9) }
  0x18   : > { %s5661_s5 = sld [smem:[#allocation12_spill]] (!%p528_p9) }
  0x19   : > { %s5663_s25 = sld [smem:[#allocation9_spill]] (!%p528_p9) }
  0x1a   : > { %s5664_s3 = sld [smem:[#allocation11_spill]] (!%p528_p9) }
  0x1b   : > { %v602_v0 = vlaneseq  ;;  %v4064_v1 = vld [vmem:[%s5659_s19 + $0x18] ss:$0 sps:$4 sm:$0x11]   ;;  %vm858_vm0 = vcmask 1040384   ;;  %v4065_v4 = vld [vmem:[%s5659_s19 + $0x10] sm:$0xff]   ;;  %s5673_s24 = smov (!%p587_p10, %s3777_s24), 3 }
  0x1c   : > { %4016 = vmatprep.subr.msk.bf16.mxu0 %vm858_vm0, %v4064_v1  ;;  %v860_v3 = vsel %vm858_vm0, %v4064_v1, 0  ;;  %v4066_v7 = vld [vmem:[%s5659_s19 + $0x8] sm:$0xff]   ;;  %s5645_s22 = sshll.u32 %s5673_s24, 3  ;;  %v4067_v15 = vld [vmem:[%s5659_s19] sm:$0xff]   ;;  %v5647_v22 = vmov 0.0   ;;  %vm833_vm5 = vcmask 408576  }
  0x1d   : > { %v4357_v2 = vshrl.u32 %v602_v0, 7  ;;  %3909 = vmatpush3.bf16.msra.mxu0 %v860_v3  ;;  %s590_s1 = scalar_lea.vmem %s5660_s29, %s5645_s22  ;;  %v4418_v34 = vand.u32 127, %v602_v0  ;;  %s5662_s20 = sshll.u32 %s5673_s24, 3 }
  0x1e   : > { %3910 = vmatprep.subr.bf16.mxu0 %v4065_v4  ;;  %v600_v10 = vld [vmem:[%s590_s1] sm:$0xff]  ;;  %v601_v23 = vld [vmem:[%s590_s1 + $0x8] sm:$0xff]  ;;  %s583_s29 = sand.u32 1, %s4192_s28  }
  0x1f   : > { %v4365_v5 = vsub.s32 0, %v4357_v2  ;;  %v4368_v6 = vsub.s32 2, %v4357_v2  ;;  %v4380_v8 = vsub.s32 3, %v4357_v2  ;;  %v4383_v9 = vsub.s32 1, %v4357_v2 }
  0x20   : > { %v4388_v13 = vsub.s32 5, %v4357_v2  ;;  %v4391_v14 = vsub.s32 4, %v4357_v2  ;;  %v4399_v18 = vsub.s32 7, %v4357_v2  ;;  %v4402_v19 = vsub.s32 6, %v4357_v2 }
  0x21   : > { %3911 = vmatpush3.bf16.msra.mxu0 %v4065_v4  ;;  %v621_v11 = vrot.slane %v600_v10, %v4368_v6  ;;  %v607_v12 = vrot.slane %v600_v10, %v4365_v5  ;;  %v628_v16 = vrot.slane %v600_v10, %v4380_v8  ;;  %v614_v17 = vrot.slane %v600_v10, %v4383_v9 }
  0x22   : > { %3912 = vmatprep.subr.bf16.mxu0 %v4066_v7  ;;  %v642_v20 = vrot.slane %v600_v10, %v4388_v13  ;;  %v635_v21 = vrot.slane %v600_v10, %v4391_v14  ;;  %v656_v24 = vrot.slane %v600_v10, %v4399_v18  ;;  %v649_v25 = vrot.slane %v600_v10, %v4402_v19 }
  0x23   : > { %623 = vbcast.lane.b32.xlu1 %v621_v11, 256  ;;  %609 = vbcast.lane.b32.xlu0 %v607_v12, 256  ;;  %v670_v26 = vrot.slane %v601_v23, %v4383_v9  ;;  %v663_v27 = vrot.slane %v601_v23, %v4365_v5  ;;  %v684_v28 = vrot.slane %v601_v23, %v4380_v8 }
  0x24   : > { %v677_v29 = vrot.slane %v601_v23, %v4368_v6  ;;  %v698_v30 = vrot.slane %v601_v23, %v4388_v13  ;;  %v691_v31 = vrot.slane %v601_v23, %v4391_v14  ;;  %v712_v32 = vrot.slane %v601_v23, %v4399_v18 }
  0x25   : > { %3913 = vmatpush3.bf16.msra.mxu0 %v4066_v7  ;;  %v705_v33 = vrot.slane %v601_v23, %v4402_v19  ;;  %v4070_v23 = vld [vmem:[%s5626_s4 + $0x8] sm:$0xff]  }
  0x26   : > { %3914 = vmatprep.subr.bf16.mxu0 %v4067_v15 }
  0x27   : > { %630 = vbcast.lane.b32.xlu1 %v628_v16, 256  ;;  %616 = vbcast.lane.b32.xlu0 %v614_v17, 256 }
  0x29   : > { %3915 = vmatpush3.bf16.msra.mxu0 %v4067_v15 }
  0x2a   : > { %3972 = vmatprep.subr.bf16.mxu0 %v5647_v22 }
  0x2b   : > { %644 = vbcast.lane.b32.xlu1 %v642_v20, 256  ;;  %637 = vbcast.lane.b32.xlu0 %v635_v21, 256  ;;  %v4068_v20 = vld [vmem:[%s5661_s5 + $0x8] sm:$0xff]   ;;  %v4069_v21 = vld [vmem:[%s5661_s5] sm:$0xff]   ;;  %s596_s5 = scalar_lea.vmem %s5663_s25, %s5662_s20  ;;  %s3776_s25 = sshll.u32 %s583_s29, 4 }
  0x2c   : > { %3932 = vmatprep.subr.bf16.mxu1 %v4068_v20  ;;  %s585_s22 = scalar_lea.vmem [#allocation2], %s3776_s25  ;;  %s5582_s20 = scalar_lea.sflag [#allocation3], %s583_s29 }
  0x2d   : > { %3933 = vmatpush3.bf16.msra.mxu1 %v4068_v20  ;;  %s3698_s24 = sshll.u32 %s585_s22, 4  ;;  %s5580_s24 = int_to_ptr.vmem [resolvable:$true] %s3698_s24 }
  0x2e   : > { %3934 = vmatprep.subr.bf16.mxu1 %v4069_v21  ;;  %s4140_s21 = scalar_lea.vmem %s5580_s24, 256 }
  0x2f   : > { %658 = vbcast.lane.b32.xlu1 %v656_v24, 256  ;;  %651 = vbcast.lane.b32.xlu0 %v649_v25, 256  ;;  %v4071_v24 = vld [vmem:[%s5626_s4] sm:$0xff]   ;;  %v4072_v25 = vld [vmem:[%s5628_s6 + $0x8] sm:$0xff]   ;;  %p4141_p11 = scmp.ne.s32.totalorder %s5580_s24, %s4140_s21 }
  0x31   : > { %3935 = vmatpush3.bf16.msra.mxu1 %v4069_v21  ;;  %p4142_p12 = pnand %p4141_p11, %p4342_p5 }
  0x32   : > { %3952 = vmatprep.subr.bf16.mxu1 %v4072_v25 }
  0x33   : > { %672 = vbcast.lane.b32.xlu1 %v670_v26, 256  ;;  %665 = vbcast.lane.b32.xlu0 %v663_v27, 256  ;;  %v1622_v26 = vld [vmem:[%s596_s5] sm:$0xff]  ;;  %v1623_v27 = vld [vmem:[%s596_s5 + $0x8] sm:$0xff]  ;;  %s3858_s5 = sshll.u32 %s4325_s0, 8  ;;  %p4143_p13 = pneg %p4142_p12 }
  0x34   : > { %s5578_s26 = scalar_lea.hbm %s5640_s18, %s3858_s5  ;;  %s4206_s0 = smov [#allocation2]  }
  0x35   : > { %s4144_s25 = sshll.u32 %s4206_s0, 4  ;;  %s4145_s25 = int_to_ptr.vmem [resolvable:$false] %s4144_s25 }
  0x36   : > { %s4146_s19 = scalar_lea.vmem %s4145_s25, 512  ;;  %p4147_p0 = scmp.lt.s32.totalorder %s5580_s24, %s4145_s25 }
  0x37   : > { %686 = vbcast.lane.b32.xlu1 %v684_v28, 256  ;;  %679 = vbcast.lane.b32.xlu0 %v677_v29, 256  ;;  %v1624_v28 = vsub.f32 1.0, %v1622_v26  ;;  %v1625_v29 = vsub.f32 1.0, %v1623_v27  ;;  %p4148_p1 = scmp.lt.s32.totalorder %s4146_s19, %s4140_s21 }
  0x39   : > { %p4149_p2 = por %p4148_p1, %p4147_p0 }
  0x3b   : > { %700 = vbcast.lane.b32.xlu1 %v698_v30, 256  ;;  %693 = vbcast.lane.b32.xlu0 %v691_v31, 256  ;;  %v4484_v30 = vmul.f32 -1e+09, %v1624_v28  ;;  %v4486_v31 = vmul.f32 -1e+09, %v1625_v29  ;;  %p4150_p3 = pnand %p4149_p2, %p4143_p13 }
  0x3f   : > { %714 = vbcast.lane.b32.xlu1 %v712_v32, 256  ;;  %707 = vbcast.lane.b32.xlu0 %v705_v33, 256  ;;  %v1633_v32 = vrot.slane %v4484_v30, %v4365_v5  ;;  %v1640_v33 = vrot.slane %v4484_v30, %v4383_v9 }
  0x43   : > { %1635 = vbcast.lane.b32.xlu1 %v1633_v32, 256  ;;  %1642 = vbcast.lane.b32.xlu0 %v1640_v33, 256 }
  0x95   : > { %v624_v35 = vpop.permute.xlu1 %623  ;;  %v610_v36 = vpop.permute.xlu0 %609 }
  0x96   : > { %vm718_vm1 = vcmp.eq.s32.totalorder %v624_v35, %v4418_v34  ;;  %vm716_vm2 = vcmp.eq.s32.totalorder %v610_v36, %v4418_v34  ;;  %v1689_v35 = vrot.slane %v4486_v31, %v4365_v5  ;;  %v1647_v36 = vrot.slane %v4484_v30, %v4368_v6 }
  0x97   : > { %v734_v39 = vsel %vm718_vm1, 1.0, %v5647_v22  ;;  %v732_v41 = vsel %vm716_vm2, 1.0, %v5647_v22  ;;  %vm4203_vm2 = vmmov 0  }
  0x98   : > { %1691 = vbcast.lane.b32.xlu1 %v1689_v35, 256  ;;  %1649 = vbcast.lane.b32.xlu0 %v1647_v36, 256 }
  0x99   : > { %v631_v37 = vpop.permute.xlu1 %630  ;;  %v617_v38 = vpop.permute.xlu0 %616 }
  0x9a   : > { %vm719_vm3 = vcmp.eq.s32.totalorder %v631_v37, %v4418_v34  ;;  %vm717_vm4 = vcmp.eq.s32.totalorder %v617_v38, %v4418_v34  ;;  %v1696_v37 = vrot.slane %v4486_v31, %v4383_v9  ;;  %v1654_v38 = vrot.slane %v4484_v30, %v4380_v8 }
  0x9b   : > { %v735_v40 = vsel %vm719_vm3, 1.0, %v5647_v22  ;;  %v733_v42 = vsel %vm717_vm4, 1.0, %v5647_v22  ;;  %vm983_vm3 = vcmask 261120   ;;  %vm1271_vm4 = vcmask 1041409  }
  0x9c   : > { %v3851_v43 = vpack.c.bf16 %v735_v40, %v734_v39  ;;  %v3850_v44 = vpack.c.bf16 %v733_v42, %v732_v41  ;;  %1698 = vbcast.lane.b32.xlu1 %v1696_v37, 256  ;;  %v1703_v39 = vrot.slane %v4486_v31, %v4368_v6  ;;  %1656 = vbcast.lane.b32.xlu0 %v1654_v38, 256 }
  0x9d   : > { %v645_v45 = vpop.permute.xlu1 %644  ;;  %v638_v46 = vpop.permute.xlu0 %637  ;;  %v1710_v40 = vrot.slane %v4486_v31, %v4380_v8  ;;  %v1717_v41 = vrot.slane %v4486_v31, %v4391_v14 }
  0x9e   : > { %vm721_vm6 = vcmp.eq.s32.totalorder %v645_v45, %v4418_v34  ;;  %3916 = vmatprep.mubr.msk.bf16.mxu0 %vm833_vm5, %v3850_v44  ;;  %vm720_vm7 = vcmp.eq.s32.totalorder %v638_v46, %v4418_v34  ;;  %v4509_v45 = vld [vmem:[%s5664_s3] sm:$0xff] }
  0x9f   : > { %v737_v47 = vsel %vm721_vm6, 1.0, %v5647_v22  ;;  %v736_v48 = vsel %vm720_vm7, 1.0, %v5647_v22  ;;  %3917 = vmatmul.mubr.msk.bf16.vlgmr.msra.gmra.mxu0 %vm833_vm5, %v3851_v43  ;;  %vm1277_vm6 = vcmask 1043459   ;;  %vm1280_vm7 = vcmask 1044484  }
  0xa0   : > { %v3852_v49 = vpack.c.bf16 %v737_v47, %v736_v48  ;;  %3973 = vmatpush3.bf16.msra.mxu0 %v4070_v23  ;;  %1705 = vbcast.lane.b32.xlu1 %v1703_v39, 256 }
  0xa1   : > { %v659_v50 = vpop.permute.xlu1 %658  ;;  %v652_v51 = vpop.permute.xlu0 %651  ;;  %3974 = vmatprep.subr.bf16.mxu0 %v5647_v22 }
  0xa2   : > { %vm723_vm8 = vcmp.eq.s32.totalorder %v659_v50, %v4418_v34  ;;  %vm722_vm9 = vcmp.eq.s32.totalorder %v652_v51, %v4418_v34  ;;  %3920 = vmatprep.mubr.msk.bf16.mxu0 %vm833_vm5, %v3852_v49 }
  0xa3   : > { %v739_v52 = vsel %vm723_vm8, 1.0, %v5647_v22  ;;  %v738_v53 = vsel %vm722_vm9, 1.0, %v5647_v22  ;;  %vm1283_vm8 = vcmask 1045509   ;;  %vm1286_vm9 = vcmask 1046534  }
  0xa4   : > { %v3853_v54 = vpack.c.bf16 %v739_v52, %v738_v53  ;;  %3975 = vmatpush3.bf16.msra.mxu0 %v4071_v24  ;;  %1712 = vbcast.lane.b32.xlu1 %v1710_v40, 256 }
  0xa5   : > { %v673_v55 = vpop.permute.xlu1 %672  ;;  %v666_v56 = vpop.permute.xlu0 %665  ;;  %3980 = vmatprep.subr.bf16.mxu0 %v5647_v22 }
  0xa6   : > { %vm725_vm10 = vcmp.eq.s32.totalorder %v673_v55, %v4418_v34  ;;  %vm724_vm11 = vcmp.eq.s32.totalorder %v666_v56, %v4418_v34  ;;  %v4073_v55 = vld [vmem:[%s5628_s6] sm:$0xff]  }
  0xa7   : > { %v741_v57 = vsel %vm725_vm10, 1.0, %v5647_v22  ;;  %v740_v58 = vsel %vm724_vm11, 1.0, %v5647_v22  ;;  %3921 = vmatmul.mubr.msk.bf16.gmra.mxu0 %vm833_vm5, %v3853_v54  ;;  %vm1289_vm10 = vcmask 1047559   ;;  %vm1918_vm11 = vcmask 64512  }
  0xa8   : > { %v3854_v59 = vpack.c.bf16 %v741_v57, %v740_v58  ;;  %1719 = vbcast.lane.b32.xlu1 %v1717_v41, 256 }
  0xa9   : > { %v687_v60 = vpop.permute.xlu1 %686  ;;  %v680_v61 = vpop.permute.xlu0 %679 }
  0xaa   : > { %vm727_vm12 = vcmp.eq.s32.totalorder %v687_v60, %v4418_v34  ;;  %vm726_vm13 = vcmp.eq.s32.totalorder %v680_v61, %v4418_v34  ;;  %3924 = vmatprep.mubr.msk.bf16.mxu0 %vm833_vm5, %v3854_v59 }
  0xab   : > { %v743_v62 = vsel %vm727_vm12, 1.0, %v5647_v22  ;;  %v742_v63 = vsel %vm726_vm13, 1.0, %v5647_v22  ;;  %vm3157_vm12 = vcmask 523264  }
  0xac   : > { %v3855_v0 = vpack.c.bf16 %v743_v62, %v742_v63 }
  0xad   : > { %v701_v1 = vpop.permute.xlu1 %700  ;;  %v694_v3 = vpop.permute.xlu0 %693 }
  0xae   : > { %vm729_vm14 = vcmp.eq.s32.totalorder %v701_v1, %v4418_v34  ;;  %vm728_vm15 = vcmp.eq.s32.totalorder %v694_v3, %v4418_v34 }
  0xaf   : > { %v745_v4 = vsel %vm729_vm14, 1.0, %v5647_v22  ;;  %v744_v7 = vsel %vm728_vm15, 1.0, %v5647_v22  ;;  %3925 = vmatmul.mubr.msk.bf16.gmra.mxu0 %vm833_vm5, %v3855_v0 }
  0xb0   : > { %v3856_v10 = vpack.c.bf16 %v745_v4, %v744_v7 }
  0xb1   : > { %v715_v11 = vpop.permute.xlu1 %714  ;;  %v708_v12 = vpop.permute.xlu0 %707 }
  0xb2   : > { %vm731_vm0 = vcmp.eq.s32.totalorder %v715_v11, %v4418_v34  ;;  %vm730_vm1 = vcmp.eq.s32.totalorder %v708_v12, %v4418_v34  ;;  %3928 = vmatprep.mubr.msk.bf16.mxu0 %vm833_vm5, %v3856_v10 }
  0xb3   : > { %v747_v15 = vsel %vm731_vm0, 1.0, %v5647_v22  ;;  %v746_v16 = vsel %vm730_vm1, 1.0, %v5647_v22 }
  0xb4   : > { %v3857_v17 = vpack.c.bf16 %v747_v15, %v746_v16 }
  0xb7   : > { %3929 = vmatmul.mubr.msk.bf16.gmra.mxu0 %vm833_vm5, %v3857_v17  ;;  %vm1274_vm5 = vcmask 1042434  }
  0xb8   : > { %3976 = vmatprep.mubr.msk.bf16.mxu0 %vm4203_vm2, %v5647_v22 }
 0x15f   : > { %v3918_v42 = vpop.f32.mrf.mxu0 }
 0x160   : > { %v4521_v51 = vadd.f32 %v3918_v42, %v4509_v45 }
 0x161   : > { %v896_v43 = vpop.f32.mrf.mxu0 }
 0x162   : > { %v4515_v48 = vadd.f32 %v896_v43, %v4509_v45  ;;  %v1220_v63 = vpack.c.bf16 %v4521_v51, %v4521_v51 }
 0x163   : > { %v3919_v44 = vpop.f32.mrf.mxu0 }
 0x164   : > { %v4512_v47 = vadd.f32 %v3919_v44, %v4509_v45  ;;  %v1218_v7 = vpack.c.bf16 %v4515_v48, %v4515_v48  ;;  %v1256_v16 = vunpack.c.l.b16 %v1220_v63 }
 0x165   : > { %v899_v46 = vpop.f32.mrf.mxu0 }
 0x166   : > { %v4518_v49 = vadd.f32 %v899_v46, %v4509_v45  ;;  %v4529_v54 = vpack.c.bf16 %v4512_v47, %v4521_v51  ;;  %v1221_v12 = vpack.c.bf16 %v4512_v47, %v4512_v47  ;;  %v1273_v33 = vrot.slane %v1256_v16, 6 }
 0x167   : > { %v3922_v50 = vpop.f32.mrf.mxu0 }
 0x168   : > { %v4525_v53 = vpack.c.bf16 %v4518_v49, %v4515_v48  ;;  %v1219_v57 = vpack.c.bf16 %v4518_v49, %v4518_v49  ;;  %v4552_v1 = vadd.f32 %v3922_v50, %v4509_v45  ;;  %v1257_v27 = vunpack.c.l.b16 %v1221_v12 }
 0x169   : > { %v912_v52 = vpop.f32.mrf.mxu0 }
 0x16a   : > { %3936 = vmatprep.mubr.msk.bf16.mxu1 %vm983_vm3, %v4525_v53  ;;  %v4544_v60 = vadd.f32 %v912_v52, %v4509_v45  ;;  %v1255_v0 = vunpack.c.l.b16 %v1219_v57  ;;  %v1276_v50 = vrot.slane %v1257_v27, 5 }
 0x16b   : > { %v3923_v56 = vpop.f32.mrf.mxu0  ;;  %3937 = vmatmul.mubr.msk.bf16.vlgmr.msra.gmra.mxu1 %vm983_vm3, %v4529_v54 }
 0x16c   : > { %3953 = vmatpush3.bf16.msra.mxu1 %v4072_v25  ;;  %v4541_v59 = vadd.f32 %v3923_v56, %v4509_v45  ;;  %v1270_v17 = vrot.slane %v1255_v0, 7  ;;  %v1222_v20 = vpack.c.bf16 %v4544_v60, %v4544_v60  ;;  %v1254_v25 = vunpack.c.l.b16 %v1218_v7 }
 0x16d   : > { %v915_v58 = vpop.f32.mrf.mxu0  ;;  %3954 = vmatprep.subr.bf16.mxu1 %v4073_v55 }
 0x16e   : > { %v4547_v61 = vadd.f32 %v915_v58, %v4509_v45  ;;  %v4562_v10 = vpack.c.bf16 %v4541_v59, %v4552_v1  ;;  %v1272_v35 = vsel %vm1271_vm4, %v1270_v17, %v1254_v25  ;;  %v1258_v36 = vunpack.c.l.b16 %v1222_v20 }
 0x16f   : > { %v3926_v62 = vpop.f32.mrf.mxu0  ;;  %v1275_v52 = vsel %vm1274_vm5, %v1273_v33, %v1272_v35  ;;  %v1224_v58 = vpack.c.bf16 %v4552_v1, %v4552_v1 }
 0x170   : > { %v4556_v3 = vpack.c.bf16 %v4547_v61, %v4544_v60  ;;  %3955 = vmatpush3.bf16.msra.mxu1 %v4073_v55  ;;  %v4565_v11 = vadd.f32 %v3926_v62, %v4509_v45  ;;  %v1223_v28 = vpack.c.bf16 %v4547_v61, %v4547_v61  ;;  %v1225_v62 = vpack.c.bf16 %v4541_v59, %v4541_v59 }
 0x171   : > { %v928_v4 = vpop.f32.mrf.mxu0  ;;  %3996 = vmatprep.subr.bf16.mxu1 %v5647_v22  ;;  %v1278_v17 = vsel %vm1277_vm6, %v1276_v50, %v1275_v52  ;;  %v1260_v33 = vunpack.c.l.b16 %v1224_v58 }
 0x172   : > { %3940 = vmatprep.mubr.msk.bf16.mxu1 %vm983_vm3, %v4556_v3  ;;  %v4577_v21 = vadd.f32 %v928_v4, %v4509_v45  ;;  %v1228_v26 = vpack.c.bf16 %v4565_v11, %v4565_v11  ;;  %v1259_v55 = vunpack.c.l.b16 %v1223_v28  ;;  %v1279_v4 = vrot.slane %v1258_v36, 4 }
 0x173   : > { %v3927_v15 = vpop.f32.mrf.mxu0  ;;  %3941 = vmatmul.mubr.msk.bf16.gmra.mxu1 %vm983_vm3, %v4562_v10  ;;  %v1261_v36 = vunpack.c.l.b16 %v1225_v62  ;;  %v1285_v58 = vrot.slane %v1260_v33, 2 }
 0x174   : > { %v4580_v23 = vadd.f32 %v3927_v15, %v4509_v45  ;;  %v1226_v37 = vpack.c.bf16 %v4577_v21, %v4577_v21  ;;  %v1264_v42 = vunpack.c.l.b16 %v1228_v26  ;;  %v1282_v26 = vrot.slane %v1259_v55, 3 }
 0x175   : > { %v931_v24 = vpop.f32.mrf.mxu0 }
 0x176   : > { %v4587_v29 = vadd.f32 %v931_v24, %v4509_v45  ;;  %v1229_v38 = vpack.c.bf16 %v4580_v23, %v4580_v23  ;;  %v4602_v43 = vpack.c.bf16 %v4580_v23, %v4565_v11  ;;  %v1262_v7 = vunpack.c.l.b16 %v1226_v37 }
 0x177   : > { %v3930_v32 = vpop.f32.mrf.mxu0  ;;  %v1293_v20 = vrot.slane %v1264_v42, 6 }
 0x178   : > { %v4596_v39 = vpack.c.bf16 %v4587_v29, %v4577_v21  ;;  %v1227_v40 = vpack.c.bf16 %v4587_v29, %v4587_v29  ;;  %v4605_v44 = vadd.f32 %v3930_v32, %v4509_v45  ;;  %v1265_v12 = vunpack.c.l.b16 %v1229_v38 }
 0x179   : > { %v944_v41 = vpop.f32.mrf.mxu0 }
 0x17a   : > { %v4608_v46 = vadd.f32 %v944_v41, %v4509_v45  ;;  %v1263_v56 = vunpack.c.l.b16 %v1227_v40  ;;  %3944 = vmatprep.mubr.msk.bf16.mxu1 %vm983_vm3, %v4596_v39  ;;  %v1232_v24 = vpack.c.bf16 %v4605_v44, %v4605_v44  ;;  %v1295_v37 = vrot.slane %v1265_v12, 5 }
 0x17b   : > { %v3931_v57 = vpop.f32.mrf.mxu0  ;;  %3945 = vmatmul.mubr.msk.bf16.gmra.mxu1 %vm983_vm3, %v4602_v43  ;;  %v1281_v41 = vsel %vm1280_vm7, %v1279_v4, %v1278_v17  ;;  %v1288_v12 = vrot.slane %v1261_v36, 1  ;;  %v4204_v36 = vmov 1966171168  }
 0x17c   : > { %v1230_v63 = vpack.c.bf16 %v4608_v46, %v4608_v46  ;;  %v4620_v0 = vadd.f32 %v3931_v57, %v4509_v45  ;;  %v1291_v15 = vrot.slane %v1263_v56, 7  ;;  %v1268_v42 = vunpack.c.l.b16 %v1232_v24 }
 0x17d   : > { %v947_v16 = vpop.f32.mrf.mxu0  ;;  %v1284_v52 = vsel %vm1283_vm8, %v1282_v26, %v1281_v41 }
 0x17e   : > { %v1266_v25 = vunpack.c.l.b16 %v1230_v63  ;;  %v1292_v27 = vsel %vm1271_vm4, %v1291_v15, %v1262_v7  ;;  %v1233_v28 = vpack.c.bf16 %v4620_v0, %v4620_v0  ;;  %v4631_v32 = vadd.f32 %v947_v16, %v4509_v45 }
 0x17f   : > { %v1294_v35 = vsel %vm1274_vm5, %v1293_v20, %v1292_v27  ;;  %v966_v45 = vpack.c.bf16 %v4620_v0, %v4605_v44  ;;  %v1287_v63 = vsel %vm1286_vm9, %v1285_v58, %v1284_v52  ;;  %v1301_v4 = vrot.slane %v1268_v42, 2 }
 0x180   : > { %v965_v38 = vpack.c.bf16 %v4631_v32, %v4608_v46  ;;  %v1231_v40 = vpack.c.bf16 %v4631_v32, %v4631_v32  ;;  %v1297_v50 = vrot.slane %v1266_v25, 4  ;;  %v1296_v55 = vsel %vm1277_vm6, %v1295_v37, %v1294_v35 }
 0x181   : > { %v1269_v56 = vunpack.c.l.b16 %v1233_v28  ;;  %v1290_v20 = vsel %vm1289_vm10, %v1288_v12, %v1287_v63  ;;  %v1366_v37 = vunpack.c.l.s4 %v4204_v36 }
 0x182   : > { %v1267_v57 = vunpack.c.l.b16 %v1231_v40  ;;  %3948 = vmatprep.mubr.msk.bf16.mxu1 %vm983_vm3, %v965_v38  ;;  %v1298_v7 = vsel %vm1280_vm7, %v1297_v50, %v1296_v55 }
 0x183   : > { %3949 = vmatmul.mubr.msk.bf16.gmra.mxu1 %vm983_vm3, %v966_v45  ;;  %v1303_v15 = vrot.slane %v1269_v56, 1  ;;  %v1367_v40 = vunpack.c.0.s8 %v1366_v37 }
 0x184   : > { %v1299_v62 = vrot.slane %v1267_v57, 3  ;;  %3956 = vmatprep.mubr.msk.bf16.mxu1 %vm983_vm3, %v4525_v53  ;;  %v1661_v53 = vrot.slane %v4484_v30, %v4391_v14 }
 0x185   : > { %v4687_v42 = vsub.s32 %v1367_v40, %v4357_v2 }
 0x186   : > { %v1300_v16 = vsel %vm1283_vm8, %v1299_v62, %v1298_v7  ;;  %1663 = vbcast.lane.b32.xlu0 %v1661_v53, 256 }
 0x187   : > { %v1302_v17 = vsel %vm1286_vm9, %v1301_v4, %v1300_v16 }
 0x188   : > { %v1304_v24 = vsel %vm1289_vm10, %v1303_v15, %v1302_v17 }
 0x189   : > { %v1305_v25 = vpack.c.b16 %v1304_v24, %v1290_v20 }
 0x18b   : > { %3957 = vmatmul.mubr.msk.bf16.vlgmr.msra.gmra.mxu1 %vm983_vm3, %v4529_v54  ;;  %3977 = vmatmul.mubr.msk.bf16.vlgmr.msra.gmra.mxu0 %vm983_vm3, %v1305_v25  ;;  %v1724_v54 = vrot.slane %v4486_v31, %v4388_v13 }
 0x18c   : > { %3960 = vmatprep.mubr.msk.bf16.mxu1 %vm983_vm3, %v4556_v3  ;;  %3984 = vmatprep.mubr.msk.bf16.mxu0 %vm4203_vm2, %v5647_v22  ;;  %v1668_v3 = vrot.slane %v4484_v30, %v4388_v13 }
 0x18d   : > { %1726 = vbcast.lane.b32.xlu1 %v1724_v54, 256 }
 0x18e   : > { %1670 = vbcast.lane.b32.xlu0 %v1668_v3, 256 }
 0x193   : > { %3961 = vmatmul.mubr.msk.bf16.gmra.mxu1 %vm983_vm3, %v4562_v10  ;;  %v1731_v10 = vrot.slane %v4486_v31, %v4402_v19 }
 0x194   : > { %3964 = vmatprep.mubr.msk.bf16.mxu1 %vm983_vm3, %v4596_v39  ;;  %v1675_v39 = vrot.slane %v4484_v30, %v4402_v19 }
 0x195   : > { %1733 = vbcast.lane.b32.xlu1 %v1731_v10, 256 }
 0x196   : > { %1677 = vbcast.lane.b32.xlu0 %v1675_v39, 256 }
 0x19b   : > { %3965 = vmatmul.mubr.msk.bf16.gmra.mxu1 %vm983_vm3, %v4602_v43 }
 0x19c   : > { %3968 = vmatprep.mubr.msk.bf16.mxu1 %vm983_vm3, %v965_v38 }
 0x1a3   : > { %3969 = vmatmul.mubr.msk.bf16.gmra.mxu1 %vm983_vm3, %v966_v45 }
 0x1a4   : > { %4004 = vmatprep.mubr.msk.bf16.mxu1 %vm4203_vm2, %v5647_v22 }
 0x22b   : > { %v3938_v43 = vpop.f32.mrf.mxu1 }
 0x22d   : > { %v1042_v26 = vpop.f32.mrf.mxu1 }
 0x22f   : > { %v3939_v27 = vpop.f32.mrf.mxu1 }
 0x231   : > { %v1045_v28 = vpop.f32.mrf.mxu1 }
 0x233   : > { %v4680_v33 = vpop.f32.mrf.mxu1 }
 0x235   : > { %v1058_v35 = vpop.f32.mrf.mxu1 }
 0x237   : > { %v4682_v38 = vpop.f32.mrf.mxu1 }
 0x239   : > { %v4684_v41 = vpop.f32.mrf.mxu1 }
 0x23b   : > { %v3946_v45 = vpop.f32.mrf.mxu1 }
 0x23d   : > { %v1074_v4 = vpop.f32.mrf.mxu1 }
 0x23f   : > { %v3947_v39 = vpop.f32.mrf.mxu1 }
 0x24b   : > { %v1355_v50 = vpop.f32.mrf.mxu0 }
 0x24c   : > { %v1364_v52 = vcombine.high %v1355_v50, %v1355_v50  ;;  %v1371_v55 = vrot.slane %v1355_v50, %v4687_v42 }
 0x24d   : > { %v3978_v56 = vpop.f32.mrf.mxu0 }
 0x24e   : > { %v1378_v57 = vrot.slane %v1364_v52, %v4687_v42  ;;  %v1379_v58 = vcombine.high %v1371_v55, %v1371_v55  ;;  %v1387_v62 = vrot.slane %v1371_v55, %v4687_v42 }
 0x24f   : > { %v1358_v63 = vpop.f32.mrf.mxu0 }
 0x250   : > { %v1394_v7 = vrot.slane %v1378_v57, %v4687_v42  ;;  %v1401_v12 = vrot.slane %v1379_v58, %v4687_v42  ;;  %v1409_v15 = vcombine.high %v1387_v62, %v1387_v62  ;;  %v1413_v16 = vcombine.high %v1358_v63, %v1358_v63 }
 0x251   : > { %v1420_v17 = vrot.slane %v1358_v63, %v4687_v42  ;;  %v3979_v20 = vpop.f32.mrf.mxu0  ;;  %v1465_v24 = vrot.slane %v1387_v62, %v4365_v5  ;;  %v1380_v36 = vcombine.high %v1378_v57, %v1378_v57 }
 0x252   : > { %v1469_v25 = vrot.slane %v1401_v12, %v4365_v5  ;;  %v1473_v53 = vrot.slane %v1409_v15, %v4365_v5  ;;  %v1481_v40 = vrot.slane %v1394_v7, %v4365_v5  ;;  %v1427_v50 = vrot.slane %v1413_v16, %v4687_v42 }
 0x253   : > { %v1428_v54 = vcombine.high %v1420_v17, %v1420_v17  ;;  %v1436_v3 = vrot.slane %v1420_v17, %v4687_v42  ;;  %v1542_v10 = vmul.f32 %v1465_v24, %v1042_v26  ;;  %v1411_v56 = vcombine.high %v1401_v12, %v1401_v12 }
 0x254   : > { %v1543_v37 = vmul.f32 %v1469_v25, %v1045_v28  ;;  %v1544_v55 = vmul.f32 %v3938_v43, %v1473_v53  ;;  %v1077_v28 = vpop.f32.mrf.mxu1  ;;  %v1443_v17 = vrot.slane %v1427_v50, %v4687_v42  ;;  %v1546_v20 = vmul.f32 %v1481_v40, %v1058_v35 }
 0x255   : > { %v1450_v52 = vrot.slane %v1428_v54, %v4687_v42  ;;  %v1458_v58 = vcombine.high %v1436_v3, %v1436_v3  ;;  %v1558_v62 = vsel %vm983_vm3, %v1542_v10, 0.0  ;;  %v1497_v15 = vrot.slane %v1436_v3, %v4365_v5 }
 0x256   : > { %v1561_v63 = vsel %vm983_vm3, %v1543_v37, 0.0  ;;  %1559 = vadd.xlane.f32.xlu0 %v1558_v62  ;;  %v1564_v16 = vsel %vm983_vm3, %v1544_v55, 0.0  ;;  %v1477_v43 = vrot.slane %v1411_v56, %v4365_v5  ;;  %v1408_v53 = vrot.slane %v1380_v36, %v4687_v42  ;;  %v3950_v54 = vpop.f32.mrf.mxu1 }
 0x257   : > { %1562 = vadd.xlane.f32.xlu1 %v1561_v63  ;;  %v1501_v26 = vrot.slane %v1450_v52, %v4365_v5  ;;  %v1550_v57 = vmul.f32 %v1497_v15, %v1074_v4  ;;  %v1505_v25 = vrot.slane %v1458_v58, %v4365_v5  ;;  %v1429_v3 = vcombine.high %v1427_v50, %v1427_v50 }
 0x258   : > { %v1545_v10 = vmul.f32 %v3939_v27, %v1477_v43  ;;  %v1513_v4 = vrot.slane %v1443_v17, %v4365_v5  ;;  %v1460_v37 = vcombine.high %v1450_v52, %v1450_v52  ;;  %v1410_v62 = vcombine.high %v1394_v7, %v1394_v7  ;;  %v1090_v58 = vpop.f32.mrf.mxu1 }
 0x259   : > { %v1582_v12 = vsel %vm983_vm3, %v1550_v57, 0.0  ;;  %v1551_v24 = vmul.f32 %v1501_v26, %v1077_v28  ;;  %v1570_v40 = vsel %vm983_vm3, %v1546_v20, 0.0  ;;  %v1552_v55 = vmul.f32 %v3946_v45, %v1505_v25 }
 0x25a   : > { %1583 = vadd.xlane.f32.xlu0 %v1582_v12  ;;  %v1485_v56 = vrot.slane %v1408_v53, %v4365_v5  ;;  %v1567_v36 = vsel %vm983_vm3, %v1545_v10, 0.0  ;;  %v1554_v63 = vmul.f32 %v1513_v4, %v1090_v58  ;;  %v1509_v50 = vrot.slane %v1460_v37, %v4365_v5  ;;  %v3951_v28 = vpop.f32.mrf.mxu1 }
 0x25b   : > { %1565 = vadd.xlane.f32.xlu1 %v1564_v16  ;;  %v1585_v35 = vsel %vm983_vm3, %v1551_v24, 0.0  ;;  %v1489_v27 = vrot.slane %v1410_v62, %v4365_v5  ;;  %v1588_v52 = vsel %vm983_vm3, %v1552_v55, 0.0  ;;  %v1457_v15 = vrot.slane %v1429_v3, %v4687_v42 }
 0x25c   : > { %v1547_v7 = vmul.f32 %v1485_v56, %v4684_v41  ;;  %v1412_v26 = vcombine.high %v1408_v53, %v1408_v53  ;;  %v4205_v45 = vmov 0   ;;  %v1594_v57 = vsel %vm983_vm3, %v1554_v63, 0.0  ;;  %v1093_v42 = vpop.f32.mrf.mxu1 }
 0x25d   : > { %4062 = vset.pattern.permute.xlu0 %v4205_v45  ;;  %4063 = vset.pattern.permute.xlu1 %v4205_v45  ;;  %v1553_v16 = vmul.f32 %v3947_v39, %v1509_v50  ;;  %v1548_v20 = vmul.f32 %v4680_v33, %v1489_v27  ;;  %v1517_v12 = vrot.slane %v1457_v15, %v4365_v5 }
 0x25e   : > { %1586 = vadd.xlane.f32.xlu0 %v1585_v35  ;;  %v1573_v43 = vsel %vm983_vm3, %v1547_v7, 0.0  ;;  %v1493_v41 = vrot.slane %v1412_v26, %v4365_v5  ;;  %v1459_v24 = vcombine.high %v1443_v17, %v1443_v17  ;;  %v1461_v53 = vcombine.high %v1457_v15, %v1457_v15 }
 0x25f   : > { %1571 = vadd.xlane.f32.xlu1 %v1570_v40  ;;  %v1591_v25 = vsel %vm983_vm3, %v1553_v16, 0.0  ;;  %v1576_v3 = vsel %vm983_vm3, %v1548_v20, 0.0  ;;  %v1555_v10 = vmul.f32 %v1517_v12, %v1093_v42  ;;  %v1682_v56 = vrot.slane %v4484_v30, %v4399_v18 }
 0x260   : > { %v1549_v39 = vmul.f32 %v4682_v38, %v1493_v41  ;;  %v1521_v33 = vrot.slane %v1459_v24, %v4365_v5  ;;  %v1525_v62 = vrot.slane %v1461_v53, %v4365_v5  ;;  %v1738_v38 = vrot.slane %v4486_v31, %v4399_v18 }
 0x261   : > { %v1597_v4 = vsel %vm983_vm3, %v1555_v10, 0.0 }
 0x262   : > { %1589 = vadd.xlane.f32.xlu0 %v1588_v52  ;;  %v1579_v37 = vsel %vm983_vm3, %v1549_v39, 0.0  ;;  %v1556_v17 = vmul.f32 %v3950_v54, %v1521_v33  ;;  %v1557_v40 = vmul.f32 %v3951_v28, %v1525_v62  ;;  %v1636_v54 = vpop.permute.xlu1 %1635 }
 0x263   : > { %1568 = vadd.xlane.f32.xlu1 %v1567_v36  ;;  %v1643_v36 = vpop.permute.xlu0 %1642 }
 0x264   : > { %v1600_v35 = vsel %vm983_vm3, %v1556_v17, 0.0  ;;  %v1603_v55 = vsel %vm983_vm3, %v1557_v40, 0.0 }
 0x266   : > { %1595 = vadd.xlane.f32.xlu0 %v1594_v57  ;;  %v1692_v58 = vpop.permute.xlu1 %1691 }
 0x267   : > { %1574 = vadd.xlane.f32.xlu1 %v1573_v43  ;;  %v1650_v50 = vpop.permute.xlu0 %1649 }
 0x26a   : > { %1592 = vadd.xlane.f32.xlu0 %v1591_v25  ;;  %v1699_v63 = vpop.permute.xlu1 %1698 }
 0x26b   : > { %1577 = vadd.xlane.f32.xlu1 %v1576_v3  ;;  %v1657_v52 = vpop.permute.xlu0 %1656 }
 0x26e   : > { %1598 = vadd.xlane.f32.xlu0 %v1597_v4  ;;  %v1706_v27 = vpop.permute.xlu1 %1705 }
 0x26f   : > { %1580 = vadd.xlane.f32.xlu1 %v1579_v37  ;;  %v1664_v15 = vpop.permute.xlu0 %1663 }
 0x272   : > { %1601 = vadd.xlane.f32.xlu0 %v1600_v35  ;;  %v1713_v7 = vpop.permute.xlu1 %1712 }
 0x273   : > { %v1671_v45 = vpop.permute.xlu0 %1670 }
 0x276   : > { %1604 = vadd.xlane.f32.xlu0 %v1603_v55  ;;  %v1720_v26 = vpop.permute.xlu1 %1719 }
 0x277   : > { %v1678_v57 = vpop.permute.xlu0 %1677 }
 0x27a   : > { %v1727_v28 = vpop.permute.xlu1 %1726 }
 0x27e   : > { %v1734_v16 = vpop.permute.xlu1 %1733 }
 0x280   : > { %1740 = vbcast.lane.b32.xlu1 %v1738_v38, 256 }
 0x28c   : > { %1684 = vbcast.lane.b32.xlu0 %v1682_v56, 256 }
 0x2df   : > { %v1560_v31 = vpop.xlane.xlu0 %1559 }
 0x2e0   : > { %v1563_v20 = vpop.xlane.xlu1 %1562  ;;  %v1606_v43 = vmul.f32 0.17677669, %v1560_v31 }
 0x2e1   : > { %v1607_v12 = vmul.f32 0.17677669, %v1563_v20 }
 0x2e2   : > { %v4740_v30 = vadd.f32 %v1636_v54, %v1606_v43 }
 0x2e3   : > { %v4742_v41 = vadd.f32 %v1643_v36, %v1607_v12  ;;  %v1584_v24 = vpop.xlane.xlu0 %1583 }
 0x2e4   : > { %v1566_v42 = vpop.xlane.xlu1 %1565  ;;  %1791 = vperm.xlu0 %4062, %v4740_v30   ;;  %v1614_v4 = vmul.f32 0.17677669, %v1584_v24 }
 0x2e5   : > { %v1608_v25 = vmul.f32 0.17677669, %v1566_v42  ;;  %1794 = vperm.xlu1 %4063, %v4742_v41  }
 0x2e6   : > { %v4755_v55 = vadd.f32 %v1692_v58, %v1614_v4 }
 0x2e7   : > { %v4746_v53 = vadd.f32 %v1650_v50, %v1608_v25  ;;  %v1587_v3 = vpop.xlane.xlu0 %1586 }
 0x2e8   : > { %v1572_v10 = vpop.xlane.xlu1 %1571  ;;  %v1615_v39 = vmul.f32 0.17677669, %v1587_v3 }
 0x2e9   : > { %v1610_v33 = vmul.f32 0.17677669, %v1572_v10  ;;  %1797 = vperm.xlu1 %4063, %v4746_v53  }
 0x2ea   : > { %v4749_v37 = vadd.f32 %v1699_v63, %v1615_v39 }
 0x2eb   : > { %v4751_v17 = vadd.f32 %v1664_v15, %v1610_v33  ;;  %v1590_v62 = vpop.xlane.xlu0 %1589 }
 0x2ec   : > { %v1569_v35 = vpop.xlane.xlu1 %1568  ;;  %v1616_v40 = vmul.f32 0.17677669, %v1590_v62  ;;  %1818 = vperm.xlu0 %4062, %v4749_v37  }
 0x2ed   : > { %1803 = vperm.xlu1 %4063, %v4751_v17   ;;  %v1609_v56 = vmul.f32 0.17677669, %v1569_v35 }
 0x2ee   : > { %v4757_v38 = vadd.f32 %v1706_v27, %v1616_v40 }
 0x2ef   : > { %v1596_v54 = vpop.xlane.xlu0 %1595  ;;  %v4761_v63 = vadd.f32 %v1657_v52, %v1609_v56 }
 0x2f0   : > { %v1575_v36 = vpop.xlane.xlu1 %1574  ;;  %v1618_v50 = vmul.f32 0.17677669, %v1596_v54  ;;  %1821 = vperm.xlu0 %4062, %v4757_v38  }
 0x2f1   : > { %1815 = vperm.xlu1 %4063, %v4755_v55   ;;  %v1611_v31 = vmul.f32 0.17677669, %v1575_v36 }
 0x2f2   : > { %v4763_v15 = vadd.f32 %v1720_v26, %v1618_v50 }
 0x2f3   : > { %v1593_v20 = vpop.xlane.xlu0 %1592  ;;  %v4767_v58 = vadd.f32 %v1671_v45, %v1611_v31 }
 0x2f4   : > { %v1578_v43 = vpop.xlane.xlu1 %1577  ;;  %v1617_v12 = vmul.f32 0.17677669, %v1593_v20  ;;  %1827 = vperm.xlu0 %4062, %v4763_v15  }
 0x2f5   : > { %1800 = vperm.xlu1 %4063, %v4761_v63   ;;  %v1612_v24 = vmul.f32 0.17677669, %v1578_v43 }
 0x2f6   : > { %v4769_v27 = vadd.f32 %v1713_v7, %v1617_v12  ;;  %v4790_v12 = vsub.s32 %v4418_v34, %v4357_v2 }
 0x2f7   : > { %v1599_v42 = vpop.xlane.xlu0 %1598  ;;  %v4773_v52 = vadd.f32 %v1678_v57, %v1612_v24 }
 0x2f8   : > { %v1619_v25 = vmul.f32 0.17677669, %v1599_v42  ;;  %1824 = vperm.xlu0 %4062, %v4769_v27   ;;  %v1581_v3 = vpop.xlane.xlu1 %1580 }
 0x2f9   : > { %1806 = vperm.xlu1 %4063, %v4767_v58   ;;  %v1613_v62 = vmul.f32 0.17677669, %v1581_v3 }
 0x2fa   : > { %v4775_v26 = vadd.f32 %v1727_v28, %v1619_v25 }
 0x2fb   : > { %v1602_v10 = vpop.xlane.xlu0 %1601 }
 0x2fc   : > { %v1620_v39 = vmul.f32 0.17677669, %v1602_v10  ;;  %1830 = vperm.xlu0 %4062, %v4775_v26   ;;  %v1741_v33 = vpop.permute.xlu1 %1740 }
 0x2fd   : > { %1809 = vperm.xlu1 %4063, %v4773_v52  }
 0x2fe   : > { %v4779_v7 = vadd.f32 %v1734_v16, %v1620_v39 }
 0x2ff   : > { %v1605_v45 = vpop.xlane.xlu0 %1604 }
 0x300   : > { %v1621_v4 = vmul.f32 0.17677669, %v1605_v45  ;;  %1833 = vperm.xlu0 %4062, %v4779_v7  }
 0x302   : > { %v4782_v35 = vadd.f32 %v1741_v33, %v1621_v4 }
 0x303   : > { %v1685_v57 = vpop.permute.xlu0 %1684 }
 0x304   : > { %v4784_v28 = vadd.f32 %v1685_v57, %v1613_v62  ;;  %1836 = vperm.xlu0 %4062, %v4782_v35  }
 0x306   : > { %1812 = vperm.xlu1 %4063, %v4784_v28  }
 0x35f   : > { %v1792_v56 = vpop.permute.xlu0 %1791 }
 0x360   : > { %v1795_v40 = vpop.permute.xlu1 %1794  ;;  %v1841_v2 = vrot.slane %v1792_v56, %v4790_v12 }
 0x361   : > { %v1845_v39 = vrot.slane %v1795_v40, %v4790_v12 }
 0x364   : > { %v1798_v54 = vpop.permute.xlu1 %1797 }
 0x365   : > { %v1849_v4 = vrot.slane %v1798_v54, %v4790_v12 }
 0x367   : > { %v1819_v16 = vpop.permute.xlu0 %1818 }
 0x368   : > { %v1804_v36 = vpop.permute.xlu1 %1803  ;;  %v1877_v25 = vrot.slane %v1819_v16, %v4790_v12  ;;  %v1902_v16 = vsel %vm1271_vm4, %v1845_v39, %v1841_v2 }
 0x36b   : > { %v1822_v50 = vpop.permute.xlu0 %1821 }
 0x36c   : > { %v1816_v31 = vpop.permute.xlu1 %1815  ;;  %v1881_v62 = vrot.slane %v1822_v50, %v4790_v12 }
 0x36d   : > { %v1873_v42 = vrot.slane %v1816_v31, %v4790_v12 }
 0x36f   : > { %v1828_v20 = vpop.permute.xlu0 %1827  ;;  %v1909_v45 = vsel %vm1271_vm4, %v1877_v25, %v1873_v42  ;;  %v1857_v25 = vrot.slane %v1804_v36, %v4790_v12 }
 0x370   : > { %v1801_v43 = vpop.permute.xlu1 %1800  ;;  %v1910_v57 = vsel %vm1274_vm5, %v1881_v62, %v1909_v45  ;;  %v1889_v54 = vrot.slane %v1828_v20, %v4790_v12 }
 0x371   : > { %v1853_v34 = vrot.slane %v1801_v43, %v4790_v12 }
 0x373   : > { %v1825_v24 = vpop.permute.xlu0 %1824 }
 0x374   : > { %v1807_v3 = vpop.permute.xlu1 %1806  ;;  %v1885_v33 = vrot.slane %v1825_v24, %v4790_v12  ;;  %v1903_v24 = vsel %vm1274_vm5, %v1849_v4, %v1902_v16 }
 0x375   : > { %v1904_v56 = vsel %vm1277_vm6, %v1853_v34, %v1903_v24  ;;  %v1861_v43 = vrot.slane %v1807_v3, %v4790_v12 }
 0x376   : > { %v1911_v22 = vsel %vm1277_vm6, %v1885_v33, %v1910_v57  ;;  %v1905_v20 = vsel %vm1280_vm7, %v1857_v25, %v1904_v56 }
 0x377   : > { %v1831_v10 = vpop.permute.xlu0 %1830  ;;  %v1912_v45 = vsel %vm1280_vm7, %v1889_v54, %v1911_v22  ;;  %v1906_v34 = vsel %vm1283_vm8, %v1861_v43, %v1905_v20 }
 0x378   : > { %v1893_v40 = vrot.slane %v1831_v10, %v4790_v12  ;;  %v1810_v42 = vpop.permute.xlu1 %1809 }
 0x379   : > { %v1865_v39 = vrot.slane %v1810_v42, %v4790_v12 }
 0x37a   : > { %v1913_v10 = vsel %vm1283_vm8, %v1893_v40, %v1912_v45 }
 0x37b   : > { %v1834_v31 = vpop.permute.xlu0 %1833  ;;  %v1907_v57 = vsel %vm1286_vm9, %v1865_v39, %v1906_v34 }
 0x37c   : > { %v1897_v50 = vrot.slane %v1834_v31, %v4790_v12 }
 0x37e   : > { %v1914_v2 = vsel %vm1286_vm9, %v1897_v50, %v1913_v10 }
 0x37f   : > { %v1837_v33 = vpop.permute.xlu0 %1836 }
 0x380   : > { %v1901_v62 = vrot.slane %v1837_v33, %v4790_v12 }
 0x381   : > { %v1813_v4 = vpop.permute.xlu1 %1812 }
 0x382   : > { %v1869_v3 = vrot.slane %v1813_v4, %v4790_v12  ;;  %v1915_v36 = vsel %vm1289_vm10, %v1901_v62, %v1914_v2 }
 0x383   : > { %v1922_v22 = vsel %vm1918_vm11, %v1915_v36, -inf }
 0x384   : > { %1923 = vmax.xlane.f32.xlu0 %v1922_v22  ;;  %v1908_v31 = vsel %vm1289_vm10, %v1869_v3, %v1907_v57 }
 0x385   : > { %v1919_v16 = vsel %vm1918_vm11, %v1908_v31, -inf }
 0x386   : > { %1920 = vmax.xlane.f32.xlu1 %v1919_v16 }
 0x40d   : > { %v1924_v42 = vpop.xlane.xlu0 %1923 }
 0x40e   : > { %v1966_v50 = vrot.slane %v1924_v42, %v4383_v9  ;;  %v1970_v45 = vrot.slane %v1924_v42, %v4368_v6  ;;  %v1974_v4 = vrot.slane %v1924_v42, %v4380_v8  ;;  %v1978_v3 = vrot.slane %v1924_v42, %v4391_v14 }
 0x40f   : > { %v4824_v40 = vpop.xlane.xlu1 %1920  ;;  %v1982_v31 = vrot.slane %v1924_v42, %v4388_v13 }
 0x410   : > { %v1930_v24 = vrot.slane %v4824_v40, %v4365_v5  ;;  %v1934_v54 = vrot.slane %v4824_v40, %v4383_v9  ;;  %v1938_v56 = vrot.slane %v4824_v40, %v4368_v6  ;;  %v2016_v39 = vsub.f32 %v4749_v37, %v1966_v50 }
 0x411   : > { %v1942_v33 = vrot.slane %v4824_v40, %v4380_v8  ;;  %v2017_v2 = vsub.f32 %v4757_v38, %v1970_v45  ;;  %v2018_v36 = vsub.f32 %v4769_v27, %v1974_v4  ;;  %v1950_v22 = vrot.slane %v4824_v40, %v4388_v13 }
 0x412   : > { %v2007_v43 = vsub.f32 %v4740_v30, %v1930_v24  ;;  %v2008_v25 = vsub.f32 %v4742_v41, %v1934_v54  ;;  %v2009_v10 = vsub.f32 %v4746_v53, %v1938_v56  ;;  %v2041_v34 = vmul.f32 1.442695, %v2016_v39 }
 0x413   : > { %v1946_v30 = vrot.slane %v4824_v40, %v4391_v14  ;;  %v2010_v41 = vsub.f32 %v4761_v63, %v1942_v33  ;;  %v2043_v53 = vmul.f32 1.442695, %v2017_v2  ;;  %v2019_v16 = vsub.f32 %v4763_v15, %v1978_v3 }
 0x414   : > { %v2023_v62 = vmul.f32 1.442695, %v2007_v43  ;;  %v2025_v20 = vmul.f32 1.442695, %v2008_v25  ;;  %v2027_v37 = vmul.f32 1.442695, %v2009_v10  ;;  %v1962_v24 = vrot.slane %v1924_v42, %v4365_v5 }
 0x415   : > { %v2011_v38 = vsub.f32 %v4751_v17, %v1946_v30  ;;  %v2029_v57 = vmul.f32 1.442695, %v2010_v41  ;;  %v2045_v63 = vmul.f32 1.442695, %v2018_v36  ;;  %v2012_v54 = vsub.f32 %v4767_v58, %v1950_v22 }
 0x416   : > { %4084 = vpow2.f32 %v2023_v62  ;;  %v1986_v50 = vrot.slane %v1924_v42, %v4402_v19  ;;  %v2020_v56 = vsub.f32 %v4775_v26, %v1982_v31  ;;  %v2047_v17 = vmul.f32 1.442695, %v2019_v16 }
 0x417   : > { %4086 = vpow2.f32 %v2025_v20  ;;  %v2031_v27 = vmul.f32 1.442695, %v2011_v38  ;;  %v2015_v25 = vsub.f32 %v4755_v55, %v1962_v24  ;;  %v1954_v15 = vrot.slane %v4824_v40, %v4402_v19 }
 0x418   : > { %4088 = vpow2.f32 %v2041_v34  ;;  %v2033_v45 = vmul.f32 1.442695, %v2012_v54  ;;  %v1990_v58 = vrot.slane %v1924_v42, %v4399_v18  ;;  %v2021_v26 = vsub.f32 %v4779_v7, %v1986_v50 }
 0x419   : > { %4090 = vpow2.f32 %v2027_v37  ;;  %v2049_v33 = vmul.f32 1.442695, %v2020_v56  ;;  %v2039_v55 = vmul.f32 1.442695, %v2015_v25  ;;  %v1958_v62 = vrot.slane %v4824_v40, %v4399_v18 }
 0x41a   : > { %4092 = vpow2.f32 %v2043_v53  ;;  %v2013_v20 = vsub.f32 %v4773_v52, %v1954_v15  ;;  %v2022_v42 = vsub.f32 %v4782_v35, %v1990_v58  ;;  %v2051_v7 = vmul.f32 1.442695, %v2021_v26 }
 0x41b   : > { %4094 = vpow2.f32 %v2029_v57  ;;  %v2014_v34 = vsub.f32 %v4784_v28, %v1958_v62 }
 0x41c   : > { %4096 = vpow2.f32 %v2045_v63  ;;  %v2035_v30 = vmul.f32 1.442695, %v2013_v20  ;;  %v2053_v52 = vmul.f32 1.442695, %v2022_v42 }
 0x41d   : > { %4098 = vpow2.f32 %v2031_v27  ;;  %v2037_v35 = vmul.f32 1.442695, %v2014_v34 }
 0x41e   : > { %4100 = vpow2.f32 %v2047_v17 }
 0x41f   : > { %4102 = vpow2.f32 %v2033_v45 }
 0x420   : > { %4104 = vpow2.f32 %v2049_v33 }
 0x421   : > { %4106 = vpow2.f32 %v2039_v55 }
 0x422   : > { %4108 = vpow2.f32 %v2051_v7 }
 0x423   : > { %v4856_v43 = vpop.eup %4084  ;;  %4110 = vpow2.f32 %v2035_v30 }
 0x424   : > { %v4861_v39 = vpop.eup %4086  ;;  %2072 = vperm.xlu0 %4062, %v4856_v43   ;;  %4112 = vpow2.f32 %v2053_v52 }
 0x425   : > { %2075 = vperm.xlu1 %4063, %v4861_v39   ;;  %v4867_v10 = vpop.eup %4088  ;;  %4114 = vpow2.f32 %v2037_v35 }
 0x426   : > { %v4872_v4 = vpop.eup %4090 }
 0x427   : > { %v4877_v2 = vpop.eup %4092 }
 0x428   : > { %2099 = vperm.xlu0 %4062, %v4867_v10   ;;  %v4880_v40 = vpop.eup %4094 }
 0x429   : > { %2078 = vperm.xlu1 %4063, %v4872_v4   ;;  %v4884_v41 = vpop.eup %4096 }
 0x42a   : > { %v4886_v37 = vpop.eup %4098 }
 0x42b   : > { %v4890_v28 = vpop.eup %4100 }
 0x42c   : > { %2102 = vperm.xlu0 %4062, %v4877_v2   ;;  %v4892_v3 = vpop.eup %4102 }
 0x42d   : > { %2081 = vperm.xlu1 %4063, %v4880_v40   ;;  %v4896_v36 = vpop.eup %4104 }
 0x42e   : > { %v4898_v53 = vpop.eup %4106 }
 0x42f   : > { %v4902_v22 = vpop.eup %4108 }
 0x430   : > { %2105 = vperm.xlu0 %4062, %v4884_v41   ;;  %v4904_v38 = vpop.eup %4110 }
 0x431   : > { %2084 = vperm.xlu1 %4063, %v4886_v37   ;;  %v4908_v57 = vpop.eup %4112 }
 0x432   : > { %v4910_v31 = vpop.eup %4114 }
 0x434   : > { %2108 = vperm.xlu0 %4062, %v4890_v28  }
 0x435   : > { %2087 = vperm.xlu1 %4063, %v4892_v3  }
 0x438   : > { %2111 = vperm.xlu0 %4062, %v4896_v36  }
 0x439   : > { %2096 = vperm.xlu1 %4063, %v4898_v53  }
 0x43c   : > { %2114 = vperm.xlu0 %4062, %v4902_v22  }
 0x43d   : > { %2090 = vperm.xlu1 %4063, %v4904_v38  }
 0x440   : > { %2117 = vperm.xlu0 %4062, %v4908_v57  }
 0x441   : > { %2093 = vperm.xlu1 %4063, %v4910_v31  }
 0x49f   : > { %v2073_v16 = vpop.permute.xlu0 %2072 }
 0x4a0   : > { %v2076_v63 = vpop.permute.xlu1 %2075  ;;  %v2122_v26 = vrot.slane %v2073_v16, %v4790_v12 }
 0x4a1   : > { %v2126_v58 = vrot.slane %v2076_v63, %v4790_v12 }
 0x4a3   : > { %v2100_v24 = vpop.permute.xlu0 %2099  ;;  %v2183_v35 = vsel %vm1271_vm4, %v2126_v58, %v2122_v26 }
 0x4a4   : > { %v2079_v54 = vpop.permute.xlu1 %2078  ;;  %v2158_v55 = vrot.slane %v2100_v24, %v4790_v12 }
 0x4a5   : > { %v2130_v20 = vrot.slane %v2079_v54, %v4790_v12 }
 0x4a7   : > { %v2103_v27 = vpop.permute.xlu0 %2102 }
 0x4a8   : > { %v2082_v50 = vpop.permute.xlu1 %2081  ;;  %v2162_v42 = vrot.slane %v2103_v27, %v4790_v12 }
 0x4a9   : > { %v2134_v7 = vrot.slane %v2082_v50, %v4790_v12 }
 0x4ab   : > { %v2106_v56 = vpop.permute.xlu0 %2105 }
 0x4ac   : > { %v2085_v17 = vpop.permute.xlu1 %2084  ;;  %v2166_v34 = vrot.slane %v2106_v56, %v4790_v12 }
 0x4ad   : > { %v2138_v16 = vrot.slane %v2085_v17, %v4790_v12 }
 0x4af   : > { %v2109_v25 = vpop.permute.xlu0 %2108 }
 0x4b0   : > { %v2088_v15 = vpop.permute.xlu1 %2087  ;;  %v2170_v63 = vrot.slane %v2109_v25, %v4790_v12 }
 0x4b1   : > { %v2142_v54 = vrot.slane %v2088_v15, %v4790_v12 }
 0x4b3   : > { %v2112_v45 = vpop.permute.xlu0 %2111 }
 0x4b4   : > { %v2097_v33 = vpop.permute.xlu1 %2096  ;;  %v2174_v50 = vrot.slane %v2112_v45, %v4790_v12 }
 0x4b5   : > { %v2154_v62 = vrot.slane %v2097_v33, %v4790_v12 }
 0x4b7   : > { %v2190_v30 = vsel %vm1271_vm4, %v2158_v55, %v2154_v62  ;;  %v2115_v52 = vpop.permute.xlu0 %2114  ;;  %v2184_v55 = vsel %vm1274_vm5, %v2130_v20, %v2183_v35 }
 0x4b8   : > { %v2191_v24 = vsel %vm1274_vm5, %v2162_v42, %v2190_v30  ;;  %v2091_v33 = vpop.permute.xlu1 %2090  ;;  %v2178_v56 = vrot.slane %v2115_v52, %v4790_v12  ;;  %v2185_v17 = vsel %vm1277_vm6, %v2134_v7, %v2184_v55 }
 0x4b9   : > { %v2192_v27 = vsel %vm1277_vm6, %v2166_v34, %v2191_v24  ;;  %v2146_v58 = vrot.slane %v2091_v33, %v4790_v12  ;;  %v2186_v42 = vsel %vm1280_vm7, %v2138_v16, %v2185_v17 }
 0x4ba   : > { %v2193_v62 = vsel %vm1280_vm7, %v2170_v63, %v2192_v27  ;;  %v2187_v45 = vsel %vm1283_vm8, %v2142_v54, %v2186_v42 }
 0x4bb   : > { %v2194_v25 = vsel %vm1283_vm8, %v2174_v50, %v2193_v62  ;;  %v2118_v26 = vpop.permute.xlu0 %2117  ;;  %v2188_v52 = vsel %vm1286_vm9, %v2146_v58, %v2187_v45 }
 0x4bc   : > { %v2094_v15 = vpop.permute.xlu1 %2093  ;;  %v2182_v34 = vrot.slane %v2118_v26, %v4790_v12  ;;  %v2195_v20 = vsel %vm1286_vm9, %v2178_v56, %v2194_v25 }
 0x4bd   : > { %v2150_v30 = vrot.slane %v2094_v15, %v4790_v12 }
 0x4be   : > { %v2196_v35 = vsel %vm1289_vm10, %v2182_v34, %v2195_v20 }
 0x4bf   : > { %v2189_v7 = vsel %vm1289_vm10, %v2150_v30, %v2188_v52  ;;  %v2202_v63 = vsel %vm1918_vm11, %v2196_v35, 0.0 }
 0x4c0   : > { %v2199_v24 = vsel %vm1918_vm11, %v2189_v7, 0.0  ;;  %2203 = vadd.xlane.f32.xlu0 %v2202_v63 }
 0x4c1   : > { %2200 = vadd.xlane.f32.xlu1 %v2199_v24 }
 0x549   : > { %v2204_v16 = vpop.xlane.xlu0 %2203 }
 0x54a   : > { %v2201_v33 = vpop.xlane.xlu1 %2200  ;;  %4116 = vrcp.f32 %v2204_v16 }
 0x54b   : > { %4118 = vrcp.f32 %v2201_v33 }
 0x557   : > { %v4117_v54 = vpop.eup %4116 }
 0x558   : > { %v4119_v12 = vpop.eup %4118  ;;  %v2248_v58 = vrot.slane %v4117_v54, %v4383_v9  ;;  %v2252_v42 = vrot.slane %v4117_v54, %v4368_v6  ;;  %v2264_v45 = vrot.slane %v4117_v54, %v4388_v13  ;;  %v2268_v30 = vrot.slane %v4117_v54, %v4402_v19 }
 0x559   : > { %v2216_v27 = vrot.slane %v4119_v12, %v4383_v9  ;;  %v2212_v50 = vrot.slane %v4119_v12, %v4365_v5  ;;  %v2220_v62 = vrot.slane %v4119_v12, %v4368_v6  ;;  %v2224_v26 = vrot.slane %v4119_v12, %v4380_v8 }
 0x55a   : > { %v2298_v25 = vmul.f32 %v4867_v10, %v2248_v58  ;;  %v2228_v15 = vrot.slane %v4119_v12, %v4391_v14  ;;  %v2256_v9 = vrot.slane %v4117_v54, %v4380_v8  ;;  %v2232_v34 = vrot.slane %v4119_v12, %v4388_v13 }
 0x55b   : > { %v2290_v56 = vmul.f32 %v4861_v39, %v2216_v27  ;;  %v2289_v55 = vmul.f32 %v4856_v43, %v2212_v50  ;;  %v2291_v17 = vmul.f32 %v4872_v4, %v2220_v62  ;;  %v2292_v39 = vmul.f32 %v4880_v40, %v2224_v26 }
 0x55c   : > { %v2299_v43 = vmul.f32 %v4877_v2, %v2252_v42  ;;  %v2293_v4 = vmul.f32 %v4886_v37, %v2228_v15  ;;  %v2300_v10 = vmul.f32 %v4884_v41, %v2256_v9  ;;  %v2260_v6 = vrot.slane %v4117_v54, %v4391_v14 }
 0x55d   : > { %2312 = vperm.xlu1 %4063, %v2290_v56   ;;  %2307 = vperm.xlu0 %4062, %v2289_v55   ;;  %v2294_v40 = vmul.f32 %v4892_v3, %v2232_v34  ;;  %v2244_v8 = vrot.slane %v4117_v54, %v4365_v5  ;;  %v2302_v37 = vmul.f32 %v4896_v36, %v2264_v45 }
 0x55e   : > { %v2301_v2 = vmul.f32 %v4890_v28, %v2260_v6  ;;  %v2236_v14 = vrot.slane %v4119_v12, %v4402_v19  ;;  %v2303_v3 = vmul.f32 %v4902_v22, %v2268_v30  ;;  %v2272_v13 = vrot.slane %v4117_v54, %v4399_v18  ;;  %v4074_v19 = vld [vmem:[%s5629_s7 + $0x8] sm:$0xff]  }
 0x55f   : > { %v2297_v41 = vmul.f32 %v4898_v53, %v2244_v8  ;;  %v2240_v5 = vrot.slane %v4119_v12, %v4399_v18  ;;  %3981 = vmatpush3.bf16.msra.mxu0 %v4074_v19  ;;  %v5665_v22 = vmov 0.0   ;;  %v3958_v18 = vpop.f32.mrf.mxu1 }
 0x560   : > { %v2295_v28 = vmul.f32 %v4904_v38, %v2236_v14  ;;  %v2304_v36 = vmul.f32 %v4908_v57, %v2272_v13  ;;  %3982 = vmatprep.subr.bf16.mxu0 %v5665_v22  ;;  %v4075_v38 = vld [vmem:[%s5629_s7] sm:$0xff]  }
 0x561   : > { %2317 = vperm.xlu1 %4063, %v2291_v17   ;;  %2352 = vperm.xlu0 %4062, %v2298_v25   ;;  %v2296_v53 = vmul.f32 %v4910_v31, %v2240_v5  ;;  %v1155_v57 = vpop.f32.mrf.mxu1 }
 0x563   : > { %3983 = vmatpush3.bf16.msra.mxu0 %v4075_v38  ;;  %v3959_v20 = vpop.f32.mrf.mxu1 }
 0x564   : > { %3988 = vmatprep.subr.bf16.mxu0 %v5665_v22 }
 0x565   : > { %2322 = vperm.xlu1 %4063, %v2292_v39   ;;  %2357 = vperm.xlu0 %4062, %v2299_v43   ;;  %v1158_v31 = vpop.f32.mrf.mxu1 }
 0x567   : > { %v4986_v52 = vpop.f32.mrf.mxu1 }
 0x569   : > { %2327 = vperm.xlu1 %4063, %v2293_v4   ;;  %2362 = vperm.xlu0 %4062, %v2300_v10   ;;  %v1171_v35 = vpop.f32.mrf.mxu1 }
 0x56b   : > { %v4988_v7 = vpop.f32.mrf.mxu1 }
 0x56d   : > { %2332 = vperm.xlu1 %4063, %v2294_v40   ;;  %2367 = vperm.xlu0 %4062, %v2301_v2   ;;  %v4990_v63 = vpop.f32.mrf.mxu1 }
 0x56f   : > { %v3966_v24 = vpop.f32.mrf.mxu1 }
 0x571   : > { %2372 = vperm.xlu0 %4062, %v2302_v37   ;;  %2347 = vperm.xlu1 %4063, %v2297_v41   ;;  %v4992_v16 = vpop.f32.mrf.mxu1 }
 0x573   : > { %v3967_v33 = vpop.f32.mrf.mxu1 }
 0x575   : > { %2377 = vperm.xlu0 %4062, %v2303_v3   ;;  %2337 = vperm.xlu1 %4063, %v2295_v28   ;;  %v1190_v56 = vpop.f32.mrf.mxu1 }
 0x577   : > { %v5000_v38 = vpop.f32.mrf.mxu1 }
 0x579   : > { %2382 = vperm.xlu0 %4062, %v2304_v36   ;;  %2342 = vperm.xlu1 %4063, %v2296_v53  }
 0x5d8   : > { %v2313_v54 = vpop.permute.xlu1 %2312  ;;  %v2308_v12 = vpop.permute.xlu0 %2307 }
 0x5d9   : > { %v2386_v27 = vmul.f32 %v2313_v54, %v1158_v31  ;;  %v2385_v50 = vmul.f32 %v2308_v12, %v1155_v57 }
 0x5db   : > { %v2408_v55 = vsel %vm983_vm3, %v2386_v27, 0.0  ;;  %v2401_v62 = vsel %vm983_vm3, %v2385_v50, 0.0 }
 0x5dc   : > { %v2409_v58 = vrot.slane %v2408_v55, 4  ;;  %v2402_v17 = vrot.slane %v2401_v62, 4  ;;  %v2318_v25 = vpop.permute.xlu1 %2317  ;;  %v2353_v26 = vpop.permute.xlu0 %2352 }
 0x5dd   : > { %v2387_v42 = vmul.f32 %v3958_v18, %v2318_v25  ;;  %v2394_v39 = vmul.f32 %v2353_v26, %v1190_v56  ;;  %v1203_v26 = vpop.f32.mrf.mxu1 }
 0x5de   : > { %v2410_v43 = vadd.f32 %v2409_v58, %v2408_v55  ;;  %v2403_v15 = vadd.f32 %v2402_v17, %v2401_v62 }
 0x5df   : > { %v2415_v9 = vsel %vm983_vm3, %v2387_v42, 0.0  ;;  %v2464_v4 = vsel %vm983_vm3, %v2394_v39, 0.0 }
 0x5e0   : > { %v2411_v10 = vrot.slane %v2410_v43, 2  ;;  %v2404_v34 = vrot.slane %v2403_v15, 2  ;;  %v2416_v6 = vrot.slane %v2415_v9, 4  ;;  %v2465_v40 = vrot.slane %v2464_v4, 4  ;;  %v2323_v2 = vpop.permute.xlu1 %2322  ;;  %v2358_v45 = vpop.permute.xlu0 %2357 }
 0x5e1   : > { %v2388_v8 = vmul.f32 %v3959_v20, %v2323_v2  ;;  %v2395_v37 = vmul.f32 %v3966_v24, %v2358_v45 }
 0x5e2   : > { %v2412_v41 = vadd.f32 %v2411_v10, %v2410_v43  ;;  %v2405_v30 = vadd.f32 %v2404_v34, %v2403_v15  ;;  %v2417_v14 = vadd.f32 %v2416_v6, %v2415_v9  ;;  %v2466_v3 = vadd.f32 %v2465_v40, %v2464_v4  ;;  %v3971_v40 = vpop.f32.mrf.mxu1 }
 0x5e3   : > { %v2422_v28 = vsel %vm983_vm3, %v2388_v8, 0.0  ;;  %v2471_v13 = vsel %vm983_vm3, %v2395_v37, 0.0 }
 0x5e4   : > { %v2418_v5 = vrot.slane %v2417_v14, 2  ;;  %v2467_v36 = vrot.slane %v2466_v3, 2  ;;  %v2328_v53 = vpop.permute.xlu1 %2327  ;;  %v2363_v19 = vpop.permute.xlu0 %2362  ;;  %v2423_v18 = vrot.slane %v2422_v28, 4  ;;  %v2472_v57 = vrot.slane %v2471_v13, 4 }
 0x5e5   : > { %v2389_v31 = vmul.f32 %v2328_v53, %v1171_v35  ;;  %v2396_v54 = vmul.f32 %v3967_v33, %v2363_v19  ;;  %v2413_v20 = vrot.slane %v2412_v41, 1  ;;  %v2406_v24 = vrot.slane %v2405_v30, 1 }
 0x5e6   : > { %v2419_v12 = vadd.f32 %v2418_v5, %v2417_v14  ;;  %v2468_v27 = vadd.f32 %v2467_v36, %v2466_v3  ;;  %v2424_v50 = vadd.f32 %v2423_v18, %v2422_v28  ;;  %v2473_v56 = vadd.f32 %v2472_v57, %v2471_v13 }
 0x5e7   : > { %v2429_v55 = vsel %vm983_vm3, %v2389_v31, 0.0  ;;  %v2478_v62 = vsel %vm983_vm3, %v2396_v54, 0.0  ;;  %v2414_v35 = vadd.f32 %v2413_v20, %v2412_v41  ;;  %v2407_v33 = vadd.f32 %v2406_v24, %v2405_v30 }
 0x5e8   : > { %v2420_v58 = vrot.slane %v2419_v12, 1  ;;  %v2333_v17 = vpop.permute.xlu1 %2332  ;;  %v2368_v25 = vpop.permute.xlu0 %2367  ;;  %v2469_v42 = vrot.slane %v2468_v27, 1  ;;  %v2425_v39 = vrot.slane %v2424_v50, 2  ;;  %v2430_v43 = vrot.slane %v2429_v55, 4 }
 0x5e9   : > { %v2479_v15 = vrot.slane %v2478_v62, 4  ;;  %v2474_v9 = vrot.slane %v2473_v56, 2  ;;  %v2390_v10 = vmul.f32 %v2333_v17, %v4990_v63  ;;  %v2397_v3 = vmul.f32 %v2368_v25, %v1203_v26  ;;  %v1206_v63 = vpop.f32.mrf.mxu1 }
 0x5ea   : > { %v2421_v2 = vadd.f32 %v2420_v58, %v2419_v12  ;;  %v2470_v45 = vadd.f32 %v2469_v42, %v2468_v27  ;;  %v2426_v8 = vadd.f32 %v2425_v39, %v2424_v50  ;;  %v2431_v37 = vadd.f32 %v2430_v43, %v2429_v55 }
 0x5eb   : > { %v2480_v4 = vadd.f32 %v2479_v15, %v2478_v62  ;;  %v2436_v14 = vsel %vm983_vm3, %v2390_v10, 0.0  ;;  %v2514_v28 = vpack.c.bf16 %v2414_v35, %v2414_v35  ;;  %v2513_v13 = vpack.c.bf16 %v2407_v33, %v2407_v33 }
 0x5ec   : > { %v2348_v34 = vpop.permute.xlu1 %2347  ;;  %v2373_v6 = vpop.permute.xlu0 %2372  ;;  %v2475_v5 = vadd.f32 %v2474_v9, %v2473_v56  ;;  %v2437_v41 = vrot.slane %v2436_v14, 4  ;;  %v2485_v30 = vsel %vm983_vm3, %v2397_v3, 0.0  ;;  %v2515_v19 = vpack.c.bf16 %v2421_v2, %v2421_v2 }
 0x5ed   : > { %v2481_v36 = vrot.slane %v2480_v4, 2  ;;  %v2393_v53 = vmul.f32 %v2348_v34, %v4992_v16  ;;  %v2522_v18 = vpack.c.bf16 %v2470_v45, %v2470_v45  ;;  %v2427_v57 = vrot.slane %v2426_v8, 1 }
 0x5ee   : > { %v2432_v31 = vrot.slane %v2431_v37, 2  ;;  %v2438_v54 = vadd.f32 %v2437_v41, %v2436_v14  ;;  %v2486_v20 = vrot.slane %v2485_v30, 4  ;;  %v2398_v12 = vmul.f32 %v2373_v6, %v1206_v63 }
 0x5ef   : > { %v2457_v24 = vsel %vm983_vm3, %v2393_v53, 0.0  ;;  %v5009_v55 = vunpack.c.l.b16 %v2514_v28  ;;  %v5011_v56 = vunpack.c.l.b16 %v2513_v13  ;;  %v2476_v62 = vrot.slane %v2475_v5, 1 }
 0x5f0   : > { %v2338_v27 = vpop.permute.xlu1 %2337  ;;  %v2378_v50 = vpop.permute.xlu0 %2377  ;;  %v2482_v58 = vadd.f32 %v2481_v36, %v2480_v4  ;;  %v2439_v17 = vrot.slane %v2438_v54, 2  ;;  %v2487_v16 = vadd.f32 %v2486_v20, %v2485_v30  ;;  %v2458_v25 = vrot.slane %v2457_v24, 4 }
 0x5f1   : > { %v2492_v26 = vsel %vm983_vm3, %v2398_v12, 0.0  ;;  %v5014_v42 = vunpack.c.l.b16 %v2515_v19  ;;  %v5016_v39 = vunpack.c.l.b16 %v2522_v18  ;;  %v5018_v43 = vadd.f32 %v2427_v57, %v2426_v8 }
 0x5f2   : > { %v2493_v15 = vrot.slane %v2492_v26, 4  ;;  %v2433_v35 = vadd.f32 %v2432_v31, %v2431_v37  ;;  %v2488_v33 = vrot.slane %v2487_v16, 2  ;;  %v2459_v9 = vadd.f32 %v2458_v25, %v2457_v24 }
 0x5f3   : > { %v2391_v10 = vmul.f32 %v4986_v52, %v2338_v27  ;;  %v2477_v34 = vadd.f32 %v2476_v62, %v2475_v5  ;;  %v2483_v6 = vrot.slane %v2482_v58, 1  ;;  %v2399_v2 = vmul.f32 %v5000_v38, %v2378_v50 }
 0x5f4   : > { %v2494_v4 = vadd.f32 %v2493_v15, %v2492_v26  ;;  %v2440_v45 = vadd.f32 %v2439_v17, %v2438_v54  ;;  %v2489_v14 = vadd.f32 %v2488_v33, %v2487_v16  ;;  %v2460_v3 = vrot.slane %v2459_v9, 2  ;;  %v2343_v13 = vpop.permute.xlu1 %2342  ;;  %v2383_v36 = vpop.permute.xlu0 %2382 }
 0x5f5   : > { %v2443_v28 = vsel %vm983_vm3, %v2391_v10, 0.0  ;;  %v2516_v8 = vpack.c.bf16 %v5018_v43, %v5018_v43  ;;  %v2499_v30 = vsel %vm983_vm3, %v2399_v2, 0.0  ;;  %v2434_v52 = vrot.slane %v2433_v35, 1 }
 0x5f6   : > { %v2495_v37 = vrot.slane %v2494_v4, 2  ;;  %v2444_v41 = vrot.slane %v2443_v28, 4  ;;  %v2490_v5 = vrot.slane %v2489_v14, 1  ;;  %v2461_v53 = vadd.f32 %v2460_v3, %v2459_v9 }
 0x5f7   : > { %v2500_v63 = vrot.slane %v2499_v30, 4  ;;  %v2392_v18 = vmul.f32 %v4988_v7, %v2343_v13  ;;  %v2400_v57 = vmul.f32 %v3971_v40, %v2383_v36  ;;  %v2484_v31 = vadd.f32 %v2483_v6, %v2482_v58 }
 0x5f8   : > { %v2496_v19 = vadd.f32 %v2495_v37, %v2494_v4  ;;  %v2445_v38 = vadd.f32 %v2444_v41, %v2443_v28  ;;  %v2441_v54 = vrot.slane %v2440_v45, 1  ;;  %v2462_v20 = vrot.slane %v2461_v53, 1 }
 0x5f9   : > { %v2501_v24 = vadd.f32 %v2500_v63, %v2499_v30  ;;  %v2450_v50 = vsel %vm983_vm3, %v2392_v18, 0.0  ;;  %v2506_v62 = vsel %vm983_vm3, %v2400_v57, 0.0  ;;  %v2523_v17 = vpack.c.bf16 %v2477_v34, %v2477_v34 }
 0x5fa   : > { %v2497_v12 = vrot.slane %v2496_v19, 1  ;;  %v2446_v27 = vrot.slane %v2445_v38, 2  ;;  %v2491_v16 = vadd.f32 %v2490_v5, %v2489_v14  ;;  %v2463_v25 = vadd.f32 %v2462_v20, %v2461_v53 }
 0x5fb   : > { %v2502_v26 = vrot.slane %v2501_v24, 2  ;;  %v2435_v43 = vadd.f32 %v2434_v52, %v2433_v35  ;;  %v2451_v33 = vrot.slane %v2450_v50, 4  ;;  %v2507_v9 = vrot.slane %v2506_v62, 4 }
 0x5fc   : > { %v2447_v15 = vadd.f32 %v2446_v27, %v2445_v38  ;;  %v2524_v7 = vpack.c.bf16 %v2484_v31, %v2484_v31  ;;  %v2442_v40 = vadd.f32 %v2441_v54, %v2440_v45  ;;  %v2521_v58 = vpack.c.bf16 %v2463_v25, %v2463_v25 }
 0x5fd   : > { %v2503_v10 = vadd.f32 %v2502_v26, %v2501_v24  ;;  %v2498_v6 = vadd.f32 %v2497_v12, %v2496_v19  ;;  %v2452_v2 = vadd.f32 %v2451_v33, %v2450_v50  ;;  %v2508_v3 = vadd.f32 %v2507_v9, %v2506_v62 }
 0x5fe   : > { %v2448_v4 = vrot.slane %v2447_v15, 1  ;;  %v2559_v28 = vunpack.c.l.b16 %v2523_v17  ;;  %v2525_v13 = vpack.c.bf16 %v2491_v16, %v2491_v16  ;;  %v2557_v36 = vunpack.c.l.b16 %v2521_v58 }
 0x5ff   : > { %v2504_v37 = vrot.slane %v2503_v10, 1  ;;  %v2517_v34 = vpack.c.bf16 %v2435_v43, %v2435_v43  ;;  %v2453_v41 = vrot.slane %v2452_v2, 2  ;;  %v2509_v30 = vrot.slane %v2508_v3, 2 }
 0x600   : > { %v2449_v14 = vadd.f32 %v2448_v4, %v2447_v15  ;;  %v2560_v35 = vunpack.c.l.b16 %v2524_v7  ;;  %v2518_v52 = vpack.c.bf16 %v2442_v40, %v2442_v40  ;;  %v2572_v5 = vsel %vm1271_vm4, %v5016_v39, %v2557_v36 }
 0x601   : > { %v2505_v45 = vadd.f32 %v2504_v37, %v2503_v10  ;;  %v2573_v53 = vsel %vm1274_vm5, %v2559_v28, %v2572_v5  ;;  %v2526_v63 = vpack.c.bf16 %v2498_v6, %v2498_v6  ;;  %v2454_v19 = vadd.f32 %v2453_v41, %v2452_v2 }
 0x602   : > { %v2510_v38 = vadd.f32 %v2509_v30, %v2508_v3  ;;  %v2561_v18 = vunpack.c.l.b16 %v2525_v13  ;;  %v2574_v57 = vsel %vm1277_vm6, %v2560_v35, %v2573_v53  ;;  %v2519_v31 = vpack.c.bf16 %v2449_v14, %v2449_v14 }
 0x603   : > { %v2527_v54 = vpack.c.bf16 %v2505_v45, %v2505_v45  ;;  %v2552_v20 = vunpack.c.l.b16 %v2516_v8  ;;  %v2455_v24 = vrot.slane %v2454_v19, 1  ;;  %v2565_v27 = vsel %vm1271_vm4, %v5009_v55, %v5011_v56 }
 0x604   : > { %v2511_v12 = vrot.slane %v2510_v38, 1  ;;  %v2553_v50 = vunpack.c.l.b16 %v2517_v34  ;;  %v2575_v39 = vsel %vm1280_vm7, %v2561_v18, %v2574_v57  ;;  %v2554_v62 = vunpack.c.l.b16 %v2518_v52 }
 0x605   : > { %v2562_v17 = vunpack.c.l.b16 %v2526_v63  ;;  %v2456_v16 = vadd.f32 %v2455_v24, %v2454_v19  ;;  %v2566_v26 = vsel %vm1274_vm5, %v5014_v42, %v2565_v27  ;;  %v2555_v43 = vunpack.c.l.b16 %v2519_v31 }
 0x606   : > { %v2512_v25 = vadd.f32 %v2511_v12, %v2510_v38  ;;  %v2563_v15 = vunpack.c.l.b16 %v2527_v54  ;;  %v2567_v8 = vsel %vm1277_vm6, %v2552_v20, %v2566_v26 }
 0x607   : > { %v2576_v33 = vsel %vm1283_vm8, %v2562_v17, %v2575_v39  ;;  %v2520_v9 = vpack.c.bf16 %v2456_v16, %v2456_v16  ;;  %v2568_v55 = vsel %vm1280_vm7, %v2553_v50, %v2567_v8 }
 0x608   : > { %v2528_v7 = vpack.c.bf16 %v2512_v25, %v2512_v25  ;;  %v2569_v56 = vsel %vm1283_vm8, %v2554_v62, %v2568_v55  ;;  %v2577_v6 = vsel %vm1286_vm9, %v2563_v15, %v2576_v33 }
 0x609   : > { %v2556_v40 = vunpack.c.l.b16 %v2520_v9  ;;  %v2570_v10 = vsel %vm1286_vm9, %v2555_v43, %v2569_v56 }
 0x60a   : > { %v2564_v58 = vunpack.c.l.b16 %v2528_v7 }
 0x60b   : > { %v2571_v42 = vsel %vm1289_vm10, %v2556_v40, %v2570_v10 }
 0x60c   : > { %v2578_v4 = vsel %vm1289_vm10, %v2564_v58, %v2577_v6 }
 0x60d   : > { %v2579_v2 = vpack.c.b16 %v2578_v4, %v2571_v42 }
 0x60f   : > { %3985 = vmatmul.mubr.msk.bf16.vlgmr.msra.gmra.mxu0 %vm983_vm3, %v2579_v2 }
 0x610   : > { %3992 = vmatprep.mubr.msk.bf16.mxu0 %vm4203_vm2, %v5665_v22 }
 0x6cf   : > { %v2629_v3 = vpop.f32.mrf.mxu0 }
 0x6d0   : > { %v2638_v28 = vrot.slane %v2629_v3, 1  ;;  %v2639_v13 = vrot.slane %v2629_v3, 2  ;;  %v2640_v36 = vrot.slane %v2629_v3, 3  ;;  %v2641_v34 = vrot.slane %v2629_v3, 4 }
 0x6d1   : > { %v3986_v37 = vpop.f32.mrf.mxu0  ;;  %v2642_v14 = vrot.slane %v2629_v3, 5  ;;  %v2643_v41 = vrot.slane %v2629_v3, 6  ;;  %v2644_v30 = vrot.slane %v2629_v3, 7  ;;  %v5060_v45 = vadd.f32 %v2629_v3, %v4515_v48 }
 0x6d2   : > { %v5051_v35 = vadd.f32 %v2638_v28, %v4518_v49  ;;  %v5054_v52 = vadd.f32 %v2639_v13, %v4521_v51  ;;  %v5057_v5 = vadd.f32 %v2640_v36, %v4512_v47  ;;  %v5063_v63 = vadd.f32 %v2641_v34, %v4544_v60 }
 0x6d3   : > { %v2632_v53 = vpop.f32.mrf.mxu0  ;;  %v5066_v57 = vadd.f32 %v2642_v14, %v4547_v61  ;;  %v5069_v51 = vadd.f32 %v2643_v41, %v4552_v1  ;;  %v5072_v47 = vadd.f32 %v2644_v30, %v4541_v59 }
 0x6d4   : > { %v2645_v19 = vrot.slane %v2632_v53, 1  ;;  %v2646_v38 = vrot.slane %v2632_v53, 2  ;;  %v2647_v18 = vrot.slane %v2632_v53, 3  ;;  %v2702_v48 = vrot.slane %v5051_v35, 7 }
 0x6d5   : > { %v3987_v49 = vpop.f32.mrf.mxu0  ;;  %v2704_v31 = vrot.slane %v5054_v52, 6  ;;  %v5077_v60 = vadd.f32 %v2632_v53, %v4577_v21  ;;  %v2706_v61 = vrot.slane %v5057_v5, 5  ;;  %v2708_v20 = vrot.slane %v5063_v63, 4 }
 0x6d6   : > { %v5080_v54 = vadd.f32 %v2645_v19, %v4587_v29  ;;  %v2703_v1 = vsel %vm1271_vm4, %v2702_v48, %v5060_v45  ;;  %v2648_v24 = vrot.slane %v2632_v53, 4  ;;  %v2649_v59 = vrot.slane %v2632_v53, 5 }
 0x6d7   : > { %v2650_v12 = vrot.slane %v2632_v53, 6  ;;  %v2705_v27 = vsel %vm1274_vm5, %v2704_v31, %v2703_v1  ;;  %v2651_v50 = vrot.slane %v2632_v53, 7  ;;  %v5088_v39 = vadd.f32 %v2646_v38, %v4565_v11 }
 0x6d8   : > { %v5091_v21 = vadd.f32 %v2647_v18, %v4580_v23  ;;  %v2707_v29 = vsel %vm1277_vm6, %v2706_v61, %v2705_v27  ;;  %v2710_v62 = vrot.slane %v5066_v57, 3  ;;  %v2712_v17 = vrot.slane %v5069_v51, 2 }
 0x6d9   : > { %v5097_v16 = vadd.f32 %v2648_v24, %v4608_v46  ;;  %v2709_v25 = vsel %vm1280_vm7, %v2708_v20, %v2707_v29  ;;  %v5101_v26 = vadd.f32 %v2649_v59, %v4631_v32  ;;  %v2716_v11 = vrot.slane %v5080_v54, 7 }
 0x6da   : > { %v2718_v43 = vrot.slane %v5088_v39, 6  ;;  %v2711_v23 = vsel %vm1283_vm8, %v2710_v62, %v2709_v25  ;;  %v2714_v15 = vrot.slane %v5072_v47, 1  ;;  %v5108_v8 = vadd.f32 %v2650_v12, %v4605_v44 }
 0x6db   : > { %v2713_v33 = vsel %vm1286_vm9, %v2712_v17, %v2711_v23  ;;  %v5112_v46 = vadd.f32 %v2651_v50, %v4620_v0  ;;  %v2717_v32 = vsel %vm1271_vm4, %v2716_v11, %v5077_v60  ;;  %v2720_v9 = vrot.slane %v5091_v21, 5 }
 0x6dc   : > { %v2715_v7 = vsel %vm1289_vm10, %v2714_v15, %v2713_v33  ;;  %v2719_v55 = vsel %vm1274_vm5, %v2718_v43, %v2717_v32  ;;  %v2722_v56 = vrot.slane %v5097_v16, 4  ;;  %v2724_v58 = vrot.slane %v5101_v26, 3 }
 0x6dd   : > { %v2732_v40 = vsel %vm983_vm3, %v2715_v7, 0.0  ;;  %v2721_v44 = vsel %vm1277_vm6, %v2720_v9, %v2719_v55  ;;  %v2726_v10 = vrot.slane %v5108_v8, 2  ;;  %v2728_v42 = vrot.slane %v5112_v46, 1 }
 0x6de   : > { %2733 = vadd.xlane.f32.xlu1 %v2732_v40  ;;  %v2723_v0 = vsel %vm1280_vm7, %v2722_v56, %v2721_v44 }
 0x6df   : > { %v2725_v6 = vsel %vm1283_vm8, %v2724_v58, %v2723_v0 }
 0x6e0   : > { %v2727_v4 = vsel %vm1286_vm9, %v2726_v10, %v2725_v6 }
 0x6e1   : > { %v2729_v2 = vsel %vm1289_vm10, %v2728_v42, %v2727_v4 }
 0x6e2   : > { %v2735_v3 = vsel %vm983_vm3, %v2729_v2, 0.0 }
 0x6e3   : > { %2736 = vadd.xlane.f32.xlu0 %v2735_v3 }
 0x767   : > { %v2734_v28 = vpop.xlane.xlu1 %2733 }
 0x768   : > { %v2739_v13 = vmul.f32 0.03125, %v2734_v28 }
 0x76a   : > { %v2743_v36 = vrot.slane %v2739_v13, 1  ;;  %v2744_v37 = vrot.slane %v2739_v13, 2  ;;  %v2745_v34 = vrot.slane %v2739_v13, 3  ;;  %v2746_v14 = vrot.slane %v2739_v13, 4 }
 0x76b   : > { %v2747_v41 = vrot.slane %v2739_v13, 5  ;;  %v2748_v30 = vrot.slane %v2739_v13, 6  ;;  %v2749_v53 = vrot.slane %v2739_v13, 7  ;;  %v5131_v19 = vsub.f32 %v5060_v45, %v2739_v13 }
 0x76c   : > { %v2737_v38 = vpop.xlane.xlu0 %2736  ;;  %v5134_v18 = vsub.f32 %v5051_v35, %v2743_v36  ;;  %v5137_v49 = vsub.f32 %v5054_v52, %v2744_v37  ;;  %v5140_v48 = vsub.f32 %v5057_v5, %v2745_v34  ;;  %v5143_v31 = vsub.f32 %v5063_v63, %v2746_v14 }
 0x76d   : > { %v2740_v61 = vmul.f32 0.03125, %v2737_v38  ;;  %v5146_v20 = vsub.f32 %v5066_v57, %v2747_v41  ;;  %v5149_v45 = vsub.f32 %v5069_v51, %v2748_v30  ;;  %v5152_v1 = vsub.f32 %v5072_v47, %v2749_v53 }
 0x76e   : > { %v2790_v35 = vmul.f32 %v5134_v18, %v5134_v18  ;;  %v2791_v52 = vmul.f32 %v5137_v49, %v5137_v49  ;;  %v2792_v5 = vmul.f32 %v5140_v48, %v5140_v48  ;;  %v2789_v63 = vmul.f32 %v5131_v19, %v5131_v19 }
 0x76f   : > { %v2793_v57 = vmul.f32 %v5143_v31, %v5143_v31  ;;  %v2794_v51 = vmul.f32 %v5146_v20, %v5146_v20  ;;  %v2795_v47 = vmul.f32 %v5149_v45, %v5149_v45  ;;  %v2796_v24 = vmul.f32 %v5152_v1, %v5152_v1 }
 0x770   : > { %v2821_v59 = vrot.slane %v2790_v35, 7  ;;  %v2823_v12 = vrot.slane %v2791_v52, 6  ;;  %v2750_v27 = vrot.slane %v2740_v61, 1  ;;  %v2825_v50 = vrot.slane %v2792_v5, 5 }
 0x771   : > { %v2827_v29 = vrot.slane %v2793_v57, 4  ;;  %v2829_v62 = vrot.slane %v2794_v51, 3  ;;  %v2831_v17 = vrot.slane %v2795_v47, 2  ;;  %v2751_v11 = vrot.slane %v2740_v61, 2  ;;  %v4076_v47 = vld [vmem:[%s5632_s10 + $0x8] sm:$0xff]  }
 0x772   : > { %v2822_v25 = vsel %vm1271_vm4, %v2821_v59, %v2789_v63  ;;  %v2752_v43 = vrot.slane %v2740_v61, 3  ;;  %v2753_v23 = vrot.slane %v2740_v61, 4  ;;  %v2754_v33 = vrot.slane %v2740_v61, 5  ;;  %3989 = vmatpush3.bf16.msra.mxu0 %v4076_v47 }
 0x773   : > { %v2824_v15 = vsel %vm1274_vm5, %v2823_v12, %v2822_v25  ;;  %v2755_v32 = vrot.slane %v2740_v61, 6  ;;  %v2756_v9 = vrot.slane %v2740_v61, 7  ;;  %v5174_v55 = vsub.f32 %v5077_v60, %v2740_v61  ;;  %3990 = vmatprep.subr.bf16.mxu0 %v5665_v22  ;;  %v3827_v25 = vld [vmem:[%s5630_s8] ss:$0 sm:$0xff] }
 0x774   : > { %v2826_v7 = vsel %vm1277_vm6, %v2825_v50, %v2824_v15  ;;  %v5177_v56 = vsub.f32 %v5080_v54, %v2750_v27  ;;  %v5180_v40 = vsub.f32 %v5088_v39, %v2751_v11  ;;  %v5184_v58 = vsub.f32 %v5091_v21, %v2752_v43 }
 0x775   : > { %v2828_v44 = vsel %vm1280_vm7, %v2827_v29, %v2826_v7  ;;  %v5187_v0 = vsub.f32 %v5097_v16, %v2753_v23  ;;  %v5190_v10 = vsub.f32 %v5101_v26, %v2754_v33  ;;  %v2833_v6 = vrot.slane %v2796_v24, 1  ;;  %v4077_v24 = vld [vmem:[%s5632_s10] sm:$0xff]  }
 0x776   : > { %v2830_v60 = vsel %vm1283_vm8, %v2829_v62, %v2828_v44  ;;  %v5194_v54 = vsub.f32 %v5108_v8, %v2755_v32  ;;  %v5197_v39 = vsub.f32 %v5112_v46, %v2756_v9  ;;  %v2798_v21 = vmul.f32 %v5177_v56, %v5177_v56  ;;  %3991 = vmatpush3.bf16.msra.mxu0 %v4077_v24 }
 0x777   : > { %v2832_v42 = vsel %vm1286_vm9, %v2831_v17, %v2830_v60  ;;  %v2799_v16 = vmul.f32 %v5180_v40, %v5180_v40  ;;  %v2800_v26 = vmul.f32 %v5184_v58, %v5184_v58  ;;  %v2797_v8 = vmul.f32 %v5174_v55, %v5174_v55  ;;  %4008 = vmatprep.subr.bf16.mxu0 %v5665_v22 }
 0x778   : > { %v2834_v4 = vsel %vm1289_vm10, %v2833_v6, %v2832_v42  ;;  %v2801_v46 = vmul.f32 %v5187_v0, %v5187_v0  ;;  %v2802_v3 = vmul.f32 %v5190_v10, %v5190_v10  ;;  %v2835_v28 = vrot.slane %v2798_v21, 7 }
 0x779   : > { %v2851_v2 = vsel %vm983_vm3, %v2834_v4, 0.0  ;;  %v2837_v13 = vrot.slane %v2799_v16, 6  ;;  %v2803_v36 = vmul.f32 %v5194_v54, %v5194_v54  ;;  %v2804_v37 = vmul.f32 %v5197_v39, %v5197_v39 }
 0x77a   : > { %2852 = vadd.xlane.f32.xlu0 %v2851_v2  ;;  %v2836_v34 = vsel %vm1271_vm4, %v2835_v28, %v2797_v8  ;;  %v2839_v14 = vrot.slane %v2800_v26, 5  ;;  %v2841_v30 = vrot.slane %v2801_v46, 4  ;;  %v2843_v38 = vrot.slane %v2802_v3, 3  ;;  %v3828_v8 = vld [vmem:[%s5631_s9] ss:$0 sm:$0xff] }
 0x77b   : > { %v2838_v41 = vsel %vm1274_vm5, %v2837_v13, %v2836_v34  ;;  %v2845_v35 = vrot.slane %v2803_v36, 2  ;;  %v2847_v5 = vrot.slane %v2804_v37, 1 }
 0x77c   : > { %v2840_v53 = vsel %vm1277_vm6, %v2839_v14, %v2838_v41 }
 0x77d   : > { %v2842_v61 = vsel %vm1280_vm7, %v2841_v30, %v2840_v53 }
 0x77e   : > { %v2844_v52 = vsel %vm1283_vm8, %v2843_v38, %v2842_v61 }
 0x77f   : > { %v2846_v63 = vsel %vm1286_vm9, %v2845_v35, %v2844_v52 }
 0x780   : > { %v2848_v57 = vsel %vm1289_vm10, %v2847_v5, %v2846_v63 }
 0x781   : > { %v2854_v51 = vsel %vm983_vm3, %v2848_v57, 0.0 }
 0x782   : > { %2855 = vadd.xlane.f32.xlu1 %v2854_v51 }
 0x803   : > { %v2853_v59 = vpop.xlane.xlu0 %2852 }
 0x804   : > { %v2857_v12 = vmul.f32 0.03125, %v2853_v59 }
 0x806   : > { %v2859_v27 = vadd.f32 1e-12, %v2857_v12 }
 0x808   : > { %4120 = vrsqrt.f32 %v2859_v27 }
 0x80b   : > { %v2856_v50 = vpop.xlane.xlu1 %2855 }
 0x80c   : > { %v2858_v29 = vmul.f32 0.03125, %v2856_v50 }
 0x80e   : > { %v2860_v62 = vadd.f32 1e-12, %v2858_v29 }
 0x810   : > { %4122 = vrsqrt.f32 %v2860_v62 }
 0x815   : > { %v4121_v17 = vpop.eup %4120 }
 0x816   : > { %v2865_v11 = vrot.slane %v4121_v17, 1  ;;  %v2866_v43 = vrot.slane %v4121_v17, 2  ;;  %v2867_v23 = vrot.slane %v4121_v17, 3  ;;  %v2868_v15 = vrot.slane %v4121_v17, 4 }
 0x817   : > { %v2869_v33 = vrot.slane %v4121_v17, 5  ;;  %v2870_v32 = vrot.slane %v4121_v17, 6  ;;  %v2871_v9 = vrot.slane %v4121_v17, 7  ;;  %v2895_v7 = vmul.f32 %v4121_v17, %v5131_v19 }
 0x818   : > { %v2896_v44 = vmul.f32 %v2865_v11, %v5134_v18  ;;  %v2897_v60 = vmul.f32 %v2866_v43, %v5137_v49  ;;  %v2898_v6 = vmul.f32 %v2867_v23, %v5140_v48  ;;  %v2899_v42 = vmul.f32 %v2868_v15, %v5143_v31 }
 0x819   : > { %v2900_v21 = vmul.f32 %v2869_v33, %v5146_v20  ;;  %v2901_v16 = vmul.f32 %v2870_v32, %v5149_v45  ;;  %v2902_v26 = vmul.f32 %v2871_v9, %v5152_v1  ;;  %v2917_v4 = vmul.f32 %v3827_v25, %v2895_v7 }
 0x81a   : > { %v2918_v19 = vmul.f32 %v3827_v25, %v2896_v44  ;;  %v2919_v46 = vmul.f32 %v3827_v25, %v2897_v60  ;;  %v2920_v18 = vmul.f32 %v3827_v25, %v2898_v6  ;;  %v2921_v2 = vmul.f32 %v3827_v25, %v2899_v42 }
 0x81b   : > { %v2922_v49 = vmul.f32 %v3827_v25, %v2900_v21  ;;  %v2923_v3 = vmul.f32 %v3827_v25, %v2901_v16  ;;  %v2924_v48 = vmul.f32 %v3827_v25, %v2902_v26  ;;  %v5248_v28 = vadd.f32 %v3828_v8, %v2917_v4 }
 0x81c   : > { %v5250_v31 = vadd.f32 %v3828_v8, %v2918_v19  ;;  %v5252_v20 = vadd.f32 %v3828_v8, %v2919_v46  ;;  %v5254_v1 = vadd.f32 %v3828_v8, %v2920_v18  ;;  %v5256_v13 = vadd.f32 %v3828_v8, %v2921_v2 }
 0x81d   : > { %v4123_v45 = vpop.eup %4122  ;;  %v5258_v36 = vadd.f32 %v3828_v8, %v2922_v49  ;;  %v5260_v37 = vadd.f32 %v3828_v8, %v2923_v3  ;;  %v5270_v17 = vadd.f32 %v3828_v8, %v2924_v48  ;;  %v2955_v32 = vpack.c.bf16 %v5248_v28, %v5248_v28 }
 0x81e   : > { %v2872_v34 = vrot.slane %v4123_v45, 1  ;;  %v2873_v14 = vrot.slane %v4123_v45, 2  ;;  %v2874_v41 = vrot.slane %v4123_v45, 3  ;;  %v2875_v30 = vrot.slane %v4123_v45, 4 }
 0x81f   : > { %v2876_v53 = vrot.slane %v4123_v45, 5  ;;  %v2877_v38 = vrot.slane %v4123_v45, 6  ;;  %v2878_v61 = vrot.slane %v4123_v45, 7  ;;  %v2903_v35 = vmul.f32 %v4123_v45, %v5174_v55 }
 0x820   : > { %v2904_v52 = vmul.f32 %v2872_v34, %v5177_v56  ;;  %v2905_v5 = vmul.f32 %v2873_v14, %v5180_v40  ;;  %v2906_v63 = vmul.f32 %v2874_v41, %v5184_v58  ;;  %v2907_v57 = vmul.f32 %v2875_v30, %v5187_v0 }
 0x821   : > { %v2908_v51 = vmul.f32 %v2876_v53, %v5190_v10  ;;  %v2909_v47 = vmul.f32 %v2877_v38, %v5194_v54  ;;  %v2910_v24 = vmul.f32 %v2878_v61, %v5197_v39  ;;  %v2925_v59 = vmul.f32 %v3827_v25, %v2903_v35 }
 0x822   : > { %v2926_v12 = vmul.f32 %v3827_v25, %v2904_v52  ;;  %v2927_v27 = vmul.f32 %v3827_v25, %v2905_v5  ;;  %v2928_v50 = vmul.f32 %v3827_v25, %v2906_v63  ;;  %v2929_v29 = vmul.f32 %v3827_v25, %v2907_v57 }
 0x823   : > { %v2930_v55 = vmul.f32 %v3827_v25, %v2908_v51  ;;  %v2931_v62 = vmul.f32 %v3827_v25, %v2909_v47  ;;  %v2932_v56 = vmul.f32 %v3827_v25, %v2910_v24  ;;  %v2956_v10 = vpack.c.bf16 %v5250_v31, %v5250_v31 }
 0x824   : > { %v5272_v40 = vadd.f32 %v3828_v8, %v2926_v12  ;;  %v5274_v58 = vadd.f32 %v3828_v8, %v2927_v27  ;;  %v5276_v0 = vadd.f32 %v3828_v8, %v2928_v50  ;;  %v5280_v54 = vadd.f32 %v3828_v8, %v2925_v59 }
 0x825   : > { %v5282_v39 = vadd.f32 %v3828_v8, %v2929_v29  ;;  %v5284_v11 = vadd.f32 %v3828_v8, %v2930_v55  ;;  %v2957_v25 = vpack.c.bf16 %v5252_v20, %v5252_v20  ;;  %v5288_v43 = vadd.f32 %v3828_v8, %v2931_v62 }
 0x826   : > { %v5290_v23 = vadd.f32 %v3828_v8, %v2932_v56  ;;  %v2958_v15 = vpack.c.bf16 %v5254_v1, %v5254_v1  ;;  %v2964_v33 = vpack.c.bf16 %v5272_v40, %v5272_v40  ;;  %v2959_v9 = vpack.c.bf16 %v5256_v13, %v5256_v13 }
 0x827   : > { %v2960_v7 = vpack.c.bf16 %v5258_v36, %v5258_v36  ;;  %v2965_v44 = vpack.c.bf16 %v5274_v58, %v5274_v58  ;;  %v2961_v60 = vpack.c.bf16 %v5260_v37, %v5260_v37  ;;  %v2962_v6 = vpack.c.bf16 %v5270_v17, %v5270_v17 }
 0x828   : > { %v2966_v42 = vpack.c.bf16 %v5276_v0, %v5276_v0  ;;  %v2999_v21 = vunpack.c.l.b16 %v2956_v10  ;;  %v2963_v16 = vpack.c.bf16 %v5280_v54, %v5280_v54  ;;  %v2967_v26 = vpack.c.bf16 %v5282_v39, %v5282_v39 }
 0x829   : > { %v2968_v4 = vpack.c.bf16 %v5284_v11, %v5284_v11  ;;  %v3000_v8 = vunpack.c.l.b16 %v2957_v25  ;;  %v2969_v19 = vpack.c.bf16 %v5288_v43, %v5288_v43  ;;  %v2970_v46 = vpack.c.bf16 %v5290_v23, %v5290_v23 }
 0x82a   : > { %v3001_v18 = vunpack.c.l.b16 %v2958_v15  ;;  %v3007_v2 = vunpack.c.l.b16 %v2964_v33  ;;  %v2998_v49 = vunpack.c.l.b16 %v2955_v32  ;;  %v3002_v3 = vunpack.c.l.b16 %v2959_v9 }
 0x82b   : > { %v3003_v48 = vunpack.c.l.b16 %v2960_v7  ;;  %v3008_v45 = vunpack.c.l.b16 %v2965_v44  ;;  %v3004_v34 = vunpack.c.l.b16 %v2961_v60  ;;  %v3009_v14 = vunpack.c.l.b16 %v2966_v42 }
 0x82c   : > { %v3014_v41 = vrot.slane %v2999_v21, 7  ;;  %v3016_v30 = vrot.slane %v3000_v8, 6  ;;  %v3005_v53 = vunpack.c.l.b16 %v2962_v6  ;;  %v3006_v38 = vunpack.c.l.b16 %v2963_v16  ;;  %v4079_v8 = vld [vmem:[%s5634_s12 + $0x10] sm:$0xff]  }
 0x82d   : > { %v3010_v61 = vunpack.c.l.b16 %v2967_v26  ;;  %v3011_v35 = vunpack.c.l.b16 %v2968_v4  ;;  %v3018_v5 = vrot.slane %v3001_v18, 5  ;;  %v3028_v63 = vrot.slane %v3007_v2, 7  ;;  %v4078_v4 = vld [vmem:[%s5634_s12 + $0x18] sm:$0xff]   ;;  %v3829_v18 = vld [vmem:[%s5633_s11] ss:$0 sm:$0xff] }
 0x82e   : > { %v3015_v52 = vsel %vm1271_vm4, %v3014_v41, %v2998_v49  ;;  %v3030_v57 = vrot.slane %v3008_v45, 6  ;;  %v3012_v51 = vunpack.c.l.b16 %v2969_v19  ;;  %v3013_v47 = vunpack.c.l.b16 %v2970_v46  ;;  %3997 = vmatpush3.bf16.msra.mxu1 %v4078_v4  ;;  %v4080_v19 = vld [vmem:[%s5634_s12 + $0x8] sm:$0xff]   ;;  %v4081_v46 = vld [vmem:[%s5634_s12] sm:$0xff]  }
 0x82f   : > { %v3017_v24 = vsel %vm1274_vm5, %v3016_v30, %v3015_v52  ;;  %v3020_v59 = vrot.slane %v3002_v3, 4  ;;  %v3022_v27 = vrot.slane %v3003_v48, 3  ;;  %v3029_v50 = vsel %vm1271_vm4, %v3028_v63, %v3006_v38  ;;  %3998 = vmatprep.subr.bf16.mxu1 %v5665_v22 }
 0x830   : > { %v3019_v12 = vsel %vm1277_vm6, %v3018_v5, %v3017_v24  ;;  %v3032_v29 = vrot.slane %v3009_v14, 5  ;;  %v3024_v62 = vrot.slane %v3004_v34, 2  ;;  %v3031_v56 = vsel %vm1274_vm5, %v3030_v57, %v3029_v50 }
 0x831   : > { %v3021_v55 = vsel %vm1280_vm7, %v3020_v59, %v3019_v12  ;;  %v3034_v10 = vrot.slane %v3010_v61, 4  ;;  %v3036_v33 = vrot.slane %v3011_v35, 3  ;;  %v3038_v7 = vrot.slane %v3012_v51, 2 }
 0x832   : > { %v3023_v25 = vsel %vm1283_vm8, %v3022_v27, %v3021_v55  ;;  %v3033_v15 = vsel %vm1277_vm6, %v3032_v29, %v3031_v56  ;;  %v3026_v44 = vrot.slane %v3005_v53, 1  ;;  %v3040_v6 = vrot.slane %v3013_v47, 1  ;;  %3999 = vmatpush3.bf16.msra.mxu1 %v4079_v8  ;;  %v3833_v55 = vld [vmem:[%s5635_s13] ss:$0 sm:$0xff] }
 0x833   : > { %v3025_v32 = vsel %vm1286_vm9, %v3024_v62, %v3023_v25  ;;  %v3035_v9 = vsel %vm1280_vm7, %v3034_v10, %v3033_v15  ;;  %4000 = vmatprep.subr.bf16.mxu1 %v5665_v22 }
 0x834   : > { %v3037_v60 = vsel %vm1283_vm8, %v3036_v33, %v3035_v9  ;;  %v3027_v21 = vsel %vm1289_vm10, %v3026_v44, %v3025_v32 }
 0x835   : > { %v3039_v42 = vsel %vm1286_vm9, %v3038_v7, %v3037_v60 }
 0x836   : > { %v3041_v16 = vsel %vm1289_vm10, %v3040_v6, %v3039_v42  ;;  %4001 = vmatpush3.bf16.msra.mxu1 %v4080_v19 }
 0x837   : > { %v3042_v26 = vpack.c.b16 %v3041_v16, %v3027_v21  ;;  %4002 = vmatprep.subr.bf16.mxu1 %v5665_v22 }
 0x839   : > { %3993 = vmatmul.mubr.msk.bf16.vlgmr.msra.gmra.mxu0 %vm983_vm3, %v3042_v26 }
 0x83a   : > { %4012 = vmatprep.mubr.msk.bf16.mxu0 %vm4203_vm2, %v5665_v22  ;;  %4003 = vmatpush3.bf16.msra.mxu1 %v4081_v46 }
 0x8f9   : > { %v3092_v2 = vpop.f32.mrf.mxu0 }
 0x8fa   : > { %v3093_v49 = vadd.f32 %v3829_v18, %v3092_v2 }
 0x8fb   : > { %v3994_v3 = vpop.f32.mrf.mxu0 }
 0x8fc   : > { %v3099_v48 = vmul.f32 %v3093_v49, %v3093_v49 }
 0x8fd   : > { %v3095_v45 = vpop.f32.mrf.mxu0 }
 0x8fe   : > { %v3101_v34 = vmul.f32 %v3099_v48, %v3093_v49  ;;  %v3096_v14 = vadd.f32 %v3829_v18, %v3095_v45 }
 0x8ff   : > { %v3995_v41 = vpop.f32.mrf.mxu0 }
 0x900   : > { %v3103_v30 = vmul.f32 0.044715, %v3101_v34  ;;  %v3100_v53 = vmul.f32 %v3096_v14, %v3096_v14 }
 0x902   : > { %v3105_v38 = vadd.f32 %v3103_v30, %v3093_v49  ;;  %v3102_v61 = vmul.f32 %v3100_v53, %v3096_v14 }
 0x904   : > { %v3107_v35 = vmul.f32 0.7978846, %v3105_v38  ;;  %v3104_v52 = vmul.f32 0.044715, %v3102_v61 }
 0x906   : > { %4124 = vtanh.f32 %v3107_v35  ;;  %v3106_v5 = vadd.f32 %v3104_v52, %v3096_v14 }
 0x908   : > { %v3108_v63 = vmul.f32 0.7978846, %v3106_v5 }
 0x90a   : > { %4126 = vtanh.f32 %v3108_v63 }
 0x913   : > { %v4125_v57 = vpop.eup %4124 }
 0x914   : > { %v3111_v51 = vadd.f32 1.0, %v4125_v57 }
 0x916   : > { %v3113_v24 = vmul.f32 0.5, %v3111_v51 }
 0x917   : > { %v4127_v47 = vpop.eup %4126 }
 0x918   : > { %v3112_v59 = vadd.f32 1.0, %v4127_v47  ;;  %v3115_v27 = vmul.f32 %v3113_v24, %v3093_v49 }
 0x91a   : > { %v3114_v12 = vmul.f32 0.5, %v3112_v59 }
 0x91c   : > { %v3116_v50 = vmul.f32 %v3114_v12, %v3096_v14 }
 0x91e   : > { %v3117_v29 = vpack.c.bf16 %v3116_v50, %v3115_v27 }
 0x920   : > { %4005 = vmatmul.mubr.msk.bf16.vlgmr.msra.gmra.mxu1 %vm3157_vm12, %v3117_v29 }
 0x9e0   : > { %v3195_v62 = vpop.f32.mrf.mxu1 }
 0x9e1   : > { %v3196_v56 = vadd.f32 %v3833_v55, %v3195_v62 }
 0x9e2   : > { %v4006_v10 = vpop.f32.mrf.mxu1 }
 0x9e3   : > { %v3204_v25 = vrot.slane %v3196_v56, 1  ;;  %v3205_v15 = vrot.slane %v3196_v56, 2  ;;  %v3206_v33 = vrot.slane %v3196_v56, 3  ;;  %v3207_v32 = vrot.slane %v3196_v56, 4 }
 0x9e4   : > { %v3198_v9 = vpop.f32.mrf.mxu1  ;;  %v3208_v7 = vrot.slane %v3196_v56, 5  ;;  %v3209_v44 = vrot.slane %v3196_v56, 6  ;;  %v3210_v60 = vrot.slane %v3196_v56, 7  ;;  %v3234_v46 = vadd.f32 %v3196_v56, %v5248_v28 }
 0x9e5   : > { %v3199_v6 = vadd.f32 %v3833_v55, %v3198_v9  ;;  %v5359_v42 = vadd.f32 %v3204_v25, %v5250_v31  ;;  %v5362_v21 = vadd.f32 %v3205_v15, %v5252_v20  ;;  %v5365_v16 = vadd.f32 %v3206_v33, %v5254_v1 }
 0x9e6   : > { %v4007_v26 = vpop.f32.mrf.mxu1  ;;  %v5368_v4 = vadd.f32 %v3207_v32, %v5256_v13  ;;  %v5371_v8 = vadd.f32 %v3208_v7, %v5258_v36  ;;  %v5374_v19 = vadd.f32 %v3209_v44, %v5260_v37  ;;  %v3241_v1 = vadd.f32 %v3210_v60, %v5270_v17 }
 0x9e7   : > { %v3268_v31 = vrot.slane %v5359_v42, 7  ;;  %v3270_v20 = vrot.slane %v5362_v21, 6  ;;  %v3211_v18 = vrot.slane %v3199_v6, 1  ;;  %v3272_v2 = vrot.slane %v5365_v16, 5 }
 0x9e8   : > { %v3274_v13 = vrot.slane %v5368_v4, 4  ;;  %v3276_v49 = vrot.slane %v5371_v8, 3  ;;  %v3212_v3 = vrot.slane %v3199_v6, 2  ;;  %v3213_v37 = vrot.slane %v3199_v6, 3 }
 0x9e9   : > { %v3269_v36 = vsel %vm1271_vm4, %v3268_v31, %v3234_v46  ;;  %v3214_v48 = vrot.slane %v3199_v6, 4  ;;  %v3278_v45 = vrot.slane %v5374_v19, 2  ;;  %v3215_v34 = vrot.slane %v3199_v6, 5 }
 0x9ea   : > { %v3271_v28 = vsel %vm1274_vm5, %v3270_v20, %v3269_v36  ;;  %v3216_v14 = vrot.slane %v3199_v6, 6  ;;  %v3217_v17 = vrot.slane %v3199_v6, 7  ;;  %v5388_v30 = vadd.f32 %v3211_v18, %v5272_v40 }
 0x9eb   : > { %v3273_v41 = vsel %vm1277_vm6, %v3272_v2, %v3271_v28  ;;  %v5391_v53 = vadd.f32 %v3212_v3, %v5274_v58  ;;  %v3280_v61 = vrot.slane %v3241_v1, 1  ;;  %v5395_v35 = vadd.f32 %v3213_v37, %v5276_v0 }
 0x9ec   : > { %v3275_v38 = vsel %vm1280_vm7, %v3274_v13, %v3273_v41  ;;  %v5398_v52 = vadd.f32 %v3214_v48, %v5282_v39  ;;  %v5402_v63 = vadd.f32 %v3199_v6, %v5280_v54  ;;  %v5405_v40 = vadd.f32 %v3215_v34, %v5284_v11 }
 0x9ed   : > { %v3277_v5 = vsel %vm1283_vm8, %v3276_v49, %v3275_v38  ;;  %v3282_v58 = vrot.slane %v5388_v30, 7  ;;  %v5410_v51 = vadd.f32 %v3216_v14, %v5288_v43  ;;  %v3284_v0 = vrot.slane %v5391_v53, 6 }
 0x9ee   : > { %v3279_v57 = vsel %vm1286_vm9, %v3278_v45, %v3277_v5  ;;  %v5415_v47 = vadd.f32 %v3217_v17, %v5290_v23  ;;  %v3286_v11 = vrot.slane %v5395_v35, 5  ;;  %v3288_v12 = vrot.slane %v5398_v52, 4 }
 0x9ef   : > { %v3281_v39 = vsel %vm1289_vm10, %v3280_v61, %v3279_v57  ;;  %v3283_v54 = vsel %vm1271_vm4, %v3282_v58, %v5402_v63  ;;  %v3290_v27 = vrot.slane %v5405_v40, 3  ;;  %v3292_v23 = vrot.slane %v5410_v51, 2 }
 0x9f0   : > { %v3298_v24 = vsel %vm983_vm3, %v3281_v39, 0.0  ;;  %v3285_v59 = vsel %vm1274_vm5, %v3284_v0, %v3283_v54  ;;  %v3294_v55 = vrot.slane %v5415_v47, 1 }
 0x9f1   : > { %3299 = vadd.xlane.f32.xlu0 %v3298_v24  ;;  %v3287_v43 = vsel %vm1277_vm6, %v3286_v11, %v3285_v59 }
 0x9f2   : > { %v3289_v50 = vsel %vm1280_vm7, %v3288_v12, %v3287_v43 }
 0x9f3   : > { %v3291_v29 = vsel %vm1283_vm8, %v3290_v27, %v3289_v50 }
 0x9f4   : > { %v3293_v62 = vsel %vm1286_vm9, %v3292_v23, %v3291_v29 }
 0x9f5   : > { %v3295_v56 = vsel %vm1289_vm10, %v3294_v55, %v3293_v62 }
 0x9f6   : > { %v3301_v10 = vsel %vm983_vm3, %v3295_v56, 0.0 }
 0x9f7   : > { %3302 = vadd.xlane.f32.xlu1 %v3301_v10 }
 0xa7a   : > { %v3300_v25 = vpop.xlane.xlu0 %3299 }
 0xa7b   : > { %v3304_v15 = vmul.f32 0.03125, %v3300_v25 }
 0xa7d   : > { %v3308_v33 = vrot.slane %v3304_v15, 1  ;;  %v3309_v32 = vrot.slane %v3304_v15, 2  ;;  %v3310_v9 = vrot.slane %v3304_v15, 3  ;;  %v3311_v7 = vrot.slane %v3304_v15, 4 }
 0xa7e   : > { %v3312_v44 = vrot.slane %v3304_v15, 5  ;;  %v3313_v60 = vrot.slane %v3304_v15, 6  ;;  %v3314_v6 = vrot.slane %v3304_v15, 7  ;;  %v5432_v26 = vsub.f32 %v3234_v46, %v3304_v15 }
 0xa7f   : > { %v5435_v31 = vsub.f32 %v5359_v42, %v3308_v33  ;;  %v5438_v20 = vsub.f32 %v5362_v21, %v3309_v32  ;;  %v5441_v18 = vsub.f32 %v5365_v16, %v3310_v9  ;;  %v5444_v2 = vsub.f32 %v5368_v4, %v3311_v7 }
 0xa80   : > { %v3303_v13 = vpop.xlane.xlu1 %3302  ;;  %v5447_v49 = vsub.f32 %v5371_v8, %v3312_v44  ;;  %v5450_v36 = vsub.f32 %v5374_v19, %v3313_v60  ;;  %v5452_v46 = vsub.f32 %v3241_v1, %v3314_v6  ;;  %v3354_v3 = vmul.f32 %v5432_v26, %v5432_v26 }
 0xa81   : > { %v3305_v42 = vmul.f32 0.03125, %v3303_v13  ;;  %v3355_v21 = vmul.f32 %v5435_v31, %v5435_v31  ;;  %v3356_v16 = vmul.f32 %v5438_v20, %v5438_v20  ;;  %v3357_v4 = vmul.f32 %v5441_v18, %v5441_v18 }
 0xa82   : > { %v3358_v8 = vmul.f32 %v5444_v2, %v5444_v2  ;;  %v3359_v19 = vmul.f32 %v5447_v49, %v5447_v49  ;;  %v3360_v1 = vmul.f32 %v5450_v36, %v5450_v36  ;;  %v3361_v37 = vmul.f32 %v5452_v46, %v5452_v46 }
 0xa83   : > { %v3386_v48 = vrot.slane %v3355_v21, 7  ;;  %v3388_v28 = vrot.slane %v3356_v16, 6  ;;  %v3315_v45 = vrot.slane %v3305_v42, 1  ;;  %v3390_v34 = vrot.slane %v3357_v4, 5 }
 0xa84   : > { %v3392_v14 = vrot.slane %v3358_v8, 4  ;;  %v3394_v41 = vrot.slane %v3359_v19, 3  ;;  %v3396_v17 = vrot.slane %v3360_v1, 2  ;;  %v3316_v61 = vrot.slane %v3305_v42, 2  ;;  %v4082_v1 = vld [vmem:[%s5638_s16 + $0x8] sm:$0xff]  }
 0xa85   : > { %v3387_v38 = vsel %vm1271_vm4, %v3386_v48, %v3354_v3  ;;  %v3317_v5 = vrot.slane %v3305_v42, 3  ;;  %v3318_v58 = vrot.slane %v3305_v42, 4  ;;  %v3319_v0 = vrot.slane %v3305_v42, 5  ;;  %4009 = vmatpush3.bf16.msra.mxu0 %v4082_v1 }
 0xa86   : > { %v3389_v57 = vsel %vm1274_vm5, %v3388_v28, %v3387_v38  ;;  %v3320_v39 = vrot.slane %v3305_v42, 6  ;;  %v3321_v54 = vrot.slane %v3305_v42, 7  ;;  %v5474_v24 = vsub.f32 %v5402_v63, %v3305_v42  ;;  %4010 = vmatprep.subr.bf16.mxu0 %v5665_v22  ;;  %v3839_v38 = vld [vmem:[%s5636_s14] ss:$0 sm:$0xff] }
 0xa87   : > { %v3391_v11 = vsel %vm1277_vm6, %v3390_v34, %v3389_v57  ;;  %v5477_v59 = vsub.f32 %v5388_v30, %v3315_v45  ;;  %v5480_v12 = vsub.f32 %v5391_v53, %v3316_v61  ;;  %v5484_v27 = vsub.f32 %v5395_v35, %v3317_v5 }
 0xa88   : > { %v3393_v43 = vsel %vm1280_vm7, %v3392_v14, %v3391_v11  ;;  %v5487_v50 = vsub.f32 %v5398_v52, %v3318_v58  ;;  %v5490_v23 = vsub.f32 %v5405_v40, %v3319_v0  ;;  %v3398_v29 = vrot.slane %v3361_v37, 1  ;;  %v4083_v37 = vld [vmem:[%s5638_s16] sm:$0xff]  }
 0xa89   : > { %v3395_v63 = vsel %vm1283_vm8, %v3394_v41, %v3393_v43  ;;  %v5494_v30 = vsub.f32 %v5410_v51, %v3320_v39  ;;  %v5497_v53 = vsub.f32 %v5415_v47, %v3321_v54  ;;  %v3363_v35 = vmul.f32 %v5477_v59, %v5477_v59  ;;  %4011 = vmatpush3.bf16.msra.mxu0 %v4083_v37 }
 0xa8a   : > { %v3397_v55 = vsel %vm1286_vm9, %v3396_v17, %v3395_v63  ;;  %v3364_v52 = vmul.f32 %v5480_v12, %v5480_v12  ;;  %v3365_v40 = vmul.f32 %v5484_v27, %v5484_v27  ;;  %v3362_v51 = vmul.f32 %v5474_v24, %v5474_v24 }
 0xa8b   : > { %v3399_v62 = vsel %vm1289_vm10, %v3398_v29, %v3397_v55  ;;  %v3366_v47 = vmul.f32 %v5487_v50, %v5487_v50  ;;  %v3367_v10 = vmul.f32 %v5490_v23, %v5490_v23  ;;  %v3400_v25 = vrot.slane %v3363_v35, 7 }
 0xa8c   : > { %v3416_v56 = vsel %vm983_vm3, %v3399_v62, 0.0  ;;  %v3402_v15 = vrot.slane %v3364_v52, 6  ;;  %v3368_v33 = vmul.f32 %v5494_v30, %v5494_v30  ;;  %v3369_v32 = vmul.f32 %v5497_v53, %v5497_v53  ;;  %v3840_v62 = vld [vmem:[%s5637_s15] ss:$0 sm:$0xff] }
 0xa8d   : > { %3417 = vadd.xlane.f32.xlu0 %v3416_v56  ;;  %v3401_v9 = vsel %vm1271_vm4, %v3400_v25, %v3362_v51  ;;  %v3404_v7 = vrot.slane %v3365_v40, 5  ;;  %v3406_v60 = vrot.slane %v3366_v47, 4  ;;  %v3408_v13 = vrot.slane %v3367_v10, 3 }
 0xa8e   : > { %v3403_v44 = vsel %vm1274_vm5, %v3402_v15, %v3401_v9  ;;  %v3410_v21 = vrot.slane %v3368_v33, 2  ;;  %v3412_v4 = vrot.slane %v3369_v32, 1 }
 0xa8f   : > { %v3405_v6 = vsel %vm1277_vm6, %v3404_v7, %v3403_v44 }
 0xa90   : > { %v3407_v42 = vsel %vm1280_vm7, %v3406_v60, %v3405_v6 }
 0xa91   : > { %v3409_v16 = vsel %vm1283_vm8, %v3408_v13, %v3407_v42 }
 0xa92   : > { %v3411_v3 = vsel %vm1286_vm9, %v3410_v21, %v3409_v16 }
 0xa93   : > { %v3413_v8 = vsel %vm1289_vm10, %v3412_v4, %v3411_v3 }
 0xa94   : > { %v3419_v19 = vsel %vm983_vm3, %v3413_v8, 0.0 }
 0xa95   : > { %3420 = vadd.xlane.f32.xlu1 %v3419_v19 }
 0xb16   : > { %v3418_v48 = vpop.xlane.xlu0 %3417 }
 0xb17   : > { %v3422_v28 = vmul.f32 0.03125, %v3418_v48 }
 0xb19   : > { %v3424_v45 = vadd.f32 1e-12, %v3422_v28 }
 0xb1b   : > { %4128 = vrsqrt.f32 %v3424_v45 }
 0xb1e   : > { %v3421_v34 = vpop.xlane.xlu1 %3420 }
 0xb1f   : > { %v3423_v14 = vmul.f32 0.03125, %v3421_v34 }
 0xb21   : > { %v3425_v41 = vadd.f32 1e-12, %v3423_v14 }
 0xb23   : > { %4130 = vrsqrt.f32 %v3425_v41 }
 0xb28   : > { %v4129_v17 = vpop.eup %4128 }
 0xb29   : > { %v3430_v61 = vrot.slane %v4129_v17, 1  ;;  %v3431_v5 = vrot.slane %v4129_v17, 2  ;;  %v3432_v58 = vrot.slane %v4129_v17, 3  ;;  %v3433_v57 = vrot.slane %v4129_v17, 4 }
 0xb2a   : > { %v3434_v0 = vrot.slane %v4129_v17, 5  ;;  %v3435_v22 = vrot.slane %v4129_v17, 6  ;;  %v3436_v39 = vrot.slane %v4129_v17, 7  ;;  %v3460_v54 = vmul.f32 %v4129_v17, %v5432_v26 }
 0xb2b   : > { %v3461_v11 = vmul.f32 %v3430_v61, %v5435_v31  ;;  %v3462_v43 = vmul.f32 %v3431_v5, %v5438_v20  ;;  %v3463_v63 = vmul.f32 %v3432_v58, %v5441_v18  ;;  %v3464_v29 = vmul.f32 %v3433_v57, %v5444_v2 }
 0xb2c   : > { %v3465_v55 = vmul.f32 %v3434_v0, %v5447_v49  ;;  %v3466_v35 = vmul.f32 %v3435_v22, %v5450_v36  ;;  %v3467_v52 = vmul.f32 %v3436_v39, %v5452_v46  ;;  %v3482_v40 = vmul.f32 %v3839_v38, %v3460_v54 }
 0xb2d   : > { %v3483_v26 = vmul.f32 %v3839_v38, %v3461_v11  ;;  %v3484_v51 = vmul.f32 %v3839_v38, %v3462_v43  ;;  %v3485_v31 = vmul.f32 %v3839_v38, %v3463_v63  ;;  %v3486_v47 = vmul.f32 %v3839_v38, %v3464_v29 }
 0xb2e   : > { %v3487_v20 = vmul.f32 %v3839_v38, %v3465_v55  ;;  %v3488_v56 = vmul.f32 %v3839_v38, %v3466_v35  ;;  %v3489_v18 = vmul.f32 %v3839_v38, %v3467_v52  ;;  %v3504_v10 = vadd.f32 %v3840_v62, %v3482_v40 }
 0xb2f   : > { %v3505_v2 = vadd.f32 %v3840_v62, %v3483_v26  ;;  %v3506_v25 = vadd.f32 %v3840_v62, %v3484_v51  ;;  %v3507_v15 = vadd.f32 %v3840_v62, %v3485_v31  ;;  %v3508_v36 = vadd.f32 %v3840_v62, %v3486_v47 }
 0xb30   : > { %v4131_v49 = vpop.eup %4130  ;;  %v3509_v33 = vadd.f32 %v3840_v62, %v3487_v20  ;;  %v3510_v46 = vadd.f32 %v3840_v62, %v3488_v56  ;;  %v3511_v41 = vadd.f32 %v3840_v62, %v3489_v18  ;;  %v3520_v22 = vpack.c.bf16 %v3504_v10, %v3504_v10 }
 0xb31   : > { %v3437_v32 = vrot.slane %v4131_v49, 1  ;;  %v3438_v9 = vrot.slane %v4131_v49, 2  ;;  %v3439_v7 = vrot.slane %v4131_v49, 3  ;;  %v3440_v44 = vrot.slane %v4131_v49, 4 }
 0xb32   : > { %v3441_v60 = vrot.slane %v4131_v49, 5  ;;  %v3442_v6 = vrot.slane %v4131_v49, 6  ;;  %v3443_v13 = vrot.slane %v4131_v49, 7  ;;  %v3468_v42 = vmul.f32 %v4131_v49, %v5474_v24 }
 0xb33   : > { %v3469_v21 = vmul.f32 %v3437_v32, %v5477_v59  ;;  %v3470_v16 = vmul.f32 %v3438_v9, %v5480_v12  ;;  %v3471_v4 = vmul.f32 %v3439_v7, %v5484_v27  ;;  %v3472_v3 = vmul.f32 %v3440_v44, %v5487_v50 }
 0xb34   : > { %v3473_v8 = vmul.f32 %v3441_v60, %v5490_v23  ;;  %v3474_v19 = vmul.f32 %v3442_v6, %v5494_v30  ;;  %v3475_v1 = vmul.f32 %v3443_v13, %v5497_v53  ;;  %v3490_v37 = vmul.f32 %v3839_v38, %v3468_v42 }
 0xb35   : > { %v3491_v48 = vmul.f32 %v3839_v38, %v3469_v21  ;;  %v3492_v28 = vmul.f32 %v3839_v38, %v3470_v16  ;;  %v3493_v45 = vmul.f32 %v3839_v38, %v3471_v4  ;;  %v3494_v34 = vmul.f32 %v3839_v38, %v3472_v3 }
 0xb36   : > { %v3495_v24 = vmul.f32 %v3839_v38, %v3473_v8  ;;  %v3496_v14 = vmul.f32 %v3839_v38, %v3474_v19  ;;  %v3497_v59 = vmul.f32 %v3839_v38, %v3475_v1  ;;  %v3521_v61 = vpack.c.bf16 %v3505_v2, %v3505_v2 }
 0xb37   : > { %v3513_v12 = vadd.f32 %v3840_v62, %v3491_v48  ;;  %v3514_v17 = vadd.f32 %v3840_v62, %v3492_v28  ;;  %v3515_v27 = vadd.f32 %v3840_v62, %v3493_v45  ;;  %v3512_v50 = vadd.f32 %v3840_v62, %v3490_v37 }
 0xb38   : > { %v3516_v5 = vadd.f32 %v3840_v62, %v3494_v34  ;;  %v3517_v23 = vadd.f32 %v3840_v62, %v3495_v24  ;;  %v3522_v58 = vpack.c.bf16 %v3506_v25, %v3506_v25  ;;  %v3518_v30 = vadd.f32 %v3840_v62, %v3496_v14 }
 0xb39   : > { %v3519_v57 = vadd.f32 %v3840_v62, %v3497_v59  ;;  %v3523_v53 = vpack.c.bf16 %v3507_v15, %v3507_v15  ;;  %v3529_v0 = vpack.c.bf16 %v3513_v12, %v3513_v12  ;;  %v3524_v39 = vpack.c.bf16 %v3508_v36, %v3508_v36 }
 0xb3a   : > { %v3525_v54 = vpack.c.bf16 %v3509_v33, %v3509_v33  ;;  %v3530_v11 = vpack.c.bf16 %v3514_v17, %v3514_v17  ;;  %v3526_v43 = vpack.c.bf16 %v3510_v46, %v3510_v46  ;;  %v3527_v63 = vpack.c.bf16 %v3511_v41, %v3511_v41 }
 0xb3b   : > { %v3531_v38 = vpack.c.bf16 %v3515_v27, %v3515_v27  ;;  %v3564_v29 = vunpack.c.l.b16 %v3521_v61  ;;  %v3528_v55 = vpack.c.bf16 %v3512_v50, %v3512_v50  ;;  %v3532_v35 = vpack.c.bf16 %v3516_v5, %v3516_v5  ;;  %v3841_v5 = vld [vmem:[%s5639_s17] ss:$0 sm:$0xff] }
 0xb3c   : > { %v3533_v52 = vpack.c.bf16 %v3517_v23, %v3517_v23  ;;  %v3565_v40 = vunpack.c.l.b16 %v3522_v58  ;;  %v3534_v26 = vpack.c.bf16 %v3518_v30, %v3518_v30  ;;  %v3535_v51 = vpack.c.bf16 %v3519_v57, %v3519_v57 }
 0xb3d   : > { %v3566_v31 = vunpack.c.l.b16 %v3523_v53  ;;  %v3572_v47 = vunpack.c.l.b16 %v3529_v0  ;;  %v3563_v20 = vunpack.c.l.b16 %v3520_v22  ;;  %v3567_v62 = vunpack.c.l.b16 %v3524_v39 }
 0xb3e   : > { %v3568_v56 = vunpack.c.l.b16 %v3525_v54  ;;  %v3573_v18 = vunpack.c.l.b16 %v3530_v11  ;;  %v3569_v10 = vunpack.c.l.b16 %v3526_v43  ;;  %v3574_v2 = vunpack.c.l.b16 %v3531_v38 }
 0xb3f   : > { %v3579_v25 = vrot.slane %v3564_v29, 7  ;;  %v3581_v49 = vrot.slane %v3565_v40, 6  ;;  %v3570_v15 = vunpack.c.l.b16 %v3527_v63  ;;  %v3571_v36 = vunpack.c.l.b16 %v3528_v55 }
 0xb40   : > { %v3575_v33 = vunpack.c.l.b16 %v3532_v35  ;;  %v3576_v46 = vunpack.c.l.b16 %v3533_v52  ;;  %v3583_v9 = vrot.slane %v3566_v31, 5  ;;  %v3593_v7 = vrot.slane %v3572_v47, 7 }
 0xb41   : > { %v3580_v32 = vsel %vm1271_vm4, %v3579_v25, %v3563_v20  ;;  %v3595_v44 = vrot.slane %v3573_v18, 6  ;;  %v3577_v60 = vunpack.c.l.b16 %v3534_v26  ;;  %v3578_v6 = vunpack.c.l.b16 %v3535_v51 }
 0xb42   : > { %v3582_v13 = vsel %vm1274_vm5, %v3581_v49, %v3580_v32  ;;  %v3585_v42 = vrot.slane %v3567_v62, 4  ;;  %v3587_v16 = vrot.slane %v3568_v56, 3  ;;  %v3594_v4 = vsel %vm1271_vm4, %v3593_v7, %v3571_v36 }
 0xb43   : > { %v3584_v21 = vsel %vm1277_vm6, %v3583_v9, %v3582_v13  ;;  %v3597_v3 = vrot.slane %v3574_v2, 5  ;;  %v3589_v19 = vrot.slane %v3569_v10, 2  ;;  %v3596_v1 = vsel %vm1274_vm5, %v3595_v44, %v3594_v4 }
 0xb44   : > { %v3586_v8 = vsel %vm1280_vm7, %v3585_v42, %v3584_v21  ;;  %v3599_v37 = vrot.slane %v3575_v33, 4  ;;  %v3601_v45 = vrot.slane %v3576_v46, 3  ;;  %v3603_v14 = vrot.slane %v3577_v60, 2 }
 0xb45   : > { %v3588_v48 = vsel %vm1283_vm8, %v3587_v16, %v3586_v8  ;;  %v3598_v28 = vsel %vm1277_vm6, %v3597_v3, %v3596_v1  ;;  %v3591_v59 = vrot.slane %v3570_v15, 1  ;;  %v3605_v12 = vrot.slane %v3578_v6, 1 }
 0xb46   : > { %v3590_v34 = vsel %vm1286_vm9, %v3589_v19, %v3588_v48  ;;  %v3600_v24 = vsel %vm1280_vm7, %v3599_v37, %v3598_v28 }
 0xb47   : > { %v3602_v41 = vsel %vm1283_vm8, %v3601_v45, %v3600_v24  ;;  %v3592_v27 = vsel %vm1289_vm10, %v3591_v59, %v3590_v34 }
 0xb48   : > { %v3604_v17 = vsel %vm1286_vm9, %v3603_v14, %v3602_v41 }
 0xb49   : > { %v3606_v61 = vsel %vm1289_vm10, %v3605_v12, %v3604_v17 }
 0xb4a   : > { %v3607_v50 = vpack.c.b16 %v3606_v61, %v3592_v27 }
 0xb4c   : > { %4013 = vmatmul.mubr.msk.bf16.vlgmr.msra.gmra.mxu0 %vm983_vm3, %v3607_v50 }
 0xc0c   : > { %v3657_v23 = vpop.f32.mrf.mxu0 }
 0xc0d   : > { %v3658_v58 = vadd.f32 %v3841_v5, %v3657_v23 }
 0xc0e   : > { %v4014_v30 = vpop.f32.mrf.mxu0 }
 0xc0f   : > { %3664 = vmax.xlane.f32.xlu0 %v3658_v58 }
 0xc10   : > { %v3660_v57 = vpop.f32.mrf.mxu0 }
 0xc11   : > { %v3661_v53 = vadd.f32 %v3841_v5, %v3660_v57 }
 0xc12   : > { %v4015_v0 = vpop.f32.mrf.mxu0 }
 0xc13   : > { %3666 = vmax.xlane.f32.xlu1 %v3661_v53 }
 0xc98   : > { %v3665_v22 = vpop.xlane.xlu0 %3664 }
 0xc99   : > { %v3668_v39 = vsub.f32 %v3658_v58, %v3665_v22 }
 0xc9b   : > { %v3670_v54 = vmul.f32 1.442695, %v3668_v39 }
 0xc9c   : > { %v3667_v11 = vpop.xlane.xlu1 %3666 }
 0xc9d   : > { %4132 = vpow2.f32 %v3670_v54  ;;  %v3669_v43 = vsub.f32 %v3661_v53, %v3667_v11 }
 0xc9f   : > { %v3672_v63 = vmul.f32 1.442695, %v3669_v43 }
 0xca1   : > { %4134 = vpow2.f32 %v3672_v63 }
 0xcaa   : > { %v4133_v38 = vpop.eup %4132 }
 0xcab   : > { %3674 = vadd.xlane.f32.xlu0 %v4133_v38 }
 0xcae   : > { %v4135_v29 = vpop.eup %4134 }
 0xcaf   : > { %3676 = vadd.xlane.f32.xlu1 %v4135_v29 }
 0xd34   : > { %v3675_v55 = vpop.xlane.xlu0 %3674 }
 0xd35   : > { %4136 = vrcp.f32 %v3675_v55 }
 0xd38   : > { %v3677_v35 = vpop.xlane.xlu1 %3676 }
 0xd39   : > { %4138 = vrcp.f32 %v3677_v35 }
 0xd42   : > { %v4137_v52 = vpop.eup %4136 }
 0xd43   : > { %v3679_v40 = vmul.f32 %v4137_v52, %v4133_v38 }
 0xd45   : > { %3682 = vst [vmem:[%s585_s22] sm:$0xff] %v3679_v40 }
 0xd46   : > { %v4139_v26 = vpop.eup %4138 }
 0xd47   : > { %v3681_v51 = vmul.f32 %v4139_v26, %v4135_v29 }
 0xd49   : > { %3683 = vst [vmem:[%s585_s22 + $0x8] sm:$0xff] %v3681_v51 }
 0xd4a   : > { %4153 = shalt.err (!%p4150_p3)
}
 0xd4b   : > { %s4154_s29 = scalar_lea.hbm %s5578_s26, 256  ;;  %s4158_s1 = scalar_lea.hbm %s5640_s18, 512 }
 0xd4c   : > { %p4155_p4 = scmp.ne.s32.totalorder %s5578_s26, %s4154_s29  ;;  %p4159_p9 = scmp.lt.s32.totalorder %s5578_s26, %s5640_s18 }
 0xd4d   : > { %p4160_p10 = scmp.lt.s32.totalorder %s4158_s1, %s4154_s29 }
 0xd4e   : > { %p4156_p7 = pnand %p4155_p4, %p4342_p5 }
 0xd4f   : > { %p4161_p11 = por %p4160_p10, %p4159_p9 }
 0xd50   : > { %p4157_p8 = pneg %p4156_p7 }
 0xd52   : > { %p4162_p12 = pnand %p4161_p11, %p4157_p8 }
 0xd54   : > { %4165 = shalt.err (!%p4162_p12)
}
 0xd55   : > { %s4207_s21 = smov 128   ;;  %s4208_s25 = smov 8  }
 0xd56   : > { %4017 = dma.vmem_to_hbm [thread:$0]  (%p4342_p5), %s5580_s24, 256, %s5578_s26, %s5582_s20, %s4207_s21, %s4207_s21, %s4208_s25  }
 0xd57 PF: > { %p4023_p13 = scmp.ge.s32.totalorder %s4200_s30, 2  ;;  %s3713_s19 = sand.u32 1, %s4188_s27  }
 0xd58   : > { %s3714_s3 = scalar_lea.sflag [#allocation3], %s3713_s19 }
 0xd59   : > { %p4020_p0 = pnand %p4023_p13, %p4346_p6 }
 0xd5b   : > { %p4021_p1 = pneg %p4020_p0 }
 0xd5d   : > { %4183 = dma.done.wait (%p4021_p1), %s3714_s3, 256  }
 0xd5e   : > { %4185 = vsyncadd (%p4021_p1), %s3714_s3, 4294967040  ;;  %s5666_s30 = sld [smem:[#allocation6_spill]]  ;;  %s5669_s27 = smov %s4192_s28 }
 0xd5f   : > { %s5667_s29 = sld [smem:[#allocation5_spill]] }
 0xd60   : > { %s5668_s5 = sld [smem:[#allocation7_spill]] }
 0xd64   : > { %p28_p2 = scmp.ge.s32.totalorder %s5666_s30, 4  }
 0xd65   : > { %s5670_s28 = smov %s5667_s29 }
 0xd66   : > { %s5671_s29 = smov %s5668_s5  ;;  %30 = sbr.rel (!%p28_p2) target bundleno = 9 (0x9), region = 130 }
 0xd6b   :  { %3719 = vsyncpa [#allocation3], 1 }
 0xd6c   :  { %3721 = vsyncpa [#allocation3 + $0x1], 1 }

</bundles_post_ra>
